<compile_context>
chip_gen: v5e
topology: v5e:2x2
jax: 0.10.0
libtpu: 0.0.40
codegen_flags: <defaults>
</compile_context>

<pallas_src>
import math
from functools import partial

import numpy as np
import jax
import jax.numpy as jnp
from jax.experimental import pallas as pl
from jax.experimental.pallas import tpu as pltpu


# ----------------------------- glue helpers (plain JAX / numpy) -----------------------------

def _window_partition(t, ws):
    # einops: 'b (wy h) (wx w) c -> (b h w) (wy wx) c'   (wy, wx = window_size, OUTER factors)
    b, H, W, c = t.shape
    h, w = H // ws, W // ws
    t = t.reshape(b, ws, h, ws, w, c)
    t = jnp.transpose(t, (0, 2, 4, 1, 3, 5))
    return t.reshape(b * h * w, ws * ws, c)


def _window_reverse(t, ws, H, W):
    # einops: '(b h w) (sy sx) c -> b (sy h) (sx w) c'
    h, w = H // ws, W // ws
    b = t.shape[0] // (h * w)
    c = t.shape[-1]
    t = t.reshape(b, h, w, ws, ws, c)
    t = jnp.transpose(t, (0, 3, 1, 4, 2, 5))
    return t.reshape(b, ws * h, ws * w, c)


def _relative_bias_index(ws):
    coords = np.stack(np.meshgrid(np.arange(ws), np.arange(ws), indexing="ij"))
    coords = coords.reshape(2, -1)
    rel = coords[:, :, None] - coords[:, None, :]
    rel = rel.transpose(1, 2, 0).astype(np.int64)
    rel[:, :, 0] += ws - 1
    rel[:, :, 1] += ws - 1
    rel[:, :, 0] *= 2 * ws - 1
    return rel.sum(-1)  # (ws*ws, ws*ws)


def _attention_mask(shift, ws, h, w):
    # Mirrors SingleSwinBlock._get_attention_mask.  NOTE: like the PyTorch reference,
    # the caller passes (resolution[1], resolution[0]); kept to match the spec exactly.
    if shift <= 0:
        return None
    img = np.zeros((h, w), np.float32)
    sl = (slice(0, -ws), slice(-ws, -shift), slice(-shift, None))
    cnt = 0
    for hs in sl:
        for wsl in sl:
            img[hs, wsl] = cnt
            cnt += 1
    hb, wb = h // ws, w // ws
    # same (window-size-outer) partition as _window_partition, done in numpy
    win = img.reshape(ws, hb, ws, wb).transpose(1, 3, 0, 2).reshape(hb * wb, ws * ws)
    mask = win[:, None, :] - win[:, :, None]                    # (nw, n, n)
    mask = np.where(mask != 0, -100.0, 0.0).astype(np.float32)
    return jnp.asarray(mask)


def _pick_window_block(B, nw, n, target_rows=256):
    """Windows per attention grid step.  Must divide B*nw and be a divisor or
    multiple of nw (so the bias index_map / tiling stays exact)."""
    BW = B * nw
    cands = [d for d in range(1, BW + 1)
             if BW % d == 0 and (nw % d == 0 or d % nw == 0) and d * n <= target_rows]
    if not cands:
        cands = [1]
    wb = max(cands)
    if BW // wb < 2:                      # keep >=2 grid steps when possible (v7x: 2 TCs)
        smaller = [d for d in cands if BW // d >= 2]
        if smaller:
            wb = max(smaller)
    return wb


def _pick_row_tile(rows, target_rows=512):
    """Token-row tile for the MLP kernel (multiple of 8, divides rows)."""
    divs = [d for d in range(1, rows + 1) if rows % d == 0]
    cands = [d for d in divs if d <= target_rows and (d % 8 == 0 or d == rows)]
    if not cands:
        cands = [d for d in divs if d <= target_rows] or [rows]
    tm = max(cands)
    if rows // tm < 2:
        smaller = [d for d in cands if rows // d >= 2]
        if smaller:
            tm = max(smaller)
    return tm


# ----------------------------- Pallas kernels -----------------------------

def _attn_kernel(x_ref, bias_ref, lnw_ref, lnb_ref, wqkv_ref, bqkv_ref,
                 wp_ref, bp_ref, o_ref, *, num_heads, head_dim, scale):
    """LayerNorm -> QKV -> multi-head windowed attention -> projection -> +residual,
    for a block of WB windows at once."""
    WB, n, C = x_ref.shape
    cdt = wqkv_ref.dtype                                   # matmul compute dtype (f32 or bf16)

    x = x_ref[...].reshape(WB * n, C)                      # pre-LN window tokens
    mu = jnp.mean(x, axis=-1, keepdims=True)
    var = jnp.mean((x - mu) ** 2, axis=-1, keepdims=True)
    xn = (x - mu) * jax.lax.rsqrt(var + 1e-5) * lnw_ref[...] + lnb_ref[...]

    qkv = jnp.dot(xn.astype(cdt), wqkv_ref[...],
                  preferred_element_type=jnp.float32) + bqkv_ref[...]
    qkv = qkv.reshape(WB, n, 3 * C)
    bias = bias_ref[...]                                   # (WB, heads, n, n), already /sqrt(32)

    outs = []
    for h in range(num_heads):                             # heads: small static loop,
        qh = qkv[:, :, h * head_dim:(h + 1) * head_dim]    # each iteration batched over WB
        kh = qkv[:, :, C + h * head_dim:C + (h + 1) * head_dim]
        vh = qkv[:, :, 2 * C + h * head_dim:2 * C + (h + 1) * head_dim]
        e = jnp.einsum('bqd,bkd->bqk', qh.astype(cdt), kh.astype(cdt),
                       preferred_element_type=jnp.float32)
        # scale already includes the 1/sqrt(32) factor; bias/mask were pre-divided.
        e = e * scale + bias[:, h]
        e = e - jnp.max(e, axis=-1, keepdims=True)         # stable softmax over keys
        pexp = jnp.exp(e)
        inv = pl.reciprocal(jnp.sum(pexp, axis=-1, keepdims=True), approx=False)
        pexp = pexp * inv
        outs.append(jnp.einsum('bqk,bkd->bqd', pexp.astype(cdt), vh.astype(cdt),
                               preferred_element_type=jnp.float32))
    att = jnp.concatenate(outs, axis=-1).reshape(WB * n, C)
    proj = jnp.dot(att.astype(wp_ref.dtype), wp_ref[...],
                   preferred_element_type=jnp.float32) + bp_ref[...]
    # Fused first residual: window partition / reverse / cyclic shift are elementwise
    # permutations, so adding the partitioned pre-LN x here equals msa_out = x + attn.
    o_ref[...] = (x + proj).reshape(WB, n, C)
    # TODO(synk): attention_dropout / projection_dropout are p=0.0 -> identity, omitted.


def _mlp_kernel(x_ref, lnw_ref, lnb_ref, w1_ref, b1_ref, w2_ref, b2_ref, o_ref):
    """LayerNorm -> Linear(C,4C) -> GELU -> Linear(4C,C), fused with BOTH residual adds
    (module returns 2*msa_out + mlp_branch).  One tile of TM token rows per step."""
    x = x_ref[...]                                         # (TM, C) = msa_out rows
    mu = jnp.mean(x, axis=-1, keepdims=True)
    var = jnp.mean((x - mu) ** 2, axis=-1, keepdims=True)
    xn = (x - mu) * jax.lax.rsqrt(var + 1e-5) * lnw_ref[...] + lnb_ref[...]
    h = jnp.dot(xn.astype(w1_ref.dtype), w1_ref[...],
                preferred_element_type=jnp.float32) + b1_ref[...]
    # exact (erf-based) GELU, matching torch.nn.GELU() default
    h = 0.5 * h * (1.0 + jax.lax.erf(h * 0.7071067811865476))
    y = jnp.dot(h.astype(w2_ref.dtype), w2_ref[...],
                preferred_element_type=jnp.float32) + b2_ref[...]
    o_ref[...] = 2.0 * x + y


# ----------------------------- pallas_call wrappers -----------------------------

def swin_attention(partitions, bias, p, *, num_heads, window_block, bias_blocks,
                   matmul_dtype=jnp.float32):
    BW, n, C = partitions.shape
    WB = window_block
    hd = C // num_heads
    scale = (float(hd) ** -0.5) / math.sqrt(32.0)          # folds the /sqrt(32)

    if bias_blocks == 1:
        bias_idx = lambda i: (0, 0, 0, 0)                  # resident across all steps
    else:
        bias_idx = lambda i, nb=bias_blocks: (i % nb, 0, 0, 0)

    wqkv = p["w_qkv"].astype(matmul_dtype)
    wproj = p["w_proj"].astype(matmul_dtype)
    kernel = partial(_attn_kernel, num_heads=num_heads, head_dim=hd, scale=scale)

    return pl.pallas_call(
        kernel,
        out_shape=jax.ShapeDtypeStruct((BW, n, C), jnp.float32),
        grid=(BW // WB,),
        in_specs=[
            pl.BlockSpec((WB, n, C), lambda i: (i, 0, 0)),                 # window tokens
            pl.BlockSpec((WB, num_heads, n, n), bias_idx),                 # bias(+mask)/sqrt(32)
            pl.BlockSpec((1, C), lambda i: (0, 0)),                        # LN weight
            pl.BlockSpec((1, C), lambda i: (0, 0)),                        # LN bias
            pl.BlockSpec((C, 3 * C), lambda i: (0, 0)),                    # qkv weight
            pl.BlockSpec((1, 3 * C), lambda i: (0, 0)),                    # qkv bias
            pl.BlockSpec((C, C), lambda i: (0, 0)),                        # proj weight
            pl.BlockSpec((1, C), lambda i: (0, 0)),                        # proj bias
        ],
        out_specs=pl.BlockSpec((WB, n, C), lambda i: (i, 0, 0)),
        compiler_params=pltpu.CompilerParams(dimension_semantics=("parallel",)),
    )(partitions, bias, p["ln1_w"], p["ln1_b"], wqkv, p["b_qkv"], wproj, p["b_proj"])


def mlp_block(msa_out, p, *, matmul_dtype=jnp.float32):
    B, N, C = msa_out.shape
    rows = B * N
    TM = _pick_row_tile(rows)
    E = p["w1"].shape[1]
    w1 = p["w1"].astype(matmul_dtype)
    w2 = p["w2"].astype(matmul_dtype)
    x2 = msa_out.reshape(rows, C)
    out = pl.pallas_call(
        _mlp_kernel,
        out_shape=jax.ShapeDtypeStruct((rows, C), jnp.float32),
        grid=(rows // TM,),
        in_specs=[
            pl.BlockSpec((TM, C), lambda i: (i, 0)),
            pl.BlockSpec((1, C), lambda i: (0, 0)),
            pl.BlockSpec((1, C), lambda i: (0, 0)),
            pl.BlockSpec((C, E), lambda i: (0, 0)),
            pl.BlockSpec((1, E), lambda i: (0, 0)),
            pl.BlockSpec((E, C), lambda i: (0, 0)),
            pl.BlockSpec((1, C), lambda i: (0, 0)),
        ],
        out_specs=pl.BlockSpec((TM, C), lambda i: (i, 0)),
        compiler_params=pltpu.CompilerParams(dimension_semantics=("parallel",)),
    )(x2, p["ln2_w"], p["ln2_b"], w1, p["b1"], w2, p["b2"])
    return out.reshape(B, N, C)


# ----------------------------- full forward -----------------------------

def single_swin_block(x, p, *, window_size, num_heads, resolution, shift_size=0,
                      matmul_dtype=jnp.float32):
    B, N, C = x.shape
    H, W = resolution
    assert N == H * W
    img = x.reshape(B, H, W, C)
    if shift_size:
        img = jnp.roll(img, (-shift_size, -shift_size), axis=(1, 2))

    # LayerNorm is per-token over C, so it commutes with window partition; the
    # attention kernel applies it on the partitioned tokens (and also consumes the
    # un-normalized tokens for the fused residual).
    partitions = _window_partition(img, window_size)               # (B*nw, n, C)

    n = window_size * window_size
    nw = (H // window_size) * (W // window_size)
    idx = _relative_bias_index(window_size).reshape(-1)
    rel_bias = p["rel_table"][idx].reshape(n, n, num_heads)        # [q, k, h]
    bias_hqk = jnp.transpose(rel_bias, (2, 0, 1))                  # [h, q, k]
    mask = _attention_mask(shift_size, window_size, resolution[1], resolution[0])
    if mask is not None:
        per_image = bias_hqk[None, :, :, :] + mask[:, None, :, :]  # (nw, h, q, k)
    else:
        per_image = jnp.broadcast_to(bias_hqk[None], (nw, num_heads, n, n))
    # fold the /sqrt(32) of the reference into the precomputed bias (+mask)
    per_image = per_image * jnp.float32(1.0 / math.sqrt(32.0))

    WB = _pick_window_block(B, nw, n)
    if nw % WB == 0:
        bias_arr = per_image                                       # read once per pattern
        bias_blocks = nw // WB
    else:                                                          # nw | WB
        bias_arr = jnp.tile(per_image, (WB // nw, 1, 1, 1))        # (WB, h, q, k), resident
        bias_blocks = 1

    attn = swin_attention(partitions, bias_arr, p, num_heads=num_heads,
                          window_block=WB, bias_blocks=bias_blocks,
                          matmul_dtype=matmul_dtype)               # includes x + attn residual
    rev = _window_reverse(attn, window_size, H, W)
    if shift_size:
        rev = jnp.roll(rev, (shift_size, shift_size), axis=(1, 2))
    msa_out = rev.reshape(B, N, C)                                 # == x + MSA(x)
    return mlp_block(msa_out, p, matmul_dtype=matmul_dtype)        # = 2*msa_out + MLP branch


def init_params(key, C, num_heads, window_size, expansion=4):
    ks = jax.random.split(key, 7)
    s = 0.02
    # (relative_position_bias_table is zeros in __init__; use small random values
    # deterministically so the bias path is actually exercised.)
    return {
        "ln1_w": jnp.ones((1, C), jnp.float32),
        "ln1_b": jnp.zeros((1, C), jnp.float32),
        "w_qkv": s * jax.random.normal(ks[0], (C, 3 * C), jnp.float32),
        "b_qkv": s * jax.random.normal(ks[1], (1, 3 * C), jnp.float32),
        "w_proj": s * jax.random.normal(ks[2], (C, C), jnp.float32),
        "b_proj": s * jax.random.normal(ks[3], (1, C), jnp.float32),
        "rel_table": s * jax.random.normal(
            ks[4], ((2 * window_size - 1) * (2 * window_size - 1), num_heads), jnp.float32),
        "ln2_w": jnp.ones((1, C), jnp.float32),
        "ln2_b": jnp.zeros((1, C), jnp.float32),
        "w1": s * jax.random.normal(ks[5], (C, expansion * C), jnp.float32),
        "b1": jnp.zeros((1, expansion * C), jnp.float32),
        "w2": s * jax.random.normal(ks[6], (expansion * C, C), jnp.float32),
        "b2": jnp.zeros((1, C), jnp.float32),
    }


if __name__ == "__main__":
    B, C = 2, 32
    num_heads, window_size = 4, 4
    resolution = (8, 8)
    N = resolution[0] * resolution[1]

    key = jax.random.PRNGKey(0)
    kx, kp = jax.random.split(key)
    x = jax.random.normal(kx, (B, N, C), jnp.float32)
    params = init_params(kp, C, num_heads, window_size)

    fwd = jax.jit(single_swin_block,
                  static_argnames=("window_size", "num_heads", "resolution", "shift_size"))

    out_noshift = fwd(x, params, window_size=window_size, num_heads=num_heads,
                      resolution=resolution, shift_size=0)
    out_shift = fwd(x, params, window_size=window_size, num_heads=num_heads,
                    resolution=resolution, shift_size=2)
    jax.block_until_ready((out_noshift, out_shift))

    assert out_noshift.shape == (B, N, C) and out_shift.shape == (B, N, C)
    assert bool(jnp.all(jnp.isfinite(out_noshift))) and bool(jnp.all(jnp.isfinite(out_shift)))
    print("KERNEL_OK")
</pallas_src>

<mosaic_0001>
module attributes {stable_mosaic.version = 11 : i64} {
  func.func @_mlp_kernel(%arg0: i32, %arg1: memref<64x32xf32, #tpu.memory_space<vmem>>, %arg2: memref<1x32xf32, #tpu.memory_space<vmem>>, %arg3: memref<1x32xf32, #tpu.memory_space<vmem>>, %arg4: memref<32x128xf32, #tpu.memory_space<vmem>>, %arg5: memref<1x128xf32, #tpu.memory_space<vmem>>, %arg6: memref<128x32xf32, #tpu.memory_space<vmem>>, %arg7: memref<1x32xf32, #tpu.memory_space<vmem>>, %arg8: memref<64x32xf32, #tpu.memory_space<vmem>>) attributes {dimension_semantics = [#tpu.dimension_semantics<parallel>], iteration_bounds = array<i64: 2>, scalar_prefetch = 0 : i64, scratch_operands = 0 : i64, tpu.core_type = #tpu.core_type<tc>, window_params = [{transform_indices = @transform_0, window_bounds = array<i64: 64, 32>}, {pipeline_mode = #tpu.pipeline_mode<synchronous>, transform_indices = @transform_1, window_bounds = array<i64: 1, 32>}, {pipeline_mode = #tpu.pipeline_mode<synchronous>, transform_indices = @transform_2, window_bounds = array<i64: 1, 32>}, {pipeline_mode = #tpu.pipeline_mode<synchronous>, transform_indices = @transform_3, window_bounds = array<i64: 32, 128>}, {pipeline_mode = #tpu.pipeline_mode<synchronous>, transform_indices = @transform_4, window_bounds = array<i64: 1, 128>}, {pipeline_mode = #tpu.pipeline_mode<synchronous>, transform_indices = @transform_5, window_bounds = array<i64: 128, 32>}, {pipeline_mode = #tpu.pipeline_mode<synchronous>, transform_indices = @transform_6, window_bounds = array<i64: 1, 32>}, {transform_indices = @transform_7, window_bounds = array<i64: 64, 32>}]} {
    %c0 = arith.constant 0 : index
    %c0_0 = arith.constant 0 : index
    %0 = vector.load %arg1[%c0, %c0_0] : memref<64x32xf32, #tpu.memory_space<vmem>>, vector<64x32xf32>
    %cst = arith.constant dense<0.000000e+00> : vector<64xf32>
    %1 = vector.multi_reduction <add>, %0, %cst [1] : vector<64x32xf32> to vector<64xf32>
    %2 = vector.shape_cast %1 : vector<64xf32> to vector<64x1xf32>
    %cst_1 = arith.constant 3.200000e+01 : f32
    %3 = vector.broadcast %cst_1 : f32 to vector<64x1xf32>
    %4 = arith.divf %2, %3 : vector<64x1xf32>
    %5 = vector.broadcast %4 : vector<64x1xf32> to vector<64x32xf32>
    %6 = arith.subf %0, %5 : vector<64x32xf32>
    %7 = arith.mulf %6, %6 : vector<64x32xf32>
    %cst_2 = arith.constant dense<0.000000e+00> : vector<64xf32>
    %8 = vector.multi_reduction <add>, %7, %cst_2 [1] : vector<64x32xf32> to vector<64xf32>
    %9 = vector.shape_cast %8 : vector<64xf32> to vector<64x1xf32>
    %cst_3 = arith.constant 3.200000e+01 : f32
    %10 = vector.broadcast %cst_3 : f32 to vector<64x1xf32>
    %11 = arith.divf %9, %10 : vector<64x1xf32>
    %12 = vector.broadcast %4 : vector<64x1xf32> to vector<64x32xf32>
    %13 = arith.subf %0, %12 : vector<64x32xf32>
    %cst_4 = arith.constant 9.99999974E-6 : f32
    %14 = vector.broadcast %cst_4 : f32 to vector<64x1xf32>
    %15 = arith.addf %11, %14 : vector<64x1xf32>
    %16 = math.rsqrt %15 : vector<64x1xf32>
    %17 = vector.broadcast %16 : vector<64x1xf32> to vector<64x32xf32>
    %18 = arith.mulf %13, %17 : vector<64x32xf32>
    %c0_5 = arith.constant 0 : index
    %c0_6 = arith.constant 0 : index
    %19 = vector.load %arg2[%c0_5, %c0_6] : memref<1x32xf32, #tpu.memory_space<vmem>>, vector<1x32xf32>
    %20 = vector.broadcast %19 : vector<1x32xf32> to vector<64x32xf32>
    %21 = arith.mulf %18, %20 : vector<64x32xf32>
    %c0_7 = arith.constant 0 : index
    %c0_8 = arith.constant 0 : index
    %22 = vector.load %arg3[%c0_7, %c0_8] : memref<1x32xf32, #tpu.memory_space<vmem>>, vector<1x32xf32>
    %23 = vector.broadcast %22 : vector<1x32xf32> to vector<64x32xf32>
    %24 = arith.addf %21, %23 : vector<64x32xf32>
    %c0_9 = arith.constant 0 : index
    %c0_10 = arith.constant 0 : index
    %25 = vector.load %arg4[%c0_9, %c0_10] : memref<32x128xf32, #tpu.memory_space<vmem>>, vector<32x128xf32>
    %cst_11 = arith.constant dense<0.000000e+00> : vector<64x128xf32>
    %26 = tpu.matmul %24, %25, %cst_11 {dimension_numbers = #tpu.dot_dimension_numbers<[1], [0], [0], [1], [0, 0, 1, 1], [], []>} : vector<64x32xf32>, vector<32x128xf32>, vector<64x128xf32> -> vector<64x128xf32>
    %c0_12 = arith.constant 0 : index
    %c0_13 = arith.constant 0 : index
    %27 = vector.load %arg5[%c0_12, %c0_13] : memref<1x128xf32, #tpu.memory_space<vmem>>, vector<1x128xf32>
    %28 = vector.broadcast %27 : vector<1x128xf32> to vector<64x128xf32>
    %29 = arith.addf %26, %28 : vector<64x128xf32>
    %cst_14 = arith.constant 5.000000e-01 : f32
    %30 = vector.broadcast %cst_14 : f32 to vector<64x128xf32>
    %31 = arith.mulf %30, %29 : vector<64x128xf32>
    %cst_15 = arith.constant 0.707106769 : f32
    %32 = vector.broadcast %cst_15 : f32 to vector<64x128xf32>
    %33 = arith.mulf %29, %32 : vector<64x128xf32>
    %34 = math.erf %33 : vector<64x128xf32>
    %cst_16 = arith.constant 1.000000e+00 : f32
    %35 = vector.broadcast %cst_16 : f32 to vector<64x128xf32>
    %36 = arith.addf %35, %34 : vector<64x128xf32>
    %37 = arith.mulf %31, %36 : vector<64x128xf32>
    %c0_17 = arith.constant 0 : index
    %c0_18 = arith.constant 0 : index
    %38 = vector.load %arg6[%c0_17, %c0_18] : memref<128x32xf32, #tpu.memory_space<vmem>>, vector<128x32xf32>
    %cst_19 = arith.constant dense<0.000000e+00> : vector<64x32xf32>
    %39 = tpu.matmul %37, %38, %cst_19 {dimension_numbers = #tpu.dot_dimension_numbers<[1], [0], [0], [1], [0, 0, 1, 1], [], []>} : vector<64x128xf32>, vector<128x32xf32>, vector<64x32xf32> -> vector<64x32xf32>
    %c0_20 = arith.constant 0 : index
    %c0_21 = arith.constant 0 : index
    %40 = vector.load %arg7[%c0_20, %c0_21] : memref<1x32xf32, #tpu.memory_space<vmem>>, vector<1x32xf32>
    %41 = vector.broadcast %40 : vector<1x32xf32> to vector<64x32xf32>
    %42 = arith.addf %39, %41 : vector<64x32xf32>
    %cst_22 = arith.constant 2.000000e+00 : f32
    %43 = vector.broadcast %cst_22 : f32 to vector<64x32xf32>
    %44 = arith.mulf %43, %0 : vector<64x32xf32>
    %45 = arith.addf %44, %42 : vector<64x32xf32>
    %c0_23 = arith.constant 0 : index
    %c0_24 = arith.constant 0 : index
    %46 = vector.load %arg8[%c0_23, %c0_24] : memref<64x32xf32, #tpu.memory_space<vmem>>, vector<64x32xf32>
    tpu.vector_store %arg8[%c0_23, %c0_24], %45 {strides = array<i32>} : memref<64x32xf32, #tpu.memory_space<vmem>>, vector<64x32xf32>,
    return
  }
  func.func @transform_0(%arg0: i32) -> (i32, i32) {
    %c0_i32 = arith.constant 0 : i32
    %c0_i32_0 = arith.constant 0 : i32
    return %arg0, %c0_i32 : i32, i32
  }
  func.func @transform_1(%arg0: i32) -> (i32, i32) {
    %c0_i32 = arith.constant 0 : i32
    %c0_i32_0 = arith.constant 0 : i32
    %c0_i32_1 = arith.constant 0 : i32
    return %c0_i32, %c0_i32_0 : i32, i32
  }
  func.func @transform_2(%arg0: i32) -> (i32, i32) {
    %c0_i32 = arith.constant 0 : i32
    %c0_i32_0 = arith.constant 0 : i32
    %c0_i32_1 = arith.constant 0 : i32
    return %c0_i32, %c0_i32_0 : i32, i32
  }
  func.func @transform_3(%arg0: i32) -> (i32, i32) {
    %c0_i32 = arith.constant 0 : i32
    %c0_i32_0 = arith.constant 0 : i32
    %c0_i32_1 = arith.constant 0 : i32
    return %c0_i32, %c0_i32_0 : i32, i32
  }
  func.func @transform_4(%arg0: i32) -> (i32, i32) {
    %c0_i32 = arith.constant 0 : i32
    %c0_i32_0 = arith.constant 0 : i32
    %c0_i32_1 = arith.constant 0 : i32
    return %c0_i32, %c0_i32_0 : i32, i32
  }
  func.func @transform_5(%arg0: i32) -> (i32, i32) {
    %c0_i32 = arith.constant 0 : i32
    %c0_i32_0 = arith.constant 0 : i32
    %c0_i32_1 = arith.constant 0 : i32
    return %c0_i32, %c0_i32_0 : i32, i32
  }
  func.func @transform_6(%arg0: i32) -> (i32, i32) {
    %c0_i32 = arith.constant 0 : i32
    %c0_i32_0 = arith.constant 0 : i32
    %c0_i32_1 = arith.constant 0 : i32
    return %c0_i32, %c0_i32_0 : i32, i32
  }
  func.func @transform_7(%arg0: i32) -> (i32, i32) {
    %c0_i32 = arith.constant 0 : i32
    %c0_i32_0 = arith.constant 0 : i32
    return %arg0, %c0_i32 : i32, i32
  }
}

module attributes {stable_mosaic.version = 11 : i64} {
  func.func @_attn_kernel(%arg0: i32, %arg1: memref<4x16x32xf32, #tpu.memory_space<vmem>>, %arg2: memref<4x4x16x16xf32, #tpu.memory_space<vmem>>, %arg3: memref<1x32xf32, #tpu.memory_space<vmem>>, %arg4: memref<1x32xf32, #tpu.memory_space<vmem>>, %arg5: memref<32x96xf32, #tpu.memory_space<vmem>>, %arg6: memref<1x96xf32, #tpu.memory_space<vmem>>, %arg7: memref<32x32xf32, #tpu.memory_space<vmem>>, %arg8: memref<1x32xf32, #tpu.memory_space<vmem>>, %arg9: memref<4x16x32xf32, #tpu.memory_space<vmem>>) attributes {dimension_semantics = [#tpu.dimension_semantics<parallel>], iteration_bounds = array<i64: 2>, scalar_prefetch = 0 : i64, scratch_operands = 0 : i64, tpu.core_type = #tpu.core_type<tc>, window_params = [{transform_indices = @transform_0, window_bounds = array<i64: 4, 16, 32>}, {pipeline_mode = #tpu.pipeline_mode<synchronous>, transform_indices = @transform_1, window_bounds = array<i64: 4, 4, 16, 16>}, {pipeline_mode = #tpu.pipeline_mode<synchronous>, transform_indices = @transform_2, window_bounds = array<i64: 1, 32>}, {pipeline_mode = #tpu.pipeline_mode<synchronous>, transform_indices = @transform_3, window_bounds = array<i64: 1, 32>}, {pipeline_mode = #tpu.pipeline_mode<synchronous>, transform_indices = @transform_4, window_bounds = array<i64: 32, 96>}, {pipeline_mode = #tpu.pipeline_mode<synchronous>, transform_indices = @transform_5, window_bounds = array<i64: 1, 96>}, {pipeline_mode = #tpu.pipeline_mode<synchronous>, transform_indices = @transform_6, window_bounds = array<i64: 32, 32>}, {pipeline_mode = #tpu.pipeline_mode<synchronous>, transform_indices = @transform_7, window_bounds = array<i64: 1, 32>}, {transform_indices = @transform_8, window_bounds = array<i64: 4, 16, 32>}]} {
    %c0 = arith.constant 0 : index
    %c0_0 = arith.constant 0 : index
    %c0_1 = arith.constant 0 : index
    %0 = vector.load %arg1[%c0, %c0_0, %c0_1] : memref<4x16x32xf32, #tpu.memory_space<vmem>>, vector<4x16x32xf32>
    %1 = vector.shape_cast %0 : vector<4x16x32xf32> to vector<64x32xf32>
    %cst = arith.constant dense<0.000000e+00> : vector<64xf32>
    %2 = vector.multi_reduction <add>, %1, %cst [1] : vector<64x32xf32> to vector<64xf32>
    %3 = vector.shape_cast %2 : vector<64xf32> to vector<64x1xf32>
    %cst_2 = arith.constant 3.200000e+01 : f32
    %4 = vector.broadcast %cst_2 : f32 to vector<64x1xf32>
    %5 = arith.divf %3, %4 : vector<64x1xf32>
    %6 = vector.broadcast %5 : vector<64x1xf32> to vector<64x32xf32>
    %7 = arith.subf %1, %6 : vector<64x32xf32>
    %8 = arith.mulf %7, %7 : vector<64x32xf32>
    %cst_3 = arith.constant dense<0.000000e+00> : vector<64xf32>
    %9 = vector.multi_reduction <add>, %8, %cst_3 [1] : vector<64x32xf32> to vector<64xf32>
    %10 = vector.shape_cast %9 : vector<64xf32> to vector<64x1xf32>
    %cst_4 = arith.constant 3.200000e+01 : f32
    %11 = vector.broadcast %cst_4 : f32 to vector<64x1xf32>
    %12 = arith.divf %10, %11 : vector<64x1xf32>
    %13 = vector.broadcast %5 : vector<64x1xf32> to vector<64x32xf32>
    %14 = arith.subf %1, %13 : vector<64x32xf32>
    %cst_5 = arith.constant 9.99999974E-6 : f32
    %15 = vector.broadcast %cst_5 : f32 to vector<64x1xf32>
    %16 = arith.addf %12, %15 : vector<64x1xf32>
    %17 = math.rsqrt %16 : vector<64x1xf32>
    %18 = vector.broadcast %17 : vector<64x1xf32> to vector<64x32xf32>
    %19 = arith.mulf %14, %18 : vector<64x32xf32>
    %c0_6 = arith.constant 0 : index
    %c0_7 = arith.constant 0 : index
    %20 = vector.load %arg3[%c0_6, %c0_7] : memref<1x32xf32, #tpu.memory_space<vmem>>, vector<1x32xf32>
    %21 = vector.broadcast %20 : vector<1x32xf32> to vector<64x32xf32>
    %22 = arith.mulf %19, %21 : vector<64x32xf32>
    %c0_8 = arith.constant 0 : index
    %c0_9 = arith.constant 0 : index
    %23 = vector.load %arg4[%c0_8, %c0_9] : memref<1x32xf32, #tpu.memory_space<vmem>>, vector<1x32xf32>
    %24 = vector.broadcast %23 : vector<1x32xf32> to vector<64x32xf32>
    %25 = arith.addf %22, %24 : vector<64x32xf32>
    %c0_10 = arith.constant 0 : index
    %c0_11 = arith.constant 0 : index
    %26 = vector.load %arg5[%c0_10, %c0_11] : memref<32x96xf32, #tpu.memory_space<vmem>>, vector<32x96xf32>
    %cst_12 = arith.constant dense<0.000000e+00> : vector<64x96xf32>
    %27 = tpu.matmul %25, %26, %cst_12 {dimension_numbers = #tpu.dot_dimension_numbers<[1], [0], [0], [1], [0, 0, 1, 1], [], []>} : vector<64x32xf32>, vector<32x96xf32>, vector<64x96xf32> -> vector<64x96xf32>
    %c0_13 = arith.constant 0 : index
    %c0_14 = arith.constant 0 : index
    %28 = vector.load %arg6[%c0_13, %c0_14] : memref<1x96xf32, #tpu.memory_space<vmem>>, vector<1x96xf32>
    %29 = vector.broadcast %28 : vector<1x96xf32> to vector<64x96xf32>
    %30 = arith.addf %27, %29 : vector<64x96xf32>
    %31 = vector.shape_cast %30 : vector<64x96xf32> to vector<4x16x96xf32>
    %c0_15 = arith.constant 0 : index
    %c0_16 = arith.constant 0 : index
    %c0_17 = arith.constant 0 : index
    %c0_18 = arith.constant 0 : index
    %32 = vector.load %arg2[%c0_15, %c0_16, %c0_17, %c0_18] : memref<4x4x16x16xf32, #tpu.memory_space<vmem>>, vector<4x4x16x16xf32>
    %33 = vector.extract_strided_slice %31 {offsets = [0, 0, 0], sizes = [4, 16, 8], strides = [1, 1, 1]} : vector<4x16x96xf32> to vector<4x16x8xf32>
    %34 = vector.extract_strided_slice %31 {offsets = [0, 0, 32], sizes = [4, 16, 8], strides = [1, 1, 1]} : vector<4x16x96xf32> to vector<4x16x8xf32>
    %35 = vector.extract_strided_slice %31 {offsets = [0, 0, 64], sizes = [4, 16, 8], strides = [1, 1, 1]} : vector<4x16x96xf32> to vector<4x16x8xf32>
    "tpu.trace_start"() <{level = 10 : i32, message = "bqd,bkd->bqk"}> : () -> ()
    %cst_19 = arith.constant dense<0.000000e+00> : vector<4x16x16xf32>
    %36 = tpu.matmul %33, %34, %cst_19 {dimension_numbers = #tpu.dot_dimension_numbers<[2], [2], [1], [1], [0, 0, 0, 1, 1, 1], [0], [0]>} : vector<4x16x8xf32>, vector<4x16x8xf32>, vector<4x16x16xf32> -> vector<4x16x16xf32>
    "tpu.trace_stop"() : () -> ()
    %cst_20 = arith.constant 6.250000e-02 : f32
    %37 = vector.broadcast %cst_20 : f32 to vector<4x16x16xf32>
    %38 = arith.mulf %36, %37 : vector<4x16x16xf32>
    %39 = vector.extract_strided_slice %32 {offsets = [0, 0, 0, 0], sizes = [4, 1, 16, 16], strides = [1, 1, 1, 1]} : vector<4x4x16x16xf32> to vector<4x1x16x16xf32>
    %40 = vector.shape_cast %39 : vector<4x1x16x16xf32> to vector<4x16x16xf32>
    %41 = arith.addf %38, %40 : vector<4x16x16xf32>
    %cst_21 = arith.constant dense<0xFF800000> : vector<4x16xf32>
    %42 = vector.multi_reduction <maximumf>, %41, %cst_21 [2] : vector<4x16x16xf32> to vector<4x16xf32>
    %43 = vector.shape_cast %42 : vector<4x16xf32> to vector<4x16x1xf32>
    %44 = vector.broadcast %43 : vector<4x16x1xf32> to vector<4x16x16xf32>
    %45 = arith.subf %41, %44 : vector<4x16x16xf32>
    %46 = math.exp %45 : vector<4x16x16xf32>
    %cst_22 = arith.constant dense<0.000000e+00> : vector<4x16xf32>
    %47 = vector.multi_reduction <add>, %46, %cst_22 [2] : vector<4x16x16xf32> to vector<4x16xf32>
    %48 = vector.shape_cast %47 : vector<4x16xf32> to vector<4x16x1xf32>
    %49 = tpu.reciprocal %48 : vector<4x16x1xf32> -> vector<4x16x1xf32>
    %50 = vector.broadcast %49 : vector<4x16x1xf32> to vector<4x16x16xf32>
    %51 = arith.mulf %46, %50 : vector<4x16x16xf32>
    "tpu.trace_start"() <{level = 10 : i32, message = "bqk,bkd->bqd"}> : () -> ()
    %cst_23 = arith.constant dense<0.000000e+00> : vector<4x16x8xf32>
    %52 = tpu.matmul %51, %35, %cst_23 {dimension_numbers = #tpu.dot_dimension_numbers<[2], [1], [1], [2], [0, 0, 0, 1, 1, 2], [0], [0]>} : vector<4x16x16xf32>, vector<4x16x8xf32>, vector<4x16x8xf32> -> vector<4x16x8xf32>
    "tpu.trace_stop"() : () -> ()
    %53 = vector.extract_strided_slice %31 {offsets = [0, 0, 8], sizes = [4, 16, 8], strides = [1, 1, 1]} : vector<4x16x96xf32> to vector<4x16x8xf32>
    %54 = vector.extract_strided_slice %31 {offsets = [0, 0, 40], sizes = [4, 16, 8], strides = [1, 1, 1]} : vector<4x16x96xf32> to vector<4x16x8xf32>
    %55 = vector.extract_strided_slice %31 {offsets = [0, 0, 72], sizes = [4, 16, 8], strides = [1, 1, 1]} : vector<4x16x96xf32> to vector<4x16x8xf32>
    "tpu.trace_start"() <{level = 10 : i32, message = "bqd,bkd->bqk"}> : () -> ()
    %cst_24 = arith.constant dense<0.000000e+00> : vector<4x16x16xf32>
    %56 = tpu.matmul %53, %54, %cst_24 {dimension_numbers = #tpu.dot_dimension_numbers<[2], [2], [1], [1], [0, 0, 0, 1, 1, 1], [0], [0]>} : vector<4x16x8xf32>, vector<4x16x8xf32>, vector<4x16x16xf32> -> vector<4x16x16xf32>
    "tpu.trace_stop"() : () -> ()
    %cst_25 = arith.constant 6.250000e-02 : f32
    %57 = vector.broadcast %cst_25 : f32 to vector<4x16x16xf32>
    %58 = arith.mulf %56, %57 : vector<4x16x16xf32>
    %59 = vector.extract_strided_slice %32 {offsets = [0, 1, 0, 0], sizes = [4, 1, 16, 16], strides = [1, 1, 1, 1]} : vector<4x4x16x16xf32> to vector<4x1x16x16xf32>
    %60 = vector.shape_cast %59 : vector<4x1x16x16xf32> to vector<4x16x16xf32>
    %61 = arith.addf %58, %60 : vector<4x16x16xf32>
    %cst_26 = arith.constant dense<0xFF800000> : vector<4x16xf32>
    %62 = vector.multi_reduction <maximumf>, %61, %cst_26 [2] : vector<4x16x16xf32> to vector<4x16xf32>
    %63 = vector.shape_cast %62 : vector<4x16xf32> to vector<4x16x1xf32>
    %64 = vector.broadcast %63 : vector<4x16x1xf32> to vector<4x16x16xf32>
    %65 = arith.subf %61, %64 : vector<4x16x16xf32>
    %66 = math.exp %65 : vector<4x16x16xf32>
    %cst_27 = arith.constant dense<0.000000e+00> : vector<4x16xf32>
    %67 = vector.multi_reduction <add>, %66, %cst_27 [2] : vector<4x16x16xf32> to vector<4x16xf32>
    %68 = vector.shape_cast %67 : vector<4x16xf32> to vector<4x16x1xf32>
    %69 = tpu.reciprocal %68 : vector<4x16x1xf32> -> vector<4x16x1xf32>
    %70 = vector.broadcast %69 : vector<4x16x1xf32> to vector<4x16x16xf32>
    %71 = arith.mulf %66, %70 : vector<4x16x16xf32>
    "tpu.trace_start"() <{level = 10 : i32, message = "bqk,bkd->bqd"}> : () -> ()
    %cst_28 = arith.constant dense<0.000000e+00> : vector<4x16x8xf32>
    %72 = tpu.matmul %71, %55, %cst_28 {dimension_numbers = #tpu.dot_dimension_numbers<[2], [1], [1], [2], [0, 0, 0, 1, 1, 2], [0], [0]>} : vector<4x16x16xf32>, vector<4x16x8xf32>, vector<4x16x8xf32> -> vector<4x16x8xf32>
    "tpu.trace_stop"() : () -> ()
    %73 = vector.extract_strided_slice %31 {offsets = [0, 0, 16], sizes = [4, 16, 8], strides = [1, 1, 1]} : vector<4x16x96xf32> to vector<4x16x8xf32>
    %74 = vector.extract_strided_slice %31 {offsets = [0, 0, 48], sizes = [4, 16, 8], strides = [1, 1, 1]} : vector<4x16x96xf32> to vector<4x16x8xf32>
    %75 = vector.extract_strided_slice %31 {offsets = [0, 0, 80], sizes = [4, 16, 8], strides = [1, 1, 1]} : vector<4x16x96xf32> to vector<4x16x8xf32>
    "tpu.trace_start"() <{level = 10 : i32, message = "bqd,bkd->bqk"}> : () -> ()
    %cst_29 = arith.constant dense<0.000000e+00> : vector<4x16x16xf32>
    %76 = tpu.matmul %73, %74, %cst_29 {dimension_numbers = #tpu.dot_dimension_numbers<[2], [2], [1], [1], [0, 0, 0, 1, 1, 1], [0], [0]>} : vector<4x16x8xf32>, vector<4x16x8xf32>, vector<4x16x16xf32> -> vector<4x16x16xf32>
    "tpu.trace_stop"() : () -> ()
    %cst_30 = arith.constant 6.250000e-02 : f32
    %77 = vector.broadcast %cst_30 : f32 to vector<4x16x16xf32>
    %78 = arith.mulf %76, %77 : vector<4x16x16xf32>
    %79 = vector.extract_strided_slice %32 {offsets = [0, 2, 0, 0], sizes = [4, 1, 16, 16], strides = [1, 1, 1, 1]} : vector<4x4x16x16xf32> to vector<4x1x16x16xf32>
    %80 = vector.shape_cast %79 : vector<4x1x16x16xf32> to vector<4x16x16xf32>
    %81 = arith.addf %78, %80 : vector<4x16x16xf32>
    %cst_31 = arith.constant dense<0xFF800000> : vector<4x16xf32>
    %82 = vector.multi_reduction <maximumf>, %81, %cst_31 [2] : vector<4x16x16xf32> to vector<4x16xf32>
    %83 = vector.shape_cast %82 : vector<4x16xf32> to vector<4x16x1xf32>
    %84 = vector.broadcast %83 : vector<4x16x1xf32> to vector<4x16x16xf32>
    %85 = arith.subf %81, %84 : vector<4x16x16xf32>
    %86 = math.exp %85 : vector<4x16x16xf32>
    %cst_32 = arith.constant dense<0.000000e+00> : vector<4x16xf32>
    %87 = vector.multi_reduction <add>, %86, %cst_32 [2] : vector<4x16x16xf32> to vector<4x16xf32>
    %88 = vector.shape_cast %87 : vector<4x16xf32> to vector<4x16x1xf32>
    %89 = tpu.reciprocal %88 : vector<4x16x1xf32> -> vector<4x16x1xf32>
    %90 = vector.broadcast %89 : vector<4x16x1xf32> to vector<4x16x16xf32>
    %91 = arith.mulf %86, %90 : vector<4x16x16xf32>
    "tpu.trace_start"() <{level = 10 : i32, message = "bqk,bkd->bqd"}> : () -> ()
    %cst_33 = arith.constant dense<0.000000e+00> : vector<4x16x8xf32>
    %92 = tpu.matmul %91, %75, %cst_33 {dimension_numbers = #tpu.dot_dimension_numbers<[2], [1], [1], [2], [0, 0, 0, 1, 1, 2], [0], [0]>} : vector<4x16x16xf32>, vector<4x16x8xf32>, vector<4x16x8xf32> -> vector<4x16x8xf32>
    "tpu.trace_stop"() : () -> ()
    %93 = vector.extract_strided_slice %31 {offsets = [0, 0, 24], sizes = [4, 16, 8], strides = [1, 1, 1]} : vector<4x16x96xf32> to vector<4x16x8xf32>
    %94 = vector.extract_strided_slice %31 {offsets = [0, 0, 56], sizes = [4, 16, 8], strides = [1, 1, 1]} : vector<4x16x96xf32> to vector<4x16x8xf32>
    %95 = vector.extract_strided_slice %31 {offsets = [0, 0, 88], sizes = [4, 16, 8], strides = [1, 1, 1]} : vector<4x16x96xf32> to vector<4x16x8xf32>
    "tpu.trace_start"() <{level = 10 : i32, message = "bqd,bkd->bqk"}> : () -> ()
    %cst_34 = arith.constant dense<0.000000e+00> : vector<4x16x16xf32>
    %96 = tpu.matmul %93, %94, %cst_34 {dimension_numbers = #tpu.dot_dimension_numbers<[2], [2], [1], [1], [0, 0, 0, 1, 1, 1], [0], [0]>} : vector<4x16x8xf32>, vector<4x16x8xf32>, vector<4x16x16xf32> -> vector<4x16x16xf32>
    "tpu.trace_stop"() : () -> ()
    %cst_35 = arith.constant 6.250000e-02 : f32
    %97 = vector.broadcast %cst_35 : f32 to vector<4x16x16xf32>
    %98 = arith.mulf %96, %97 : vector<4x16x16xf32>
    %99 = vector.extract_strided_slice %32 {offsets = [0, 3, 0, 0], sizes = [4, 1, 16, 16], strides = [1, 1, 1, 1]} : vector<4x4x16x16xf32> to vector<4x1x16x16xf32>
    %100 = vector.shape_cast %99 : vector<4x1x16x16xf32> to vector<4x16x16xf32>
    %101 = arith.addf %98, %100 : vector<4x16x16xf32>
    %cst_36 = arith.constant dense<0xFF800000> : vector<4x16xf32>
    %102 = vector.multi_reduction <maximumf>, %101, %cst_36 [2] : vector<4x16x16xf32> to vector<4x16xf32>
    %103 = vector.shape_cast %102 : vector<4x16xf32> to vector<4x16x1xf32>
    %104 = vector.broadcast %103 : vector<4x16x1xf32> to vector<4x16x16xf32>
    %105 = arith.subf %101, %104 : vector<4x16x16xf32>
    %106 = math.exp %105 : vector<4x16x16xf32>
    %cst_37 = arith.constant dense<0.000000e+00> : vector<4x16xf32>
    %107 = vector.multi_reduction <add>, %106, %cst_37 [2] : vector<4x16x16xf32> to vector<4x16xf32>
    %108 = vector.shape_cast %107 : vector<4x16xf32> to vector<4x16x1xf32>
    %109 = tpu.reciprocal %108 : vector<4x16x1xf32> -> vector<4x16x1xf32>
    %110 = vector.broadcast %109 : vector<4x16x1xf32> to vector<4x16x16xf32>
    %111 = arith.mulf %106, %110 : vector<4x16x16xf32>
    "tpu.trace_start"() <{level = 10 : i32, message = "bqk,bkd->bqd"}> : () -> ()
    %cst_38 = arith.constant dense<0.000000e+00> : vector<4x16x8xf32>
    %112 = tpu.matmul %111, %95, %cst_38 {dimension_numbers = #tpu.dot_dimension_numbers<[2], [1], [1], [2], [0, 0, 0, 1, 1, 2], [0], [0]>} : vector<4x16x16xf32>, vector<4x16x8xf32>, vector<4x16x8xf32> -> vector<4x16x8xf32>
    "tpu.trace_stop"() : () -> ()
    %113 = tpu.concatenate %52, %72, %92, %112 in 2 : vector<4x16x8xf32>, vector<4x16x8xf32>, vector<4x16x8xf32>, vector<4x16x8xf32> -> vector<4x16x32xf32>
    %114 = vector.shape_cast %113 : vector<4x16x32xf32> to vector<64x32xf32>
    %c0_39 = arith.constant 0 : index
    %c0_40 = arith.constant 0 : index
    %115 = vector.load %arg7[%c0_39, %c0_40] : memref<32x32xf32, #tpu.memory_space<vmem>>, vector<32x32xf32>
    %cst_41 = arith.constant dense<0.000000e+00> : vector<64x32xf32>
    %116 = tpu.matmul %114, %115, %cst_41 {dimension_numbers = #tpu.dot_dimension_numbers<[1], [0], [0], [1], [0, 0, 1, 1], [], []>} : vector<64x32xf32>, vector<32x32xf32>, vector<64x32xf32> -> vector<64x32xf32>
    %c0_42 = arith.constant 0 : index
    %c0_43 = arith.constant 0 : index
    %117 = vector.load %arg8[%c0_42, %c0_43] : memref<1x32xf32, #tpu.memory_space<vmem>>, vector<1x32xf32>
    %118 = vector.broadcast %117 : vector<1x32xf32> to vector<64x32xf32>
    %119 = arith.addf %116, %118 : vector<64x32xf32>
    %120 = arith.addf %1, %119 : vector<64x32xf32>
    %121 = vector.shape_cast %120 : vector<64x32xf32> to vector<4x16x32xf32>
    %c0_44 = arith.constant 0 : index
    %c0_45 = arith.constant 0 : index
    %c0_46 = arith.constant 0 : index
    %122 = vector.load %arg9[%c0_44, %c0_45, %c0_46] : memref<4x16x32xf32, #tpu.memory_space<vmem>>, vector<4x16x32xf32>
    tpu.vector_store %arg9[%c0_44, %c0_45, %c0_46], %121 {strides = array<i32>} : memref<4x16x32xf32, #tpu.memory_space<vmem>>, vector<4x16x32xf32>,
    return
  }
  func.func @transform_0(%arg0: i32) -> (i32, i32, i32) {
    %c0_i32 = arith.constant 0 : i32
    %c0_i32_0 = arith.constant 0 : i32
    %c0_i32_1 = arith.constant 0 : i32
    return %arg0, %c0_i32, %c0_i32_0 : i32, i32, i32
  }
  func.func @transform_1(%arg0: i32) -> (i32, i32, i32, i32) {
    %c0_i32 = arith.constant 0 : i32
    %c0_i32_0 = arith.constant 0 : i32
    %c0_i32_1 = arith.constant 0 : i32
    %c0_i32_2 = arith.constant 0 : i32
    %c0_i32_3 = arith.constant 0 : i32
    return %c0_i32, %c0_i32_0, %c0_i32_1, %c0_i32_2 : i32, i32, i32, i32
  }
  func.func @transform_2(%arg0: i32) -> (i32, i32) {
    %c0_i32 = arith.constant 0 : i32
    %c0_i32_0 = arith.constant 0 : i32
    %c0_i32_1 = arith.constant 0 : i32
    return %c0_i32, %c0_i32_0 : i32, i32
  }
  func.func @transform_3(%arg0: i32) -> (i32, i32) {
    %c0_i32 = arith.constant 0 : i32
    %c0_i32_0 = arith.constant 0 : i32
    %c0_i32_1 = arith.constant 0 : i32
    return %c0_i32, %c0_i32_0 : i32, i32
  }
  func.func @transform_4(%arg0: i32) -> (i32, i32) {
    %c0_i32 = arith.constant 0 : i32
    %c0_i32_0 = arith.constant 0 : i32
    %c0_i32_1 = arith.constant 0 : i32
    return %c0_i32, %c0_i32_0 : i32, i32
  }
  func.func @transform_5(%arg0: i32) -> (i32, i32) {
    %c0_i32 = arith.constant 0 : i32
    %c0_i32_0 = arith.constant 0 : i32
    %c0_i32_1 = arith.constant 0 : i32
    return %c0_i32, %c0_i32_0 : i32, i32
  }
  func.func @transform_6(%arg0: i32) -> (i32, i32) {
    %c0_i32 = arith.constant 0 : i32
    %c0_i32_0 = arith.constant 0 : i32
    %c0_i32_1 = arith.constant 0 : i32
    return %c0_i32, %c0_i32_0 : i32, i32
  }
  func.func @transform_7(%arg0: i32) -> (i32, i32) {
    %c0_i32 = arith.constant 0 : i32
    %c0_i32_0 = arith.constant 0 : i32
    %c0_i32_1 = arith.constant 0 : i32
    return %c0_i32, %c0_i32_0 : i32, i32
  }
  func.func @transform_8(%arg0: i32) -> (i32, i32, i32) {
    %c0_i32 = arith.constant 0 : i32
    %c0_i32_0 = arith.constant 0 : i32
    %c0_i32_1 = arith.constant 0 : i32
    return %arg0, %c0_i32, %c0_i32_0 : i32, i32, i32
  }
}

</mosaic_0001>

<bundles_post_ra>
// kernel: single_swin_block.3
= control target key start
LH: loop header
LB: loop body
LE: loop exit
PB: predicated region body
PF: predicated region fallthrough
CT: control target
= control target key end

     0   :  { %s1231_s24 = smov 0   ;;  %s1838_s0 = inlined_call_operand.vmem [shape: f32[128,32], index: 0, kind: input, shape index: {}]   ;;  %s1839_s1 = inlined_call_operand.vmem [shape: f32[1,32], index: 1, kind: input, shape index: {}]   ;;  %s1840_s2 = inlined_call_operand.vmem [shape: f32[1,32], index: 2, kind: input, shape index: {}]   ;;  %s1841_s3 = inlined_call_operand.vmem [shape: f32[32,128], index: 3, kind: input, shape index: {}]   ;;  %s1842_s4 = inlined_call_operand.vmem [shape: f32[1,128], index: 4, kind: input, shape index: {}]   ;;  %s1843_s5 = inlined_call_operand.vmem [shape: f32[128,32], index: 5, kind: input, shape index: {}]   ;;  %s1844_s6 = inlined_call_operand.vmem [shape: f32[1,32], index: 6, kind: input, shape index: {}]   ;;  %s1845_s7 = inlined_call_operand.vmem [shape: f32[128,32], index: 7, kind: output, shape index: {}]  }
   0x1 LB: > { %s1064_s25 = sadd.s32 4294967295, %s1188_s24   ;;  %p1068_p0 = scmp.ge.s32.totalorder %s1188_s24, 1  ;;  %s1188_s24 = sphi %s1231_s24, %s17_s24  }
   0x2   : > { %p238_p1 = scmp.lt.s32.totalorder %s1188_s24, 3 }
   0x4   : > { %p239_p2 = pnand %p1068_p0, %p238_p1 }
   0x5   : > { %s1069_s26 = sshll.u32 (!%p239_p2), %s1064_s25, 3 }
   0x6   : > { %242 = sbr.rel (%p239_p2) target bundleno = 663 (0x297), region = 48  ;;  %p271_p3 = scmp.lt.s32.totalorder (!%p239_p2), %s1069_s26, 15 }
   0xb   : > { %s1861_s26 = smov (!%p271_p3, %s1069_s26), 15  ;;  %vm290_vm0 = vcmask 261120   ;;  %v1190_v16 = vmov 32.0   ;;  %v501_v63 = vld [vmem:[%s1841_s3 + $0x18] sm:$0xff] }
   0xc   : > { %s1070_s27 = sshll.u32 %s1861_s26, 3  ;;  %1140 = vrcp.f32 %v1190_v16  ;;  %542 = vmatpush.msra.mxu0 %v501_v63  ;;  %1091 = vmatpush.msra.mxu3 %v501_v63 }
   0xd   : > { %s1247_s30 = scalar_lea.vmem %s1838_s0, %s1070_s27  ;;  %s1810_s20 = scalar_lea.vmem %s1845_s7, %s1070_s27 }
   0xe   : > { %v288_v0 = vld [vmem:[%s1247_s30 + $0x30] sm:$0xff]  ;;  %v282_v2 = vld [vmem:[%s1247_s30] sm:$0xff]  ;;  %v285_v7 = vld [vmem:[%s1247_s30 + $0x18] sm:$0xff] }
   0xf   : > { %v284_v1 = vld [vmem:[%s1247_s30 + $0x10] sm:$0xff]  ;;  %v309_v3 = vsel %vm290_vm0, %v288_v0, 0.0  ;;  %v291_v5 = vsel %vm290_vm0, %v282_v2, 0.0  ;;  %v286_v6 = vld [vmem:[%s1247_s30 + $0x20] sm:$0xff]  ;;  %v283_v8 = vld [vmem:[%s1247_s30 + $0x8] sm:$0xff]  ;;  %v300_v10 = vsel %vm290_vm0, %v285_v7, 0.0 }
  0x10   : > { %v297_v4 = vsel %vm290_vm0, %v284_v1, 0.0  ;;  %310 = vadd.xlane.f32.xlu2 %v309_v3  ;;  %292 = vadd.xlane.f32.xlu0 %v291_v5  ;;  %v303_v9 = vsel %vm290_vm0, %v286_v6, 0.0  ;;  %v294_v11 = vsel %vm290_vm0, %v283_v8, 0.0  ;;  %v287_v12 = vld [vmem:[%s1247_s30 + $0x28] sm:$0xff]  ;;  %v289_v13 = vld [vmem:[%s1247_s30 + $0x38] sm:$0xff] }
  0x11   : > { %298 = vadd.xlane.f32.xlu1 %v297_v4  ;;  %v306_v14 = vsel %vm290_vm0, %v287_v12, 0.0  ;;  %v312_v15 = vsel %vm290_vm0, %v289_v13, 0.0 }
  0x12   : > { %v1141_v17 = vpop.eup %1140 }
  0x13   : > { %v316_v18 = vmul.f32 32.0, %v1141_v17  ;;  %vm320_vm1 = vweird.f32 %v1141_v17 }
  0x15   : > { %v317_v19 = vsub.f32 1.0, %v316_v18 }
  0x17   : > { %v318_v20 = vmul.f32 %v1141_v17, %v317_v19 }
  0x18   : > { %304 = vadd.xlane.f32.xlu2 %v303_v9  ;;  %295 = vadd.xlane.f32.xlu0 %v294_v11 }
  0x19   : > { %301 = vadd.xlane.f32.xlu1 %v300_v10  ;;  %v319_v21 = vadd.f32 %v1141_v17, %v318_v20 }
  0x1b   : > { %v1265_v22 = vsel %vm320_vm1, %v1141_v17, %v319_v21 }
  0x20   : > { %313 = vadd.xlane.f32.xlu0 %v312_v15 }
  0x21   : > { %307 = vadd.xlane.f32.xlu1 %v306_v14 }
  0x83   : > { %v311_v23 = vpop.xlane.xlu2 %310  ;;  %v293_v26 = vpop.xlane.xlu0 %292 }
  0x84   : > { %v299_v24 = vpop.xlane.xlu1 %298  ;;  %v322_v27 = vmul.f32 %v1265_v22, %v293_v26  ;;  %v328_v39 = vmul.f32 %v1265_v22, %v311_v23 }
  0x85   : > { %v324_v25 = vmul.f32 %v1265_v22, %v299_v24 }
  0x86   : > { %v1271_v29 = vsub.f32 %v282_v2, %v322_v27  ;;  %v1293_v46 = vsub.f32 %v288_v0, %v328_v39  ;;  %v500_v0 = vld [vmem:[%s1841_s3 + $0x10] sm:$0xff]  ;;  %v498_v2 = vld [vmem:[%s1841_s3] sm:$0xff] }
  0x87   : > { %v1269_v28 = vsub.f32 %v284_v1, %v324_v25  ;;  %543 = vmatpush.msra.mxu0 %v500_v0  ;;  %1092 = vmatpush.msra.mxu3 %v500_v0  ;;  %v499_v1 = vld [vmem:[%s1841_s3 + $0x8] sm:$0xff] }
  0x88   : > { %v338_v31 = vmul.f32 %v1271_v29, %v1271_v29  ;;  %v344_v55 = vmul.f32 %v1293_v46, %v1293_v46 }
  0x89   : > { %v340_v30 = vmul.f32 %v1269_v28, %v1269_v28  ;;  %544 = vmatpush.msra.mxu0 %v499_v1  ;;  %1093 = vmatpush.msra.mxu3 %v499_v1 }
  0x8a   : > { %v346_v35 = vsel %vm290_vm0, %v338_v31, 0.0  ;;  %v364_v58 = vsel %vm290_vm0, %v344_v55, 0.0 }
  0x8b   : > { %v352_v32 = vsel %vm290_vm0, %v340_v30, 0.0  ;;  %v305_v33 = vpop.xlane.xlu2 %304  ;;  %347 = vadd.xlane.f32.xlu2 %v346_v35  ;;  %v296_v38 = vpop.xlane.xlu0 %295  ;;  %545 = vmatpush.msra.mxu0 %v498_v2 }
  0x8c   : > { %353 = vadd.xlane.f32.xlu1 %v352_v32  ;;  %v302_v34 = vpop.xlane.xlu1 %301  ;;  %v326_v36 = vmul.f32 %v1265_v22, %v305_v33  ;;  %v323_v40 = vmul.f32 %v1265_v22, %v296_v38  ;;  %1094 = vmatpush.msra.mxu3 %v498_v2 }
  0x8d   : > { %v325_v37 = vmul.f32 %v1265_v22, %v302_v34 }
  0x8e   : > { %v1283_v41 = vsub.f32 %v286_v6, %v326_v36  ;;  %v1287_v43 = vsub.f32 %v283_v8, %v323_v40 }
  0x8f   : > { %v1285_v42 = vsub.f32 %v285_v7, %v325_v37 }
  0x90   : > { %v342_v44 = vmul.f32 %v1283_v41, %v1283_v41  ;;  %v339_v47 = vmul.f32 %v1287_v43, %v1287_v43 }
  0x91   : > { %v341_v45 = vmul.f32 %v1285_v42, %v1285_v42 }
  0x92   : > { %v358_v48 = vsel %vm290_vm0, %v342_v44, 0.0  ;;  %v349_v50 = vsel %vm290_vm0, %v339_v47, 0.0 }
  0x93   : > { %v355_v49 = vsel %vm290_vm0, %v341_v45, 0.0  ;;  %350 = vadd.xlane.f32.xlu0 %v349_v50  ;;  %v314_v52 = vpop.xlane.xlu0 %313  ;;  %v1360_v45 = vld [vmem:[%s1839_s1] ss:$0 sm:$0xff] }
  0x94   : > { %359 = vadd.xlane.f32.xlu1 %v358_v48  ;;  %v308_v51 = vpop.xlane.xlu1 %307  ;;  %356 = vadd.xlane.f32.xlu2 %v355_v49  ;;  %v329_v53 = vmul.f32 %v1265_v22, %v314_v52 }
  0x95   : > { %v327_v54 = vmul.f32 %v1265_v22, %v308_v51  ;;  %v1367_v51 = vld [vmem:[%s1840_s2] ss:$0 sm:$0xff] }
  0x96   : > { %v1304_v56 = vsub.f32 %v289_v13, %v329_v53 }
  0x97   : > { %v1306_v57 = vsub.f32 %v287_v12, %v327_v54 }
  0x98   : > { %v345_v59 = vmul.f32 %v1304_v56, %v1304_v56 }
  0x99   : > { %v343_v61 = vmul.f32 %v1306_v57, %v1306_v57 }
  0x9a   : > { %v367_v60 = vsel %vm290_vm0, %v345_v59, 0.0 }
  0x9b   : > { %365 = vadd.xlane.f32.xlu0 %v364_v58  ;;  %v361_v62 = vsel %vm290_vm0, %v343_v61, 0.0 }
  0x9c   : > { %368 = vadd.xlane.f32.xlu2 %v367_v60 }
  0xa3   : > { %362 = vadd.xlane.f32.xlu0 %v361_v62 }
  0xfe   : > { %v348_v5 = vpop.xlane.xlu2 %347 }
  0xff   : > { %v354_v3 = vpop.xlane.xlu1 %353  ;;  %v370_v6 = vmul.f32 %v348_v5, %v1265_v22 }
 0x100   : > { %v372_v4 = vmul.f32 %v354_v3, %v1265_v22 }
 0x101   : > { %v378_v8 = vadd.f32 1e-05, %v370_v6 }
 0x102   : > { %v1329_v7 = vadd.f32 1e-05, %v372_v4 }
 0x103   : > { %vm392_vm3 = vweird.f32 %v378_v8 }
 0x104   : > { %1142 = vrsqrt.f32 %v1329_v7  ;;  %vm412_vm5 = vweird.f32 %v1329_v7 }
 0x105   : > { %1144 = vrsqrt.f32 %v378_v8 }
 0x106   : > { %v351_v10 = vpop.xlane.xlu0 %350 }
 0x107   : > { %v357_v9 = vpop.xlane.xlu2 %356  ;;  %v360_v11 = vpop.xlane.xlu1 %359  ;;  %v371_v13 = vmul.f32 %v351_v10, %v1265_v22 }
 0x108   : > { %v373_v12 = vmul.f32 %v357_v9, %v1265_v22  ;;  %v374_v20 = vmul.f32 %v360_v11, %v1265_v22 }
 0x109   : > { %v379_v17 = vadd.f32 1e-05, %v371_v13 }
 0x10a   : > { %v1334_v14 = vpop.eup %1142  ;;  %v1336_v16 = vadd.f32 1e-05, %v373_v12  ;;  %v1343_v25 = vadd.f32 1e-05, %v374_v20 }
 0x10b   : > { %v1145_v15 = vpop.eup %1144  ;;  %v407_v18 = vmul.f32 %v1334_v14, %v1329_v7  ;;  %vm413_vm6 = vweird.f32 %v1334_v14  ;;  %vm402_vm8 = vweird.f32 %v379_v17 }
 0x10c   : > { %v387_v19 = vmul.f32 %v1145_v15, %v378_v8  ;;  %1146 = vrsqrt.f32 %v1336_v16  ;;  %vm393_vm2 = vweird.f32 %v1145_v15  ;;  %vm1380_vm9 = vmor %vm412_vm5, %vm413_vm6  ;;  %vm422_vm11 = vweird.f32 %v1336_v16 }
 0x10d   : > { %1148 = vrsqrt.f32 %v379_v17  ;;  %v408_v23 = vmul.f32 %v1334_v14, %v407_v18  ;;  %vm394_vm4 = vmor %vm392_vm3, %vm393_vm2  ;;  %vm432_vm5 = vweird.f32 %v1343_v25 }
 0x10e   : > { %v388_v21 = vmul.f32 %v1145_v15, %v387_v19  ;;  %v366_v27 = vpop.xlane.xlu0 %365  ;;  %1150 = vrsqrt.f32 %v1343_v25 }
 0x10f   : > { %v369_v26 = vpop.xlane.xlu2 %368  ;;  %v376_v31 = vmul.f32 %v366_v27, %v1265_v22  ;;  %v409_v36 = vmul.f32 0.5, %v408_v23 }
 0x110   : > { %v389_v24 = vmul.f32 0.5, %v388_v21  ;;  %v377_v30 = vmul.f32 %v369_v26, %v1265_v22 }
 0x111   : > { %v1352_v38 = vadd.f32 1e-05, %v376_v31  ;;  %v410_v48 = vsub.f32 1.5, %v409_v36 }
 0x112   : > { %v390_v32 = vsub.f32 1.5, %v389_v24  ;;  %v1347_v33 = vpop.eup %1146  ;;  %v1349_v34 = vadd.f32 1e-05, %v377_v30 }
 0x113   : > { %v1149_v35 = vpop.eup %1148  ;;  %v417_v39 = vmul.f32 %v1347_v33, %v1336_v16  ;;  %v411_v61 = vmul.f32 %v1334_v14, %v410_v48  ;;  %vm423_vm12 = vweird.f32 %v1347_v33  ;;  %vm452_vm15 = vweird.f32 %v1352_v38 }
 0x114   : > { %v391_v37 = vmul.f32 %v1145_v15, %v390_v32  ;;  %v397_v40 = vmul.f32 %v1149_v35, %v379_v17  ;;  %1152 = vrsqrt.f32 %v1349_v34  ;;  %v1371_v55 = vpop.eup %1150  ;;  %vm403_vm7 = vweird.f32 %v1149_v35  ;;  %vm1405_vm2 = vmor %vm422_vm11, %vm423_vm12 }
 0x115   : > { %1154 = vrsqrt.f32 %v1352_v38  ;;  %v418_v52 = vmul.f32 %v1347_v33, %v417_v39  ;;  %v427_v0 = vmul.f32 %v1371_v55, %v1343_v25  ;;  %vm404_vm10 = vmor %vm402_vm8, %vm403_vm7  ;;  %v415_v9 = vsel %vm1380_vm9, %v1334_v14, %v411_v61 }
 0x116   : > { %v395_v44 = vsel %vm394_vm4, %v1145_v15, %v391_v37  ;;  %v398_v47 = vmul.f32 %v1149_v35, %v397_v40  ;;  %v363_v49 = vpop.xlane.xlu0 %362  ;;  %vm462_vm13 = vweird.f32 %v1349_v34  ;;  %v468_v19 = vmul.f32 %v415_v9, %v1269_v28 }
 0x117   : > { %v466_v50 = vmul.f32 %v395_v44, %v1271_v29  ;;  %v375_v54 = vmul.f32 %v363_v49, %v1265_v22  ;;  %v419_v1 = vmul.f32 0.5, %v418_v52  ;;  %v428_v10 = vmul.f32 %v1371_v55, %v427_v0  ;;  %v933_v22 = vld [vmem:[%s1843_s5 + $0x50] sm:$0xff] }
 0x118   : > { %v399_v53 = vmul.f32 0.5, %v398_v47  ;;  %v480_v31 = vmul.f32 %v1360_v45, %v468_v19  ;;  %vm433_vm6 = vweird.f32 %v1371_v55 }
 0x119   : > { %v478_v58 = vmul.f32 %v1360_v45, %v466_v50  ;;  %v1376_v29 = vadd.f32 1e-05, %v375_v54  ;;  %v420_v11 = vsub.f32 1.5, %v419_v1  ;;  %v429_v20 = vmul.f32 0.5, %v428_v10  ;;  %vm434_vm7 = vmor %vm432_vm5, %vm433_vm6  ;;  %v932_v1 = vld [vmem:[%s1843_s5 + $0x48] sm:$0xff] }
 0x11a   : > { %v400_v59 = vsub.f32 1.5, %v399_v53  ;;  %v1153_v60 = vpop.eup %1152 }
 0x11b   : > { %v490_v62 = vadd.f32 %v1367_v51, %v478_v58  ;;  %v1155_v63 = vpop.eup %1154  ;;  %v457_v3 = vmul.f32 %v1153_v60, %v1349_v34  ;;  %1156 = vrsqrt.f32 %v1376_v29  ;;  %vm463_vm14 = vweird.f32 %v1153_v60 }
 0x11c   : > { %v401_v2 = vmul.f32 %v1149_v35, %v400_v59  ;;  %v447_v4 = vmul.f32 %v1155_v63, %v1352_v38  ;;  %vm453_vm1 = vweird.f32 %v1155_v63  ;;  %v421_v21 = vmul.f32 %v1347_v33, %v420_v11  ;;  %vm1410_vm3 = vmor %vm462_vm13, %vm463_vm14 }
 0x11d   : > { %1073 = vmatmul.msk.f32.vlgmr.msra.gmra.mxu0 %vm290_vm0, %v490_v62  ;;  %v458_v6 = vmul.f32 %v1153_v60, %v457_v3  ;;  %vm454_vm4 = vmor %vm452_vm15, %vm453_vm1  ;;  %v430_v32 = vsub.f32 1.5, %v429_v20  ;;  %v492_v38 = vadd.f32 %v1367_v51, %v480_v31  ;;  %vm442_vm8 = vweird.f32 %v1376_v29  ;;  %v934_v62 = vld [vmem:[%s1843_s5 + $0x58] sm:$0xff]  ;;  %v931_v3 = vld [vmem:[%s1843_s5 + $0x40] sm:$0xff] }
 0x11e   : > { %v405_v5 = vsel %vm404_vm10, %v1149_v35, %v401_v2  ;;  %v448_v7 = vmul.f32 %v1155_v63, %v447_v4  ;;  %v425_v16 = vsel %vm1405_vm2, %v1347_v33, %v421_v21  ;;  %v927_v20 = vld [vmem:[%s1843_s5 + $0x20] sm:$0xff] }
 0x11f   : > { %v467_v8 = vmul.f32 %v405_v5, %v1287_v43  ;;  %v459_v12 = vmul.f32 0.5, %v458_v6  ;;  %v469_v39 = vmul.f32 %v425_v16, %v1285_v42  ;;  %v431_v40 = vmul.f32 %v1371_v55, %v430_v32  ;;  %v930_v6 = vld [vmem:[%s1843_s5 + $0x38] sm:$0xff]  ;;  %v925_v16 = vld [vmem:[%s1843_s5 + $0x10] sm:$0xff] }
 0x120   : > { %v449_v13 = vmul.f32 0.5, %v448_v7 }
 0x121   : > { %v479_v15 = vmul.f32 %v1360_v45, %v467_v8  ;;  %v460_v17 = vsub.f32 1.5, %v459_v12  ;;  %v1157_v43 = vpop.eup %1156  ;;  %v481_v25 = vmul.f32 %v1360_v45, %v469_v39  ;;  %v435_v47 = vsel %vm434_vm7, %v1371_v55, %v431_v40  ;;  %v929_v12 = vld [vmem:[%s1843_s5 + $0x30] sm:$0xff] }
 0x122   : > { %v450_v18 = vsub.f32 1.5, %v449_v13  ;;  %v437_v24 = vmul.f32 %v1157_v43, %v1376_v29  ;;  %vm443_vm9 = vweird.f32 %v1157_v43  ;;  %v470_v50 = vmul.f32 %v435_v47, %v1283_v41  ;;  %v938_v29 = vld [vmem:[%s1843_s5 + $0x78] sm:$0xff] }
 0x123   : > { %v491_v14 = vadd.f32 %v1367_v51, %v479_v15  ;;  %v461_v26 = vmul.f32 %v1153_v60, %v460_v17  ;;  %v493_v42 = vadd.f32 %v1367_v51, %v481_v25  ;;  %vm444_vm10 = vmor %vm442_vm8, %vm443_vm9  ;;  %943 = vmatpush.msra.mxu1 %v938_v29  ;;  %1096 = vmatpush.msrb.mxu3 %v938_v29  ;;  %v923_v25 = vld [vmem:[%s1843_s5] sm:$0xff] }
 0x124   : > { %v451_v30 = vmul.f32 %v1155_v63, %v450_v18  ;;  %v438_v34 = vmul.f32 %v1157_v43, %v437_v24  ;;  %v482_v53 = vmul.f32 %v1360_v45, %v470_v50  ;;  %1095 = vmatpush.msra.mxu2 %v938_v29 }
 0x125   : > { %1074 = vmatmul.msk.f32.gmra.mxu0 %vm290_vm0, %v491_v14  ;;  %v465_v36 = vsel %vm1410_vm3, %v1153_v60, %v461_v26  ;;  %v937_v60 = vld [vmem:[%s1843_s5 + $0x70] sm:$0xff] }
 0x126   : > { %v455_v28 = vsel %vm454_vm4, %v1155_v63, %v451_v30  ;;  %v439_v44 = vmul.f32 0.5, %v438_v34  ;;  %v494_v55 = vadd.f32 %v1367_v51, %v482_v53  ;;  %944 = vmatpush.msra.mxu1 %v937_v60  ;;  %1098 = vmatpush.msrb.mxu3 %v937_v60  ;;  %v926_v30 = vld [vmem:[%s1843_s5 + $0x18] sm:$0xff] }
 0x127   : > { %v472_v35 = vmul.f32 %v455_v28, %v1293_v46  ;;  %v473_v46 = vmul.f32 %v465_v36, %v1304_v56  ;;  %1097 = vmatpush.msra.mxu2 %v937_v60 }
 0x128   : > { %v440_v48 = vsub.f32 1.5, %v439_v44 }
 0x129   : > { %v484_v37 = vmul.f32 %v1360_v45, %v472_v35  ;;  %v485_v49 = vmul.f32 %v1360_v45, %v473_v46 }
 0x12a   : > { %v441_v56 = vmul.f32 %v1157_v43, %v440_v48 }
 0x12b   : > { %v496_v33 = vadd.f32 %v1367_v51, %v484_v37  ;;  %v497_v52 = vadd.f32 %v1367_v51, %v485_v49 }
 0x12c   : > { %v445_v54 = vsel %vm444_vm10, %v1157_v43, %v441_v56  ;;  %v928_v43 = vld [vmem:[%s1843_s5 + $0x28] sm:$0xff] }
 0x12d   : > { %1075 = vmatmul.msk.f32.gmra.mxu0 %vm290_vm0, %v492_v38  ;;  %1079 = vmatmul.msk.f32.vlgmr.msra.gmra.mxu3 %vm290_vm0, %v496_v33  ;;  %v471_v58 = vmul.f32 %v445_v54, %v1306_v57  ;;  %v936_v57 = vld [vmem:[%s1843_s5 + $0x68] sm:$0xff] }
 0x12e   : > { %945 = vmatpush.msra.mxu1 %v936_v57  ;;  %1100 = vmatpush.msrb.mxu3 %v936_v57  ;;  %v924_v38 = vld [vmem:[%s1843_s5 + $0x8] sm:$0xff] }
 0x12f   : > { %v483_v59 = vmul.f32 %v1360_v45, %v471_v58  ;;  %v1460_v45 = vld [vmem:[%s1842_s4] ss:$0 sm:$0xff]  ;;  %1099 = vmatpush.msra.mxu2 %v936_v57 }
 0x131   : > { %v495_v41 = vadd.f32 %v1367_v51, %v483_v59  ;;  %v935_v51 = vld [vmem:[%s1843_s5 + $0x60] sm:$0xff] }
 0x132   : > { %946 = vmatpush.msra.mxu1 %v935_v51  ;;  %1102 = vmatpush.msrb.mxu3 %v935_v51 }
 0x133   : > { %1101 = vmatpush.msra.mxu2 %v935_v51 }
 0x134   : > { %947 = vmatpush.msra.mxu1 %v934_v62  ;;  %1104 = vmatpush.msrb.mxu3 %v934_v62 }
 0x135   : > { %1076 = vmatmul.msk.f32.gmra.mxu0 %vm290_vm0, %v493_v42  ;;  %1080 = vmatmul.msk.f32.gmra.mxu3 %vm290_vm0, %v497_v52 }
 0x136   : > { %1103 = vmatpush.msra.mxu2 %v934_v62  ;;  %948 = vmatpush.msra.mxu1 %v933_v22 }
 0x137   : > { %1106 = vmatpush.msrb.mxu3 %v933_v22 }
 0x138   : > { %1105 = vmatpush.msra.mxu2 %v933_v22  ;;  %949 = vmatpush.msra.mxu1 %v932_v1 }
 0x139   : > { %1108 = vmatpush.msrb.mxu3 %v932_v1 }
 0x13a   : > { %1107 = vmatpush.msra.mxu2 %v932_v1  ;;  %950 = vmatpush.msra.mxu1 %v931_v3 }
 0x13b   : > { %1110 = vmatpush.msrb.mxu3 %v931_v3 }
 0x13c   : > { %1109 = vmatpush.msra.mxu2 %v931_v3  ;;  %951 = vmatpush.msra.mxu1 %v930_v6 }
 0x13d   : > { %1077 = vmatmul.msk.f32.gmra.mxu0 %vm290_vm0, %v494_v55  ;;  %1112 = vmatpush.msrb.mxu3 %v930_v6 }
 0x13e   : > { %1111 = vmatpush.msra.mxu2 %v930_v6  ;;  %952 = vmatpush.msra.mxu1 %v929_v12 }
 0x13f   : > { %1114 = vmatpush.msrb.mxu3 %v929_v12 }
 0x140   : > { %1113 = vmatpush.msra.mxu2 %v929_v12  ;;  %953 = vmatpush.msra.mxu1 %v928_v43 }
 0x141   : > { %1116 = vmatpush.msrb.mxu3 %v928_v43 }
 0x142   : > { %1115 = vmatpush.msra.mxu2 %v928_v43  ;;  %954 = vmatpush.msra.mxu1 %v927_v20 }
 0x143   : > { %1118 = vmatpush.msrb.mxu3 %v927_v20 }
 0x144   : > { %1117 = vmatpush.msra.mxu2 %v927_v20  ;;  %955 = vmatpush.msra.mxu1 %v926_v30 }
 0x145   : > { %1078 = vmatmul.msk.f32.gmra.mxu0 %vm290_vm0, %v495_v41  ;;  %1120 = vmatpush.msrb.mxu3 %v926_v30 }
 0x146   : > { %1119 = vmatpush.msra.mxu2 %v926_v30  ;;  %956 = vmatpush.msra.mxu1 %v925_v16 }
 0x147   : > { %1122 = vmatpush.msrb.mxu3 %v925_v16 }
 0x148   : > { %1121 = vmatpush.msra.mxu2 %v925_v16  ;;  %957 = vmatpush.msra.mxu1 %v924_v38 }
 0x149   : > { %1124 = vmatpush.msrb.mxu3 %v924_v38 }
 0x14a   : > { %1123 = vmatpush.msra.mxu2 %v924_v38  ;;  %958 = vmatpush.msra.mxu1 %v923_v25 }
 0x14b   : > { %1126 = vmatpush.msrb.mxu3 %v923_v25 }
 0x14c   : > { %1125 = vmatpush.msra.mxu2 %v923_v25 }
 0x19a   : > { %v547_v61 = vpop.f32.mrf.mxu0 }
 0x19b   : > { %v1469_v63 = vadd.f32 %v1460_v45, %v547_v61 }
 0x19d   : > { %v1475_v0 = vmul.f32 0.70710677, %v1469_v63 }
 0x19f   : > { %v587_v2 = vmul.f32 %v1475_v0, %v1475_v0 }
 0x1a1   : > { %v1485_v4 = vmin.f32 %v587_v2, 16.0 }
 0x1a2   : > { %v550_v5 = vpop.f32.mrf.mxu0 }
 0x1a3   : > { %v589_v7 = vmul.f32 2.1237322e-06, %v1485_v4  ;;  %v1492_v8 = vadd.f32 %v1460_v45, %v550_v5  ;;  %v600_v9 = vmul.f32 3.8918573e-05, %v1485_v4 }
 0x1a5   : > { %v590_v10 = vadd.f32 0.00028619796, %v589_v7  ;;  %v1496_v11 = vmul.f32 0.70710677, %v1492_v8  ;;  %v601_v13 = vadd.f32 0.001143296, %v600_v9 }
 0x1a7   : > { %v591_v15 = vmul.f32 %v590_v10, %v1485_v4  ;;  %v627_v17 = vmul.f32 %v1496_v11, %v1496_v11  ;;  %v602_v18 = vmul.f32 %v601_v13, %v1485_v4 }
 0x1a9   : > { %v592_v14 = vadd.f32 0.0036580483, %v591_v15  ;;  %v1508_v19 = vmin.f32 %v627_v17, 16.0  ;;  %v603_v23 = vadd.f32 0.014752088, %v602_v18 }
 0x1aa   : > { %v553_v21 = vpop.f32.mrf.mxu0 }
 0x1ab   : > { %v593_v24 = vmul.f32 %v592_v14, %v1485_v4  ;;  %v629_v26 = vmul.f32 2.1237322e-06, %v1508_v19  ;;  %v1516_v27 = vadd.f32 %v1460_v45, %v553_v21  ;;  %v604_v28 = vmul.f32 %v603_v23, %v1485_v4 }
 0x1ac   : > { %v640_v31 = vmul.f32 3.8918573e-05, %v1508_v19 }
 0x1ad   : > { %v630_v32 = vadd.f32 0.00028619796, %v629_v26  ;;  %v594_v34 = vadd.f32 0.05243302, %v593_v24  ;;  %v1527_v35 = vmul.f32 0.70710677, %v1516_v27 }
 0x1ae   : > { %v605_v36 = vadd.f32 0.112945676, %v604_v28  ;;  %v641_v44 = vadd.f32 0.001143296, %v640_v31 }
 0x1af   : > { %v631_v37 = vmul.f32 %v630_v32, %v1508_v19  ;;  %v667_v39 = vmul.f32 %v1527_v35, %v1527_v35  ;;  %v595_v47 = vmul.f32 %v594_v34, %v1485_v4 }
 0x1b0   : > { %v606_v40 = vmul.f32 %v605_v36, %v1485_v4  ;;  %v565_v46 = vpop.f32.mrf.mxu3  ;;  %v642_v54 = vmul.f32 %v641_v44, %v1508_v19 }
 0x1b1   : > { %v632_v33 = vadd.f32 0.0036580483, %v631_v37  ;;  %v1541_v48 = vadd.f32 %v1460_v45, %v565_v46  ;;  %v1543_v50 = vmin.f32 %v667_v39, 16.0  ;;  %v596_v58 = vadd.f32 0.18741608, %v595_v47 }
 0x1b2   : > { %v556_v49 = vpop.f32.mrf.mxu0  ;;  %v607_v42 = vadd.f32 0.4994258, %v606_v40  ;;  %v643_v61 = vadd.f32 0.014752088, %v642_v54 }
 0x1b3   : > { %v1546_v56 = vadd.f32 %v1460_v45, %v556_v49  ;;  %v1549_v52 = vmul.f32 0.70710677, %v1541_v48  ;;  %v633_v55 = vmul.f32 %v632_v33, %v1508_v19  ;;  %v669_v60 = vmul.f32 2.1237322e-06, %v1543_v50 }
 0x1b4   : > { %v608_v53 = vmul.f32 %v607_v42, %v1485_v4  ;;  %v597_v1 = vmul.f32 %v596_v58, %v1485_v4  ;;  %v644_v15 = vmul.f32 %v643_v61, %v1508_v19 }
 0x1b5   : > { %v827_v59 = vmul.f32 %v1549_v52, %v1549_v52  ;;  %v1557_v41 = vmul.f32 0.70710677, %v1546_v56  ;;  %v634_v62 = vadd.f32 0.05243302, %v633_v55  ;;  %v670_v7 = vadd.f32 0.00028619796, %v669_v60 }
 0x1b6   : > { %v1559_v29 = vadd.f32 1.0, %v608_v53  ;;  %v598_v14 = vadd.f32 1.1283791, %v597_v1  ;;  %v645_v16 = vadd.f32 0.112945676, %v644_v15 }
 0x1b7   : > { %v1562_v57 = vmin.f32 %v827_v59, 16.0  ;;  %v707_v51 = vmul.f32 %v1557_v41, %v1557_v41  ;;  %v635_v4 = vmul.f32 %v634_v62, %v1508_v19  ;;  %v671_v23 = vmul.f32 %v670_v7, %v1543_v50 }
 0x1b8   : > { %1158 = vrcp.f32 %v1559_v29  ;;  %v568_v22 = vpop.f32.mrf.mxu3  ;;  %vm615_vm11 = vweird.f32 %v1559_v29  ;;  %v619_v60 = vand.u32 2147483647, %v1559_v29  ;;  %v646_v15 = vmul.f32 %v645_v16, %v1508_v19 }
 0x1b9   : > { %v829_v2 = vmul.f32 2.1237322e-06, %v1562_v57  ;;  %v840_v3 = vmul.f32 3.8918573e-05, %v1562_v57  ;;  %v1571_v5 = vadd.f32 %v1460_v45, %v568_v22  ;;  %v1573_v9 = vmin.f32 %v707_v51, 16.0 }
 0x1ba   : > { %v559_v6 = vpop.f32.mrf.mxu0  ;;  %v636_v34 = vadd.f32 0.18741608, %v635_v4  ;;  %v672_v46 = vadd.f32 0.0036580483, %v671_v23  ;;  %v599_v23 = vmul.f32 %v598_v14, %v1475_v0  ;;  %vm620_vm14 = vcmp.eq.f32.partialorder %v619_v60, 8.507059e+37 }
 0x1bb   : > { %v1576_v10 = vadd.f32 %v1460_v45, %v559_v6  ;;  %v830_v12 = vadd.f32 0.00028619796, %v829_v2  ;;  %v841_v13 = vadd.f32 0.001143296, %v840_v3  ;;  %v709_v17 = vmul.f32 2.1237322e-06, %v1573_v9 }
 0x1bc   : > { %v1582_v43 = vmul.f32 0.70710677, %v1571_v5  ;;  %v673_v22 = vmul.f32 %v672_v46, %v1543_v50 }
 0x1bd   : > { %v831_v20 = vmul.f32 %v830_v12, %v1562_v57  ;;  %v842_v21 = vmul.f32 %v841_v13, %v1562_v57  ;;  %v710_v24 = vadd.f32 0.00028619796, %v709_v17  ;;  %v1590_v30 = vmul.f32 0.70710677, %v1576_v10 }
 0x1be   : > { %v1159_v18 = vpop.eup %1158  ;;  %v867_v26 = vmul.f32 %v1582_v43, %v1582_v43 }
 0x1bf   : > { %v832_v28 = vadd.f32 0.0036580483, %v831_v20  ;;  %v843_v31 = vadd.f32 0.014752088, %v842_v21  ;;  %v611_v32 = vmul.f32 %v1159_v18, %v1559_v29  ;;  %v711_v36 = vmul.f32 %v710_v24, %v1573_v9 }
 0x1c0   : > { %v1594_v37 = vmin.f32 %v867_v26, 16.0  ;;  %v747_v38 = vmul.f32 %v1590_v30, %v1590_v30  ;;  %vm616_vm12 = vweird.f32 %v1159_v18 }
 0x1c1   : > { %v833_v39 = vmul.f32 %v832_v28, %v1562_v57  ;;  %v844_v40 = vmul.f32 %v843_v31, %v1562_v57  ;;  %v612_v33 = vsub.f32 1.0, %v611_v32  ;;  %v712_v54 = vadd.f32 0.0036580483, %v711_v36  ;;  %vm1622_vm13 = vmor %vm615_vm11, %vm616_vm12 }
 0x1c2   : > { %v562_v44 = vpop.f32.mrf.mxu0  ;;  %v869_v25 = vmul.f32 2.1237322e-06, %v1594_v37  ;;  %v1602_v47 = vmin.f32 %v747_v38, 16.0  ;;  %v637_v28 = vmul.f32 %v636_v34, %v1508_v19  ;;  %v571_v34 = vmul.f32 0.5, %v1469_v63 }
 0x1c3   : > { %v1605_v49 = vadd.f32 %v1460_v45, %v562_v44  ;;  %v834_v42 = vadd.f32 0.05243302, %v833_v39  ;;  %v845_v53 = vadd.f32 0.112945676, %v844_v40  ;;  %v613_v55 = vmul.f32 %v1159_v18, %v612_v33 }
 0x1c4   : > { %v870_v58 = vadd.f32 0.00028619796, %v869_v25  ;;  %v749_v59 = vmul.f32 2.1237322e-06, %v1602_v47  ;;  %v621_v45 = vand.u32 2147483648, %v1559_v29  ;;  %v713_v7 = vmul.f32 %v712_v54, %v1573_v9 }
 0x1c5   : > { %v835_v51 = vmul.f32 %v834_v42, %v1562_v57  ;;  %v846_v61 = vmul.f32 %v845_v53, %v1562_v57  ;;  %v1612_v62 = vmul.f32 0.70710677, %v1605_v49  ;;  %v614_v3 = vadd.f32 %v1159_v18, %v613_v55 }
 0x1c6   : > { %v871_v1 = vmul.f32 %v870_v58, %v1594_v37  ;;  %v750_v2 = vadd.f32 0.00028619796, %v749_v59  ;;  %v622_v29 = vor.u32 1.1754944e-38, %v621_v45  ;;  %v647_v39 = vadd.f32 0.4994258, %v646_v15 }
 0x1c7   : > { %v847_v6 = vadd.f32 0.4994258, %v846_v61  ;;  %v787_v12 = vmul.f32 %v1612_v62, %v1612_v62  ;;  %v836_v4 = vadd.f32 0.18741608, %v835_v51  ;;  %v618_v21 = vsel %vm1622_vm13, %v1159_v18, %v614_v3 }
 0x1c8   : > { %v872_v17 = vadd.f32 0.0036580483, %v871_v1  ;;  %v751_v20 = vmul.f32 %v750_v2, %v1602_v47  ;;  %v623_v38 = vsel %vm620_vm14, %v622_v29, %v618_v21  ;;  %v674_v18 = vadd.f32 0.05243302, %v673_v22 }
 0x1c9   : > { %v848_v24 = vmul.f32 %v847_v6, %v1562_v57  ;;  %v1632_v26 = vmin.f32 %v787_v12, 16.0  ;;  %v837_v0 = vmul.f32 %v836_v4, %v1562_v57  ;;  %v714_v14 = vadd.f32 0.05243302, %v713_v7 }
 0x1ca   : > { %v873_v31 = vmul.f32 %v872_v17, %v1594_v37  ;;  %v752_v32 = vadd.f32 0.0036580483, %v751_v20  ;;  %v624_v40 = vmul.f32 %v623_v38, %v599_v23  ;;  %v680_v44 = vmul.f32 3.8918573e-05, %v1543_v50 }
 0x1cb   : > { %v1636_v16 = vadd.f32 1.0, %v848_v24  ;;  %v789_v36 = vmul.f32 2.1237322e-06, %v1632_v26  ;;  %v1644_v33 = vmul.f32 0.5, %v1541_v48  ;;  %v648_v54 = vmul.f32 %v647_v39, %v1508_v19 }
 0x1cc   : > { %v874_v46 = vadd.f32 0.05243302, %v873_v31  ;;  %v753_v25 = vmul.f32 %v752_v32, %v1602_v47  ;;  %v1081_v53 = vclamps-f32 %v624_v40, 1.0  ;;  %v638_v55 = vadd.f32 1.1283791, %v637_v28 }
 0x1cd   : > { %1160 = vrcp.f32 %v1636_v16  ;;  %v790_v42 = vadd.f32 0.00028619796, %v789_v36  ;;  %v675_v57 = vmul.f32 %v674_v18, %v1543_v50  ;;  %v838_v58 = vadd.f32 1.1283791, %v837_v0 }
 0x1ce   : > { %v715_v59 = vmul.f32 %v714_v14, %v1573_v9  ;;  %v907_v51 = vadd.f32 1.0, %v1081_v53  ;;  %v1651_v63 = vadd.f32 1.0, %v648_v54  ;;  %v681_v48 = vadd.f32 0.001143296, %v680_v44 }
 0x1cf   : > { %v791_v60 = vmul.f32 %v790_v42, %v1632_v26  ;;  %v859_v61 = vand.u32 2147483647, %v1636_v16  ;;  %v861_v45 = vand.u32 2147483648, %v1636_v16  ;;  %v875_v22 = vmul.f32 %v874_v46, %v1594_v37 }
 0x1d0   : > { %v720_v19 = vmul.f32 3.8918573e-05, %v1573_v9  ;;  %v754_v2 = vadd.f32 0.05243302, %v753_v25  ;;  %v915_v6 = vmul.f32 %v907_v51, %v571_v34  ;;  %1162 = vrcp.f32 %v1651_v63 }
 0x1d1   : > { %v792_v3 = vadd.f32 0.0036580483, %v791_v60  ;;  %v1659_v7 = vmul.f32 %v638_v55, %v1496_v11  ;;  %v1661_v12 = vadd.f32 0.18741608, %v675_v57  ;;  %v880_v15 = vmul.f32 3.8918573e-05, %v1594_v37 }
 0x1d2   : > { %v839_v4 = vmul.f32 %v838_v58, %v1549_v52  ;;  %vm855_vm15 = vweird.f32 %v1636_v16  ;;  %v1667_v17 = vadd.f32 0.18741608, %v715_v59  ;;  %959 = vmatmul.f32.vlgmr.msra.gmra.mxu1 %v915_v6  ;;  %v682_v20 = vmul.f32 %v681_v48, %v1543_v50 }
 0x1d3   : > { %v1161_v1 = vpop.eup %1160  ;;  %vm1670_vm1 = vcmp.eq.f32.partialorder %v859_v61, 8.507059e+37  ;;  %v862_v11 = vor.u32 1.1754944e-38, %v861_v45  ;;  %v721_v24 = vadd.f32 0.001143296, %v720_v19  ;;  %v1674_v29 = vadd.f32 0.18741608, %v875_v22 }
 0x1d4   : > { %v851_v13 = vmul.f32 %v1161_v1, %v1636_v16  ;;  %v1677_v28 = vmul.f32 %v754_v2, %v1602_v47  ;;  %v793_v52 = vmul.f32 %v792_v3, %v1632_v26  ;;  %v683_v31 = vadd.f32 0.014752088, %v682_v20 }
 0x1d5   : > { %vm856_vm2 = vweird.f32 %v1161_v1  ;;  %vm655_vm3 = vweird.f32 %v1651_v63  ;;  %v722_v36 = vmul.f32 %v721_v24, %v1573_v9  ;;  %v881_v38 = vadd.f32 0.001143296, %v880_v15 }
 0x1d6   : > { %v852_v21 = vsub.f32 1.0, %v851_v13  ;;  %v1163_v39 = vpop.eup %1162  ;;  %v659_v18 = vand.u32 2147483647, %v1651_v63  ;;  %v684_v0 = vmul.f32 %v683_v31, %v1543_v50  ;;  %v760_v14 = vmul.f32 3.8918573e-05, %v1602_v47  ;;  %vm857_vm4 = vmor %vm855_vm15, %vm856_vm2 }
 0x1d7   : > { %v800_v40 = vmul.f32 3.8918573e-05, %v1632_v26  ;;  %v651_v34 = vmul.f32 %v1163_v39, %v1651_v63  ;;  %v661_v46 = vand.u32 2147483648, %v1651_v63  ;;  %v723_v25 = vadd.f32 0.014752088, %v722_v36 }
 0x1d8   : > { %v853_v32 = vmul.f32 %v1161_v1, %v852_v21  ;;  %v794_v42 = vadd.f32 0.05243302, %v793_v52  ;;  %v685_v53 = vadd.f32 0.112945676, %v684_v0  ;;  %v882_v54 = vmul.f32 %v881_v38, %v1594_v37 }
 0x1d9   : > { %v761_v55 = vadd.f32 0.001143296, %v760_v14  ;;  %v652_v58 = vsub.f32 1.0, %v651_v34  ;;  %v724_v59 = vmul.f32 %v723_v25, %v1573_v9  ;;  %v801_v60 = vadd.f32 0.001143296, %v800_v40 }
 0x1da   : > { %v854_v44 = vadd.f32 %v1161_v1, %v853_v32  ;;  %vm656_vm5 = vweird.f32 %v1163_v39  ;;  %v686_v48 = vmul.f32 %v685_v53, %v1543_v50  ;;  %v883_v61 = vadd.f32 0.014752088, %v882_v54 }
 0x1db   : > { %v653_v16 = vmul.f32 %v1163_v39, %v652_v58  ;;  %v725_v22 = vadd.f32 0.112945676, %v724_v59  ;;  %v762_v19 = vmul.f32 %v761_v55, %v1602_v47  ;;  %vm1696_vm6 = vcmp.eq.f32.partialorder %v659_v18, 8.507059e+37  ;;  %vm657_vm7 = vmor %vm655_vm3, %vm656_vm5 }
 0x1dc   : > { %v858_v57 = vsel %vm857_vm4, %v1161_v1, %v854_v44  ;;  %v687_v1 = vadd.f32 0.4994258, %v686_v48  ;;  %v884_v3 = vmul.f32 %v883_v61, %v1594_v37  ;;  %v802_v6 = vmul.f32 %v801_v60, %v1632_v26 }
 0x1dd   : > { %v863_v51 = vsel %vm1670_vm1, %v862_v11, %v858_v57  ;;  %v654_v13 = vadd.f32 %v1163_v39, %v653_v16  ;;  %v726_v20 = vmul.f32 %v725_v22, %v1573_v9  ;;  %v763_v21 = vadd.f32 0.014752088, %v762_v19 }
 0x1de   : > { %v864_v45 = vmul.f32 %v863_v51, %v839_v4  ;;  %v662_v4 = vor.u32 1.1754944e-38, %v661_v46  ;;  %v688_v23 = vmul.f32 %v687_v1, %v1543_v50  ;;  %v885_v11 = vadd.f32 0.112945676, %v884_v3 }
 0x1df   : > { %v803_v24 = vadd.f32 0.014752088, %v802_v6  ;;  %v658_v52 = vsel %vm657_vm7, %v1163_v39, %v654_v13  ;;  %v727_v32 = vadd.f32 0.4994258, %v726_v20  ;;  %v764_v36 = vmul.f32 %v763_v21, %v1602_v47 }
 0x1e0   : > { %v1087_v15 = vclamps-f32 %v864_v45, 1.0  ;;  %v663_v38 = vsel %vm1696_vm6, %v662_v4, %v658_v52  ;;  %v1710_v18 = vadd.f32 1.0, %v688_v23  ;;  %v886_v0 = vmul.f32 %v885_v11, %v1594_v37 }
 0x1e1   : > { %v804_v63 = vmul.f32 %v803_v24, %v1632_v26  ;;  %v664_v14 = vmul.f32 %v663_v38, %v1659_v7  ;;  %v728_v44 = vmul.f32 %v727_v32, %v1573_v9  ;;  %v765_v39 = vadd.f32 0.112945676, %v764_v36 }
 0x1e2   : > { %v913_v31 = vadd.f32 1.0, %v1087_v15  ;;  %v677_v34 = vmul.f32 %v1661_v12, %v1543_v50  ;;  %v717_v46 = vmul.f32 %v1667_v17, %v1573_v9  ;;  %v795_v25 = vmul.f32 %v794_v42, %v1632_v26 }
 0x1e3   : > { %1164 = vrcp.f32 %v1710_v18  ;;  %v1082_v53 = vclamps-f32 %v664_v14, 1.0  ;;  %v1723_v54 = vadd.f32 1.0, %v728_v44  ;;  %v887_v7 = vadd.f32 0.4994258, %v886_v0 }
 0x1e4   : > { %v921_v40 = vmul.f32 %v913_v31, %v1644_v33  ;;  %v766_v33 = vmul.f32 %v765_v39, %v1602_v47  ;;  %v877_v55 = vmul.f32 %v1674_v29, %v1594_v37  ;;  %v805_v57 = vadd.f32 0.112945676, %v804_v63 }
 0x1e5   : > { %v572_v50 = vmul.f32 0.5, %v1492_v8  ;;  %v756_v12 = vadd.f32 0.18741608, %v1677_v28  ;;  %v908_v9 = vadd.f32 1.0, %v1082_v53  ;;  %1166 = vrcp.f32 %v1723_v54 }
 0x1e6   : > { %977 = vmatmul.f32.vlgmr.msrb.gmra.mxu3 %v921_v40  ;;  %v796_v17 = vadd.f32 0.18741608, %v795_v25  ;;  %v888_v42 = vmul.f32 %v887_v7, %v1594_v37  ;;  %v767_v58 = vadd.f32 0.4994258, %v766_v33  ;;  %v806_v59 = vmul.f32 %v805_v57, %v1632_v26 }
 0x1e7   : > { %v678_v60 = vadd.f32 1.1283791, %v677_v34  ;;  %v718_v51 = vadd.f32 1.1283791, %v717_v46  ;;  %v916_v48 = vmul.f32 %v908_v9, %v572_v50  ;;  %v878_v45 = vadd.f32 1.1283791, %v877_v55 }
 0x1e8   : > { %v1733_v29 = vadd.f32 1.0, %v888_v42  ;;  %v768_v8 = vmul.f32 %v767_v58, %v1602_v47  ;;  %v807_v16 = vadd.f32 0.4994258, %v806_v59  ;;  %v1737_v28 = vmul.f32 0.5, %v1516_v27  ;;  %v1178_v50 = vld [vmem:[%s1247_s30 + $0x18] sm:$0xff] }
 0x1e9   : > { %v1165_v61 = vpop.eup %1164  ;;  %962 = vmatmul.f32.gmra.mxu1 %v916_v48  ;;  %v1741_v37 = vmul.f32 0.5, %v1546_v56  ;;  %v757_v19 = vmul.f32 %v756_v12, %v1602_v47  ;;  %v797_v2 = vmul.f32 %v796_v17, %v1632_v26  ;;  %v679_v3 = vmul.f32 %v678_v60, %v1527_v35 }
 0x1ea   : > { %v691_v22 = vmul.f32 %v1165_v61, %v1710_v18  ;;  %1168 = vrcp.f32 %v1733_v29  ;;  %v1747_v13 = vadd.f32 1.0, %v768_v8  ;;  %v808_v27 = vmul.f32 %v807_v16, %v1632_v26 }
 0x1eb   : > { %v1167_v1 = vpop.eup %1166  ;;  %v719_v15 = vmul.f32 %v718_v51, %v1557_v41  ;;  %v1752_v20 = vmul.f32 %v878_v45, %v1582_v43  ;;  %v701_v56 = vand.u32 2147483648, %v1710_v18  ;;  %vm696_vm8 = vweird.f32 %v1165_v61 }
 0x1ec   : > { %v692_v6 = vsub.f32 1.0, %v691_v22  ;;  %v731_v47 = vmul.f32 %v1167_v1, %v1723_v54  ;;  %v699_v4 = vand.u32 2147483647, %v1710_v18  ;;  %1170 = vrcp.f32 %v1747_v13 }
 0x1ed   : > { %v1758_v35 = vadd.f32 1.1283791, %v757_v19  ;;  %v1760_v23 = vadd.f32 1.1283791, %v797_v2  ;;  %v1762_v11 = vadd.f32 1.0, %v808_v27  ;;  %vm695_vm9 = vweird.f32 %v1710_v18 }
 0x1ee   : > { %v693_v21 = vmul.f32 %v1165_v61, %v692_v6  ;;  %v732_v26 = vsub.f32 1.0, %v731_v47  ;;  %v739_v43 = vand.u32 2147483647, %v1723_v54  ;;  %v741_v24 = vand.u32 2147483648, %v1723_v54  ;;  %vm697_vm10 = vmor %vm695_vm9, %vm696_vm8 }
 0x1ef   : > { %v702_v31 = vor.u32 1.1754944e-38, %v701_v56  ;;  %vm736_vm11 = vweird.f32 %v1167_v1  ;;  %1172 = vrcp.f32 %v1762_v11  ;;  %vm700_vm12 = vcmp.eq.f32.partialorder %v699_v4, 8.507059e+37 }
 0x1f0   : > { %v694_v41 = vadd.f32 %v1165_v61, %v693_v21  ;;  %v1169_v52 = vpop.eup %1168  ;;  %v733_v32 = vmul.f32 %v1167_v1, %v732_v26  ;;  %vm735_vm13 = vweird.f32 %v1723_v54  ;;  %v899_v18 = vand.u32 2147483647, %v1733_v29 }
 0x1f1   : > { %v891_v38 = vmul.f32 %v1169_v52, %v1733_v29  ;;  %v901_v14 = vand.u32 2147483648, %v1733_v29  ;;  %vm737_vm14 = vmor %vm735_vm13, %vm736_vm11  ;;  %vm740_vm15 = vcmp.eq.f32.partialorder %v739_v43, 8.507059e+37  ;;  %v742_v39 = vor.u32 1.1754944e-38, %v741_v24 }
 0x1f2   : > { %v698_v36 = vsel %vm697_vm10, %v1165_v61, %v694_v41  ;;  %v734_v63 = vadd.f32 %v1167_v1, %v733_v32  ;;  %v1171_v40 = vpop.eup %1170  ;;  %vm895_vm1 = vweird.f32 %v1733_v29  ;;  %v781_v53 = vand.u32 2147483648, %v1747_v13  ;;  %v1139_v32 = vld [vmem:[%s1844_s6] ss:$0 sm:$0xff] }
 0x1f3   : > { %v703_v0 = vsel %vm700_vm12, %v702_v31, %v698_v36  ;;  %v892_v34 = vsub.f32 1.0, %v891_v38  ;;  %v771_v25 = vmul.f32 %v1171_v40, %v1747_v13  ;;  %vm896_vm2 = vweird.f32 %v1169_v52  ;;  %v1174_v36 = vld [vmem:[%s1247_s30] sm:$0xff] }
 0x1f4   : > { %v704_v44 = vmul.f32 %v703_v0, %v679_v3  ;;  %v738_v46 = vsel %vm737_vm14, %v1167_v1, %v734_v63  ;;  %vm1775_vm3 = vcmp.eq.f32.partialorder %v899_v18, 8.507059e+37  ;;  %v902_v12 = vor.u32 1.1754944e-38, %v901_v14  ;;  %vm897_vm5 = vmor %vm895_vm1, %vm896_vm2  ;;  %v1175_v63 = vld [vmem:[%s1247_s30 + $0x30] sm:$0xff]  ;;  %v1176_v14 = vld [vmem:[%s1247_s30 + $0x8] sm:$0xff] }
 0x1f5   : > { %v743_v7 = vsel %vm740_vm15, %v742_v39, %v738_v46  ;;  %v893_v33 = vmul.f32 %v1169_v52, %v892_v34  ;;  %v1173_v55 = vpop.eup %1172  ;;  %v772_v9 = vsub.f32 1.0, %v771_v25  ;;  %vm775_vm4 = vweird.f32 %v1747_v13 }
 0x1f6   : > { %v1083_v54 = vclamps-f32 %v704_v44, 1.0  ;;  %v744_v57 = vmul.f32 %v743_v7, %v719_v15  ;;  %v811_v58 = vmul.f32 %v1173_v55, %v1762_v11  ;;  %vm776_vm6 = vweird.f32 %v1171_v40 }
 0x1f7   : > { %v894_v42 = vadd.f32 %v1169_v52, %v893_v33  ;;  %v773_v60 = vmul.f32 %v1171_v40, %v772_v9  ;;  %v779_v51 = vand.u32 2147483647, %v1747_v13  ;;  %v782_v45 = vor.u32 1.1754944e-38, %v781_v53  ;;  %vm777_vm7 = vmor %vm775_vm4, %vm776_vm6 }
 0x1f8   : > { %v909_v17 = vadd.f32 1.0, %v1083_v54  ;;  %v1084_v59 = vclamps-f32 %v744_v57, 1.0  ;;  %v812_v8 = vsub.f32 1.0, %v811_v58  ;;  %v821_v2 = vand.u32 2147483648, %v1762_v11  ;;  %v1177_v54 = vld [vmem:[%s1247_s30 + $0x10] sm:$0xff]  ;;  %v1179_v58 = vld [vmem:[%s1247_s30 + $0x38] sm:$0xff] }
 0x1f9   : > { %v898_v61 = vsel %vm897_vm5, %v1169_v52, %v894_v42  ;;  %v774_v19 = vadd.f32 %v1171_v40, %v773_v60  ;;  %vm816_vm8 = vweird.f32 %v1173_v55  ;;  %v759_v3 = vmul.f32 %v1758_v35, %v1590_v30 }
 0x1fa   : > { %v917_v48 = vmul.f32 %v909_v17, %v1737_v28  ;;  %v910_v16 = vadd.f32 1.0, %v1084_v59  ;;  %v903_v22 = vsel %vm1775_vm3, %v902_v12, %v898_v61  ;;  %v813_v1 = vmul.f32 %v1173_v55, %v812_v8 }
 0x1fb   : > { %v904_v29 = vmul.f32 %v903_v22, %v1752_v20  ;;  %v819_v28 = vand.u32 2147483647, %v1762_v11  ;;  %v778_v27 = vsel %vm777_vm7, %v1171_v40, %v774_v19  ;;  %vm780_vm9 = vcmp.eq.f32.partialorder %v779_v51, 8.507059e+37  ;;  %v1181_v19 = vld [vmem:[%s1247_s30 + $0x28] sm:$0xff] }
 0x1fc   : > { %965 = vmatmul.f32.gmra.mxu1 %v917_v48  ;;  %v918_v6 = vmul.f32 %v910_v16, %v1741_v37  ;;  %v783_v56 = vsel %vm780_vm9, %v782_v45, %v778_v27  ;;  %v814_v47 = vadd.f32 %v1173_v55, %v813_v1  ;;  %vm815_vm10 = vweird.f32 %v1762_v11  ;;  %v1180_v48 = vld [vmem:[%s1247_s30 + $0x20] sm:$0xff] }
 0x1fd   : > { %v1088_v15 = vclamps-f32 %v904_v29, 1.0  ;;  %v578_v20 = vmul.f32 0.5, %v1571_v5  ;;  %v784_v13 = vmul.f32 %v783_v56, %v759_v3  ;;  %vm817_vm11 = vmor %vm815_vm10, %vm816_vm8  ;;  %v822_v21 = vor.u32 1.1754944e-38, %v821_v2 }
 0x1fe   : > { %968 = vmatmul.f32.vlgmr.msra.gmra.mxu2 %v918_v6  ;;  %v799_v4 = vmul.f32 %v1760_v23, %v1612_v62  ;;  %v818_v30 = vsel %vm817_vm11, %v1173_v55, %v814_v47  ;;  %vm820_vm12 = vcmp.eq.f32.partialorder %v819_v28, 8.507059e+37  ;;  %v575_v11 = vmul.f32 0.5, %v1576_v10 }
 0x1ff   : > { %v914_v26 = vadd.f32 1.0, %v1088_v15  ;;  %v1085_v37 = vclamps-f32 %v784_v13, 1.0  ;;  %v823_v35 = vsel %vm820_vm12, %v822_v21, %v818_v30  ;;  %v576_v62 = vmul.f32 0.5, %v1605_v49 }
 0x200   : > { %v824_v43 = vmul.f32 %v823_v35, %v799_v4  ;;  %v984_v38 = vmul.f32 2.0, %v1174_v36  ;;  %v990_v18 = vmul.f32 2.0, %v1175_v63  ;;  %v985_v40 = vmul.f32 2.0, %v1176_v14 }
 0x201   : > { %v922_v41 = vmul.f32 %v914_v26, %v578_v20  ;;  %v911_v24 = vadd.f32 1.0, %v1085_v37  ;;  %v986_v7 = vmul.f32 2.0, %v1177_v54  ;;  %v987_v12 = vmul.f32 2.0, %v1178_v50 }
 0x202   : > { %v1086_v5 = vclamps-f32 %v824_v43, 1.0  ;;  %v991_v59 = vmul.f32 2.0, %v1179_v58  ;;  %v988_v61 = vmul.f32 2.0, %v1180_v48  ;;  %v989_v2 = vmul.f32 2.0, %v1181_v19 }
 0x203   : > { %980 = vmatmul.f32.gmra.mxu3 %v922_v41  ;;  %v919_v52 = vmul.f32 %v911_v24, %v575_v11 }
 0x204   : > { %v912_v31 = vadd.f32 1.0, %v1086_v5 }
 0x206   : > { %971 = vmatmul.f32.gmra.mxu2 %v919_v52  ;;  %v920_v23 = vmul.f32 %v912_v31, %v576_v62 }
 0x20e   : > { %974 = vmatmul.f32.gmra.mxu2 %v920_v23 }
 0x24f   : > { %v960_v0 = vpop.f32.mrf.mxu1 }
 0x250   : > { %v961_v10 = vadd.f32 %v1139_v32, %v960_v0 }
 0x252   : > { %v992_v49 = vadd.f32 %v984_v38, %v961_v10 }
 0x254   : > { %1000 = vst.msk [vmem:[%s1810_s20] sm:$0xff] %vm290_vm0, %v992_v49 }
 0x266   : > { %v963_v44 = vpop.f32.mrf.mxu1 }
 0x267   : > { %v964_v34 = vadd.f32 %v1139_v32, %v963_v44 }
 0x269   : > { %v978_v39 = vpop.f32.mrf.mxu3  ;;  %v993_v25 = vadd.f32 %v985_v40, %v964_v34 }
 0x26a   : > { %v979_v46 = vadd.f32 %v1139_v32, %v978_v39 }
 0x26b   : > { %1001 = vst.msk [vmem:[%s1810_s20 + $0x8] sm:$0xff] %vm290_vm0, %v993_v25 }
 0x26c   : > { %v998_v53 = vadd.f32 %v990_v18, %v979_v46 }
 0x26e   : > { %1006 = vst.msk [vmem:[%s1810_s20 + $0x30] sm:$0xff] %vm290_vm0, %v998_v53 }
 0x279   : > { %v966_v33 = vpop.f32.mrf.mxu1 }
 0x27a   : > { %v967_v55 = vadd.f32 %v1139_v32, %v966_v33 }
 0x27c   : > { %v994_v57 = vadd.f32 %v986_v7, %v967_v55 }
 0x27e   : > { %1002 = vst.msk [vmem:[%s1810_s20 + $0x10] sm:$0xff] %vm290_vm0, %v994_v57 }
 0x281   : > { %v969_v9 = vpop.f32.mrf.mxu2 }
 0x282   : > { %v970_v17 = vadd.f32 %v1139_v32, %v969_v9 }
 0x284   : > { %v995_v42 = vadd.f32 %v987_v12, %v970_v17 }
 0x286   : > { %1003 = vst.msk [vmem:[%s1810_s20 + $0x18] sm:$0xff] %vm290_vm0, %v995_v42  ;;  %v981_v60 = vpop.f32.mrf.mxu3 }
 0x287   : > { %v982_v51 = vadd.f32 %v1139_v32, %v981_v60 }
 0x289   : > { %v999_v45 = vadd.f32 %v991_v59, %v982_v51  ;;  %v972_v8 = vpop.f32.mrf.mxu2 }
 0x28a   : > { %v973_v16 = vadd.f32 %v1139_v32, %v972_v8 }
 0x28b   : > { %1007 = vst.msk [vmem:[%s1810_s20 + $0x38] sm:$0xff] %vm290_vm0, %v999_v45 }
 0x28c   : > { %v996_v22 = vadd.f32 %v988_v61, %v973_v16 }
 0x28e   : > { %1004 = vst.msk [vmem:[%s1810_s20 + $0x20] sm:$0xff] %vm290_vm0, %v996_v22 }
 0x291   : > { %v975_v29 = vpop.f32.mrf.mxu2 }
 0x292   : > { %v976_v1 = vadd.f32 %v1139_v32, %v975_v29 }
 0x294   : > { %v997_v28 = vadd.f32 %v989_v2, %v976_v1 }
 0x296   : > { %1005 = vst.msk [vmem:[%s1810_s20 + $0x28] sm:$0xff] %vm290_vm0, %v997_v28 }
 0x297 PF: > { %s17_s24 = sadd.s32 1, %s1188_s24  }
 0x298   : > { %p14_p4 = scmp.ge.s32.totalorder %s17_s24, 4  }
 0x29a   :  { %16 = sbr.rel (!%p14_p4) target bundleno = 1 (0x1), region = 78 }

// kernel: single_swin_block.2
= control target key start
LH: loop header
LB: loop body
LE: loop exit
PB: predicated region body
PF: predicated region fallthrough
CT: control target
= control target key end

     0   :  { %s3381_s27 = smov 0   ;;  %s4376_s0 = inlined_call_operand.vmem [shape: f32[8,16,32], index: 0, kind: input, shape index: {}]   ;;  %s4377_s1 = inlined_call_operand.vmem [shape: f32[4,4,16,16], index: 1, kind: input, shape index: {}]   ;;  %s4378_s2 = inlined_call_operand.vmem [shape: f32[1,32], index: 2, kind: input, shape index: {}]   ;;  %s4379_s3 = inlined_call_operand.vmem [shape: f32[1,32], index: 3, kind: input, shape index: {}]   ;;  %s4380_s4 = inlined_call_operand.vmem [shape: f32[32,96], index: 4, kind: input, shape index: {}]   ;;  %s4381_s5 = inlined_call_operand.vmem [shape: f32[1,96], index: 5, kind: input, shape index: {}]   ;;  %s4382_s6 = inlined_call_operand.vmem [shape: f32[32,32], index: 6, kind: input, shape index: {}]   ;;  %s4383_s7 = inlined_call_operand.vmem [shape: f32[1,32], index: 7, kind: input, shape index: {}]   ;;  %s4384_s8 = inlined_call_operand.vmem [shape: f32[8,16,32], index: 8, kind: output, shape index: {}]  }
   0x1 LB: > { %s2913_s28 = sadd.s32 4294967295, %s3319_s27   ;;  %p2917_p0 = scmp.ge.s32.totalorder %s3319_s27, 1  ;;  %s3319_s27 = sphi %s3381_s27, %s18_s27  }
   0x2   : > { %p264_p1 = scmp.lt.s32.totalorder %s3319_s27, 3 }
   0x4   : > { %p265_p2 = pnand %p2917_p0, %p264_p1 }
   0x5   : > { %s2918_s29 = sshll.u32 (!%p265_p2), %s2913_s28, 2  ;;  %s3322_s26 = smov (!%p265_p2), 96  }
   0x6   : > { %268 = sbr.rel (%p265_p2) target bundleno = 2851 (0xb23), region = 52  ;;  %p301_p3 = scmp.lt.s32.totalorder (!%p265_p2), %s2918_s29, 7 }
   0x7   : > { %s3323_s21 = smov (!%p265_p2), 88   ;;  %s3324_s24 = smov (!%p265_p2), 120  }
   0x8   : > { %s3325_s25 = smov (!%p265_p2), 64   ;;  %s3326_s9 = smov (!%p265_p2), 80  }
   0x9   : > { %s3327_s10 = smov (!%p265_p2), 56   ;;  %s3328_s12 = smov (!%p265_p2), 112  }
   0xa   : > { %s3330_s13 = smov (!%p265_p2), 72   ;;  %s3333_s14 = smov (!%p265_p2), 16  }
   0xb   : > { %s4388_s29 = smov (!%p301_p3, %s2918_s29), 7  ;;  %vm322_vm0 = vcmask 261120   ;;  %v3321_v16 = vmov 32.0   ;;  %v533_v63 = vld [vmem:[%s4380_s4 + $0x18] sm:$0xff] }
   0xc   : > { %s3038_s30 = sshll.u32 %s4388_s29, 4  ;;  %3159 = vrcp.f32 %v3321_v16  ;;  %3040 = vmatpush.msra.mxu1 %v533_v63  ;;  %574 = vmatpush.msra.mxu0 %v533_v63 }
   0xd   : > { %s3397_s11 = scalar_lea.vmem %s4376_s0, %s3038_s30  ;;  %3041 = vmatpush.msra.mxu2 %v533_v63  ;;  %3042 = vmatpush.msra.mxu3 %v533_v63 }
   0xe   : > { %v320_v0 = vld [vmem:[%s3397_s11 + $0x30] sm:$0xff]  ;;  %v317_v1 = vld [vmem:[%s3397_s11 + $0x18] sm:$0xff]  ;;  %v318_v6 = vld [vmem:[%s3397_s11 + $0x20] sm:$0xff] }
   0xf   : > { %v316_v2 = vld [vmem:[%s3397_s11 + $0x10] sm:$0xff]  ;;  %v341_v3 = vsel %vm322_vm0, %v320_v0, 0.0  ;;  %v332_v4 = vsel %vm322_vm0, %v317_v1, 0.0  ;;  %v315_v7 = vld [vmem:[%s3397_s11 + $0x8] sm:$0xff]  ;;  %v314_v8 = vld [vmem:[%s3397_s11] sm:$0xff]  ;;  %v335_v9 = vsel %vm322_vm0, %v318_v6, 0.0 }
  0x10   : > { %v329_v5 = vsel %vm322_vm0, %v316_v2, 0.0  ;;  %342 = vadd.xlane.f32.xlu2 %v341_v3  ;;  %333 = vadd.xlane.f32.xlu1 %v332_v4  ;;  %v326_v10 = vsel %vm322_vm0, %v315_v7, 0.0  ;;  %v323_v11 = vsel %vm322_vm0, %v314_v8, 0.0  ;;  %v319_v12 = vld [vmem:[%s3397_s11 + $0x28] sm:$0xff]  ;;  %v321_v13 = vld [vmem:[%s3397_s11 + $0x38] sm:$0xff] }
  0x11   : > { %330 = vadd.xlane.f32.xlu0 %v329_v5  ;;  %v338_v14 = vsel %vm322_vm0, %v319_v12, 0.0  ;;  %v344_v15 = vsel %vm322_vm0, %v321_v13, 0.0 }
  0x12   : > { %v3160_v17 = vpop.eup %3159 }
  0x13   : > { %v348_v18 = vmul.f32 32.0, %v3160_v17  ;;  %vm352_vm1 = vweird.f32 %v3160_v17 }
  0x15   : > { %v349_v19 = vsub.f32 1.0, %v348_v18 }
  0x17   : > { %v350_v20 = vmul.f32 %v3160_v17, %v349_v19 }
  0x18   : > { %336 = vadd.xlane.f32.xlu2 %v335_v9  ;;  %327 = vadd.xlane.f32.xlu1 %v326_v10 }
  0x19   : > { %324 = vadd.xlane.f32.xlu0 %v323_v11  ;;  %v351_v21 = vadd.f32 %v3160_v17, %v350_v20 }
  0x1b   : > { %v3415_v22 = vsel %vm352_vm1, %v3160_v17, %v351_v21 }
  0x20   : > { %339 = vadd.xlane.f32.xlu1 %v338_v14 }
  0x21   : > { %345 = vadd.xlane.f32.xlu0 %v344_v15 }
  0x83   : > { %v343_v23 = vpop.xlane.xlu2 %342  ;;  %v334_v24 = vpop.xlane.xlu1 %333 }
  0x84   : > { %v357_v25 = vmul.f32 %v3415_v22, %v334_v24  ;;  %v331_v26 = vpop.xlane.xlu0 %330  ;;  %v360_v42 = vmul.f32 %v3415_v22, %v343_v23 }
  0x85   : > { %v356_v27 = vmul.f32 %v3415_v22, %v331_v26 }
  0x86   : > { %v3419_v28 = vsub.f32 %v317_v1, %v357_v25  ;;  %v3447_v49 = vsub.f32 %v320_v0, %v360_v42  ;;  %v532_v0 = vld [vmem:[%s4380_s4 + $0x10] sm:$0xff]  ;;  %v531_v1 = vld [vmem:[%s4380_s4 + $0x8] sm:$0xff] }
  0x87   : > { %v3421_v29 = vsub.f32 %v316_v2, %v356_v27  ;;  %3043 = vmatpush.msra.mxu1 %v532_v0  ;;  %575 = vmatpush.msra.mxu0 %v532_v0  ;;  %v530_v2 = vld [vmem:[%s4380_s4] sm:$0xff] }
  0x88   : > { %v373_v30 = vmul.f32 %v3419_v28, %v3419_v28  ;;  %v376_v56 = vmul.f32 %v3447_v49, %v3447_v49  ;;  %3044 = vmatpush.msra.mxu2 %v532_v0  ;;  %3045 = vmatpush.msra.mxu3 %v532_v0 }
  0x89   : > { %v372_v31 = vmul.f32 %v3421_v29, %v3421_v29  ;;  %3046 = vmatpush.msra.mxu1 %v531_v1  ;;  %576 = vmatpush.msra.mxu0 %v531_v1 }
  0x8a   : > { %v387_v32 = vsel %vm322_vm0, %v373_v30, 0.0  ;;  %v396_v59 = vsel %vm322_vm0, %v376_v56, 0.0  ;;  %3047 = vmatpush.msra.mxu2 %v531_v1  ;;  %3048 = vmatpush.msra.mxu3 %v531_v1 }
  0x8b   : > { %v337_v33 = vpop.xlane.xlu2 %336  ;;  %v384_v34 = vsel %vm322_vm0, %v372_v31, 0.0  ;;  %388 = vadd.xlane.f32.xlu1 %v387_v32  ;;  %v328_v35 = vpop.xlane.xlu1 %327  ;;  %3049 = vmatpush.msra.mxu1 %v530_v2 }
  0x8c   : > { %v358_v36 = vmul.f32 %v3415_v22, %v337_v33  ;;  %385 = vadd.xlane.f32.xlu2 %v384_v34  ;;  %v355_v37 = vmul.f32 %v3415_v22, %v328_v35  ;;  %v325_v38 = vpop.xlane.xlu0 %324  ;;  %577 = vmatpush.msra.mxu0 %v530_v2 }
  0x8d   : > { %v354_v39 = vmul.f32 %v3415_v22, %v325_v38  ;;  %3050 = vmatpush.msra.mxu2 %v530_v2  ;;  %3051 = vmatpush.msra.mxu3 %v530_v2 }
  0x8e   : > { %v3432_v40 = vsub.f32 %v318_v6, %v358_v36  ;;  %v3434_v41 = vsub.f32 %v315_v7, %v355_v37 }
  0x8f   : > { %v3437_v43 = vsub.f32 %v314_v8, %v354_v39 }
  0x90   : > { %v374_v44 = vmul.f32 %v3432_v40, %v3432_v40  ;;  %v371_v45 = vmul.f32 %v3434_v41, %v3434_v41 }
  0x91   : > { %v370_v46 = vmul.f32 %v3437_v43, %v3437_v43 }
  0x92   : > { %v390_v47 = vsel %vm322_vm0, %v374_v44, 0.0  ;;  %v381_v48 = vsel %vm322_vm0, %v371_v45, 0.0 }
  0x93   : > { %391 = vadd.xlane.f32.xlu1 %v390_v47  ;;  %v378_v50 = vsel %vm322_vm0, %v370_v46, 0.0  ;;  %v340_v51 = vpop.xlane.xlu1 %339 }
  0x94   : > { %382 = vadd.xlane.f32.xlu2 %v381_v48  ;;  %379 = vadd.xlane.f32.xlu0 %v378_v50  ;;  %v346_v52 = vpop.xlane.xlu0 %345  ;;  %v359_v54 = vmul.f32 %v3415_v22, %v340_v51  ;;  %v3508_v51 = vld [vmem:[%s4378_s2] ss:$0 sm:$0xff] }
  0x95   : > { %v361_v53 = vmul.f32 %v3415_v22, %v346_v52 }
  0x96   : > { %v3456_v57 = vsub.f32 %v319_v12, %v359_v54 }
  0x97   : > { %v3452_v55 = vsub.f32 %v321_v13, %v361_v53 }
  0x98   : > { %v375_v61 = vmul.f32 %v3456_v57, %v3456_v57 }
  0x99   : > { %v377_v58 = vmul.f32 %v3452_v55, %v3452_v55 }
  0x9a   : > { %v393_v62 = vsel %vm322_vm0, %v375_v61, 0.0 }
  0x9b   : > { %v399_v60 = vsel %vm322_vm0, %v377_v58, 0.0 }
  0x9c   : > { %397 = vadd.xlane.f32.xlu0 %v396_v59  ;;  %400 = vadd.xlane.f32.xlu2 %v399_v60 }
  0xa4   : > { %394 = vadd.xlane.f32.xlu0 %v393_v62  ;;  %v3524_v62 = vld [vmem:[%s4379_s3] ss:$0 sm:$0xff] }
  0xfe   : > { %v389_v3 = vpop.xlane.xlu1 %388 }
  0xff   : > { %v386_v4 = vpop.xlane.xlu2 %385  ;;  %v405_v5 = vmul.f32 %v389_v3, %v3415_v22 }
 0x100   : > { %v404_v6 = vmul.f32 %v386_v4, %v3415_v22 }
 0x101   : > { %v413_v7 = vadd.f32 1e-05, %v405_v5 }
 0x102   : > { %v412_v8 = vadd.f32 1e-05, %v404_v6 }
 0x103   : > { %3161 = vrsqrt.f32 %v413_v7  ;;  %vm454_vm2 = vweird.f32 %v413_v7 }
 0x104   : > { %3163 = vrsqrt.f32 %v412_v8  ;;  %vm444_vm5 = vweird.f32 %v412_v8 }
 0x106   : > { %v392_v9 = vpop.xlane.xlu1 %391 }
 0x107   : > { %v383_v10 = vpop.xlane.xlu2 %382  ;;  %v406_v11 = vmul.f32 %v392_v9, %v3415_v22  ;;  %v380_v12 = vpop.xlane.xlu0 %379 }
 0x108   : > { %v403_v13 = vmul.f32 %v383_v10, %v3415_v22  ;;  %v402_v14 = vmul.f32 %v380_v12, %v3415_v22 }
 0x109   : > { %v3162_v15 = vpop.eup %3161  ;;  %v3482_v16 = vadd.f32 1e-05, %v406_v11 }
 0x10a   : > { %v3164_v17 = vpop.eup %3163  ;;  %v449_v18 = vmul.f32 %v3162_v15, %v413_v7  ;;  %v3484_v19 = vadd.f32 1e-05, %v403_v13  ;;  %v3486_v20 = vadd.f32 1e-05, %v402_v14  ;;  %vm455_vm4 = vweird.f32 %v3162_v15 }
 0x10b   : > { %v439_v21 = vmul.f32 %v3164_v17, %v412_v8  ;;  %3165 = vrsqrt.f32 %v3482_v16  ;;  %vm445_vm3 = vweird.f32 %v3164_v17  ;;  %vm3512_vm7 = vmor %vm454_vm2, %vm455_vm4  ;;  %vm464_vm8 = vweird.f32 %v3482_v16 }
 0x10c   : > { %v450_v23 = vmul.f32 %v3162_v15, %v449_v18  ;;  %3167 = vrsqrt.f32 %v3484_v19  ;;  %vm446_vm6 = vmor %vm444_vm5, %vm445_vm3  ;;  %vm434_vm11 = vweird.f32 %v3484_v19  ;;  %vm424_vm14 = vweird.f32 %v3486_v20 }
 0x10d   : > { %v440_v24 = vmul.f32 %v3164_v17, %v439_v21  ;;  %3169 = vrsqrt.f32 %v3486_v20 }
 0x10e   : > { %v451_v25 = vmul.f32 0.5, %v450_v23 }
 0x10f   : > { %v441_v26 = vmul.f32 0.5, %v440_v24  ;;  %v401_v27 = vpop.xlane.xlu2 %400  ;;  %v398_v30 = vpop.xlane.xlu0 %397 }
 0x110   : > { %v452_v31 = vsub.f32 1.5, %v451_v25  ;;  %v409_v32 = vmul.f32 %v401_v27, %v3415_v22  ;;  %v408_v33 = vmul.f32 %v398_v30, %v3415_v22 }
 0x111   : > { %v3166_v34 = vpop.eup %3165  ;;  %v442_v35 = vsub.f32 1.5, %v441_v26 }
 0x112   : > { %v3493_v36 = vpop.eup %3167  ;;  %v459_v37 = vmul.f32 %v3166_v34, %v3482_v16  ;;  %v3496_v38 = vadd.f32 1e-05, %v409_v32  ;;  %v453_v44 = vmul.f32 %v3162_v15, %v452_v31  ;;  %v3500_v46 = vadd.f32 1e-05, %v408_v33 }
 0x113   : > { %v3170_v39 = vpop.eup %3169  ;;  %v443_v42 = vmul.f32 %v3164_v17, %v442_v35  ;;  %v429_v45 = vmul.f32 %v3493_v36, %v3484_v19  ;;  %vm465_vm9 = vweird.f32 %v3166_v34  ;;  %vm435_vm12 = vweird.f32 %v3493_v36 }
 0x114   : > { %v460_v47 = vmul.f32 %v3166_v34, %v459_v37  ;;  %v419_v48 = vmul.f32 %v3170_v39, %v3486_v20  ;;  %3171 = vrsqrt.f32 %v3496_v38  ;;  %v457_v58 = vsel %vm3512_vm7, %v3162_v15, %v453_v44  ;;  %vm466_vm13 = vmor %vm464_vm8, %vm465_vm9 }
 0x115   : > { %v430_v50 = vmul.f32 %v3493_v36, %v429_v45  ;;  %3173 = vrsqrt.f32 %v3500_v46  ;;  %v447_v56 = vsel %vm446_vm6, %v3164_v17, %v443_v42  ;;  %vm425_vm10 = vweird.f32 %v3170_v39  ;;  %vm436_vm1 = vmor %vm434_vm11, %vm435_vm12 }
 0x116   : > { %v461_v53 = vmul.f32 0.5, %v460_v47  ;;  %v420_v54 = vmul.f32 %v3170_v39, %v419_v48  ;;  %v500_v61 = vmul.f32 %v447_v56, %v3421_v29  ;;  %v501_v7 = vmul.f32 %v457_v58, %v3419_v28  ;;  %vm426_vm15 = vmor %vm424_vm14, %vm425_vm10 }
 0x117   : > { %v431_v59 = vmul.f32 0.5, %v430_v50  ;;  %v395_v60 = vpop.xlane.xlu0 %394  ;;  %vm494_vm3 = vweird.f32 %v3496_v38  ;;  %vm484_vm5 = vweird.f32 %v3500_v46  ;;  %vm641_vm11 = vcmask 64512  }
 0x118   : > { %v462_v63 = vsub.f32 1.5, %v461_v53  ;;  %v421_v0 = vmul.f32 0.5, %v420_v54  ;;  %v407_v1 = vmul.f32 %v395_v60, %v3415_v22  ;;  %v512_v3 = vmul.f32 %v3508_v51, %v500_v61 }
 0x119   : > { %v432_v2 = vsub.f32 1.5, %v431_v59  ;;  %v513_v15 = vmul.f32 %v3508_v51, %v501_v7  ;;  %vm800_vm12 = vcmask 130048  }
 0x11a   : > { %v463_v4 = vmul.f32 %v3166_v34, %v462_v63  ;;  %v422_v5 = vsub.f32 1.5, %v421_v0  ;;  %v415_v6 = vadd.f32 1e-05, %v407_v1  ;;  %v3172_v29 = vpop.eup %3171  ;;  %v524_v22 = vadd.f32 %v3524_v62, %v512_v3 }
 0x11b   : > { %v3174_v8 = vpop.eup %3173  ;;  %v433_v9 = vmul.f32 %v3493_v36, %v432_v2  ;;  %v489_v12 = vmul.f32 %v3172_v29, %v3496_v38  ;;  %v525_v27 = vadd.f32 %v3524_v62, %v513_v15  ;;  %vm495_vm4 = vweird.f32 %v3172_v29 }
 0x11c   : > { %v467_v10 = vsel %vm466_vm13, %v3166_v34, %v463_v4  ;;  %v423_v11 = vmul.f32 %v3170_v39, %v422_v5  ;;  %v479_v28 = vmul.f32 %v3174_v8, %v3500_v46  ;;  %3175 = vrsqrt.f32 %v415_v6  ;;  %2926 = vmatmul.msk.f32.vlgmr.msra.gmra.mxu1 %vm322_vm0, %v524_v22  ;;  %vm496_vm7 = vmor %vm494_vm3, %vm495_vm4 }
 0x11d   : > { %v490_v13 = vmul.f32 %v3172_v29, %v489_v12  ;;  %v502_v16 = vmul.f32 %v467_v10, %v3432_v40  ;;  %v437_v23 = vsel %vm436_vm1, %v3493_v36, %v433_v9  ;;  %vm485_vm2 = vweird.f32 %v3174_v8 }
 0x11e   : > { %v427_v14 = vsel %vm426_vm15, %v3170_v39, %v423_v11  ;;  %v480_v17 = vmul.f32 %v3174_v8, %v479_v28  ;;  %vm486_vm6 = vmor %vm484_vm5, %vm485_vm2  ;;  %vm474_vm9 = vweird.f32 %v415_v6 }
 0x11f   : > { %v498_v18 = vmul.f32 %v427_v14, %v3437_v43  ;;  %v491_v20 = vmul.f32 0.5, %v490_v13  ;;  %v514_v21 = vmul.f32 %v3508_v51, %v502_v16  ;;  %v499_v43 = vmul.f32 %v437_v23, %v3434_v41  ;;  %v603_v14 = vld [vmem:[%s4377_s1] sm:$0xff] }
 0x120   : > { %v481_v24 = vmul.f32 0.5, %v480_v17 }
 0x121   : > { %v510_v25 = vmul.f32 %v3508_v51, %v498_v18  ;;  %v492_v26 = vsub.f32 1.5, %v491_v20  ;;  %v526_v40 = vadd.f32 %v3524_v62, %v514_v21  ;;  %v511_v36 = vmul.f32 %v3508_v51, %v499_v43  ;;  %v604_v20 = vld [vmem:[%s4377_s1 + $0x8] sm:$0xff] }
 0x122   : > { %v3176_v30 = vpop.eup %3175  ;;  %v482_v31 = vsub.f32 1.5, %v481_v24 }
 0x123   : > { %v522_v19 = vadd.f32 %v3524_v62, %v510_v25  ;;  %v469_v32 = vmul.f32 %v3176_v30, %v415_v6  ;;  %2928 = vmatmul.msk.f32.vlgmr.msra.gmra.mxu2 %vm322_vm0, %v526_v40  ;;  %v493_v33 = vmul.f32 %v3172_v29, %v492_v26  ;;  %vm475_vm8 = vweird.f32 %v3176_v30  ;;  %v611_v26 = vld [vmem:[%s4377_s1 + $0x40] sm:$0xff] }
 0x124   : > { %v483_v34 = vmul.f32 %v3174_v8, %v482_v31  ;;  %2927 = vmatmul.msk.f32.gmra.mxu1 %vm322_vm0, %v525_v27  ;;  %v523_v45 = vadd.f32 %v3524_v62, %v511_v36  ;;  %vm476_vm10 = vmor %vm474_vm9, %vm475_vm8 }
 0x125   : > { %2924 = vmatmul.msk.f32.vlgmr.msra.gmra.mxu0 %vm322_vm0, %v522_v19  ;;  %v470_v35 = vmul.f32 %v3176_v30, %v469_v32  ;;  %v497_v39 = vsel %vm496_vm7, %v3172_v29, %v493_v33  ;;  %v612_v19 = vld [vmem:[%s4377_s1 + $0x48] sm:$0xff] }
 0x126   : > { %v487_v37 = vsel %vm486_vm6, %v3174_v8, %v483_v34  ;;  %v505_v48 = vmul.f32 %v497_v39, %v3452_v55  ;;  %v3157_v55 = vld [vmem:[%s4381_s5] ss:$0 sm:$0xff] }
 0x127   : > { %v471_v41 = vmul.f32 0.5, %v470_v35  ;;  %v504_v38 = vmul.f32 %v487_v37, %v3447_v49  ;;  %v627_v35 = vld [vmem:[%s4377_s1 + $0xc0] sm:$0xff] }
 0x128   : > { %v517_v52 = vmul.f32 %v3508_v51, %v505_v48  ;;  %v619_v39 = vld [vmem:[%s4377_s1 + $0x80] sm:$0xff] }
 0x129   : > { %v472_v42 = vsub.f32 1.5, %v471_v41  ;;  %v516_v44 = vmul.f32 %v3508_v51, %v504_v38 }
 0x12a   : > { %v529_v56 = vadd.f32 %v3524_v62, %v517_v52 }
 0x12b   : > { %v473_v46 = vmul.f32 %v3176_v30, %v472_v42  ;;  %v528_v47 = vadd.f32 %v3524_v62, %v516_v44 }
 0x12d   : > { %2925 = vmatmul.msk.f32.gmra.mxu0 %vm322_vm0, %v523_v45  ;;  %2930 = vmatmul.msk.f32.vlgmr.msra.gmra.mxu3 %vm322_vm0, %v528_v47  ;;  %v477_v50 = vsel %vm476_vm10, %v3176_v30, %v473_v46  ;;  %v620_v47 = vld [vmem:[%s4377_s1 + $0x88] sm:$0xff] }
 0x12e   : > { %v503_v49 = vmul.f32 %v477_v50, %v3456_v57 }
 0x130   : > { %v515_v53 = vmul.f32 %v3508_v51, %v503_v49 }
 0x132   : > { %v527_v54 = vadd.f32 %v3524_v62, %v515_v53 }
 0x134   : > { %2929 = vmatmul.msk.f32.gmra.mxu2 %vm322_vm0, %v527_v54 }
 0x135   : > { %2931 = vmatmul.msk.f32.gmra.mxu3 %vm322_vm0, %v529_v56 }
 0x199   : > { %v585_v58 = vpop.f32.mrf.mxu1 }
 0x19a   : > { %v3577_v59 = vadd.f32 %v3157_v55, %v585_v58 }
 0x19c   : > { %675 = vrot.lane.b32.xlu0 %v3577_v59, %s3322_s26 }
 0x1a1   : > { %v588_v51 = vpop.f32.mrf.mxu1 }
 0x1a2   : > { %v579_v57 = vpop.f32.mrf.mxu0  ;;  %v3580_v60 = vadd.f32 %v3157_v55, %v588_v51 }
 0x1a3   : > { %v3586_v1 = vadd.f32 %v3157_v55, %v579_v57  ;;  %v628_v57 = vld [vmem:[%s4377_s1 + $0xc8] sm:$0xff] }
 0x1a4   : > { %677 = vrot.lane.b32.xlu1 %v3580_v60, %s3322_s26  ;;  %v3673_v52 = vpack.i.bf16 %v3577_v59, %v3580_v60 }
 0x1a6   : > { %v591_v63 = vpop.f32.mrf.mxu2 }
 0x1a7   : > { %v3598_v7 = vadd.f32 %v3157_v55, %v591_v63 }
 0x1aa   : > { %v582_v61 = vpop.f32.mrf.mxu0 }
 0x1ab   : > { %v3583_v62 = vadd.f32 %v3157_v55, %v582_v61 }
 0x1ad   : > { %639 = vrot.lane.b32.xlu2 %v3583_v62, %s3322_s26  ;;  %v3680_v53 = vpack.i.bf16 %v3586_v1, %v3583_v62 }
 0x1b0   : > { %v597_v0 = vpop.f32.mrf.mxu3 }
 0x1b1   : > { %v3593_v6 = vadd.f32 %v3157_v55, %v597_v0 }
 0x1b5   : > { %637 = vrot.lane.b32.xlu2 %v3586_v1, %s3322_s26 }
 0x1b7   : > { %v594_v2 = vpop.f32.mrf.mxu2 }
 0x1b8   : > { %v3589_v3 = vadd.f32 %v3157_v55, %v594_v2  ;;  %v600_v4 = vpop.f32.mrf.mxu3 }
 0x1b9   : > { %v3591_v5 = vadd.f32 %v3157_v55, %v600_v4 }
 0x1ba   : > { %714 = vrot.lane.b32.xlu0 %v3589_v3, %s3322_s26  ;;  %v3692_v56 = vpack.i.bf16 %v3598_v7, %v3589_v3 }
 0x1bb   : > { %751 = vrot.lane.b32.xlu1 %v3591_v5, %s3322_s26  ;;  %v3684_v54 = vpack.i.bf16 %v3593_v6, %v3591_v5 }
 0x1bd   : > { %749 = vrot.lane.b32.xlu2 %v3593_v6, %s3322_s26 }
 0x1c3   : > { %712 = vrot.lane.b32.xlu1 %v3598_v7, %s3322_s26  ;;  %s4332_s26 = scalar_lea.vmem %s4384_s8, %s3038_s30 }
 0x207   : > { %v640_v29 = vpop.permute.xlu2 %639 }
 0x208   : > { %2932 = vmatpush.xpose.msk.msrb.mxu1 %vm641_vm11, %v640_v29 }
 0x20e   : > { %v676_v9 = vpop.permute.xlu0 %675 }
 0x20f   : > { %v638_v22 = vpop.permute.xlu2 %637 }
 0x210   : > { %2933 = vmatpush.xpose.msk.msrb.mxu1 %vm641_vm11, %v638_v22 }
 0x213   : > { %2934 = vmatmul.msk.f32.vlgmr.msrb.gmra.mxu1 %vm641_vm11, %v3586_v1 }
 0x216   : > { %v678_v8 = vpop.permute.xlu1 %677 }
 0x217   : > { %2936 = vmatpush.xpose.msk.msrb.mxu2 %vm641_vm11, %v678_v8  ;;  %v750_v12 = vpop.permute.xlu2 %749 }
 0x21b   : > { %2935 = vmatmul.msk.f32.gmra.mxu1 %vm641_vm11, %v3583_v62  ;;  %2937 = vmatpush.xpose.msk.msrb.mxu2 %vm641_vm11, %v676_v9 }
 0x21e   : > { %2938 = vmatmul.msk.f32.vlgmr.msrb.gmra.mxu2 %vm641_vm11, %v3577_v59 }
 0x226   : > { %2939 = vmatmul.msk.f32.gmra.mxu2 %vm641_vm11, %v3580_v60 }
 0x22c   : > { %v715_v10 = vpop.permute.xlu0 %714 }
 0x22d   : > { %v752_v11 = vpop.permute.xlu1 %751  ;;  %2940 = vmatpush.xpose.msk.msrb.mxu3 %vm641_vm11, %v715_v10 }
 0x22e   : > { %2944 = vmatpush.xpose.msk.msra.mxu1 %vm641_vm11, %v752_v11 }
 0x232   : > { %2945 = vmatpush.xpose.msk.msra.mxu1 %vm641_vm11, %v750_v12 }
 0x235   : > { %v713_v28 = vpop.permute.xlu1 %712  ;;  %2946 = vmatmul.msk.f32.vlgmr.msra.gmra.mxu1 %vm641_vm11, %v3593_v6 }
 0x236   : > { %2941 = vmatpush.xpose.msk.msrb.mxu3 %vm641_vm11, %v713_v28 }
 0x239   : > { %2942 = vmatmul.msk.f32.vlgmr.msrb.gmra.mxu3 %vm641_vm11, %v3598_v7 }
 0x23d   : > { %2947 = vmatmul.msk.f32.gmra.mxu1 %vm641_vm11, %v3591_v5 }
 0x241   : > { %2943 = vmatmul.msk.f32.gmra.mxu3 %vm641_vm11, %v3589_v3 }
 0x290   : > { %v667_v13 = vpop.f32.mrf.mxu1 }
 0x291   : > { %v784_v15 = vmul.f32 0.0625, %v667_v13 }
 0x293   : > { %v3628_v16 = vadd.f32 %v784_v15, %v603_v14 }
 0x295   : > { %v801_v17 = vsel %vm800_vm12, %v3628_v16, -inf }
 0x296   : > { %802 = vmax.xlane.f32.xlu0 %v801_v17 }
 0x298   : > { %v670_v18 = vpop.f32.mrf.mxu1 }
 0x299   : > { %v785_v21 = vmul.f32 0.0625, %v670_v18 }
 0x29b   : > { %v793_v23 = vadd.f32 %v785_v21, %v604_v20 }
 0x29d   : > { %v804_v24 = vsel %vm800_vm12, %v793_v23, -inf }
 0x29e   : > { %805 = vmax.xlane.f32.xlu1 %v804_v24 }
 0x2a1   : > { %v704_v25 = vpop.f32.mrf.mxu2 }
 0x2a2   : > { %v786_v27 = vmul.f32 0.0625, %v704_v25 }
 0x2a4   : > { %v3639_v40 = vadd.f32 %v786_v27, %v611_v26 }
 0x2a6   : > { %v807_v30 = vsel %vm800_vm12, %v3639_v40, -inf }
 0x2a7   : > { %808 = vmax.xlane.f32.xlu2 %v807_v30 }
 0x2a9   : > { %v707_v31 = vpop.f32.mrf.mxu2 }
 0x2aa   : > { %v787_v43 = vmul.f32 0.0625, %v707_v31 }
 0x2ac   : > { %v3646_v32 = vadd.f32 %v787_v43, %v612_v19 }
 0x2ae   : > { %v810_v33 = vsel %vm800_vm12, %v3646_v32, -inf }
 0x2af   : > { %811 = vmax.xlane.f32.xlu0 %v810_v33 }
 0x2b2   : > { %v778_v34 = vpop.f32.mrf.mxu1 }
 0x2b3   : > { %v790_v36 = vmul.f32 0.0625, %v778_v34 }
 0x2b5   : > { %v3653_v37 = vadd.f32 %v790_v36, %v627_v35 }
 0x2b7   : > { %v819_v41 = vsel %vm800_vm12, %v3653_v37, -inf }
 0x2b8   : > { %820 = vmax.xlane.f32.xlu2 %v819_v41 }
 0x2ba   : > { %v781_v55 = vpop.f32.mrf.mxu1 }
 0x2bb   : > { %v791_v58 = vmul.f32 0.0625, %v781_v55 }
 0x2bc   : > { %v741_v38 = vpop.f32.mrf.mxu3 }
 0x2bd   : > { %v788_v42 = vmul.f32 0.0625, %v741_v38  ;;  %v3700_v51 = vadd.f32 %v791_v58, %v628_v57 }
 0x2bf   : > { %v796_v44 = vadd.f32 %v788_v42, %v619_v39  ;;  %v822_v61 = vsel %vm800_vm12, %v3700_v51, -inf }
 0x2c1   : > { %v813_v45 = vsel %vm800_vm12, %v796_v44, -inf }
 0x2c2   : > { %814 = vmax.xlane.f32.xlu1 %v813_v45 }
 0x2c3   : > { %1139 = vrot.lane.b32.xlu0 %v3583_v62, %s3323_s21 }
 0x2c4   : > { %v744_v46 = vpop.f32.mrf.mxu3 }
 0x2c5   : > { %v789_v48 = vmul.f32 0.0625, %v744_v46 }
 0x2c7   : > { %v797_v50 = vadd.f32 %v789_v48, %v620_v47 }
 0x2c9   : > { %v816_v49 = vsel %vm800_vm12, %v797_v50, -inf }
 0x2ca   : > { %817 = vmax.xlane.f32.xlu2 %v816_v49 }
 0x2cb   : > { %1133 = vrot.lane.b32.xlu0 %v3586_v1, %s3324_s24 }
 0x2d3   : > { %1217 = vrot.lane.b32.xlu0 %v3589_v3, %s3323_s21 }
 0x2db   : > { %3081 = vrot.lane.b32.xlu1 %v3673_v52, %s3325_s25  ;;  %1215 = vrot.lane.b32.xlu0 %v3598_v7, %s3323_s21 }
 0x2e2   : > { %3076 = vrot.lane.b32.xlu2 %v3680_v53, %s3325_s25 }
 0x2e3   : > { %3086 = vrot.lane.b32.xlu1 %v3684_v54, %s3325_s25 }
 0x2eb   : > { %1137 = vrot.lane.b32.xlu1 %v3586_v1, %s3323_s21 }
 0x2f3   : > { %3091 = vrot.lane.b32.xlu1 %v3692_v56, %s3325_s25 }
 0x2fb   : > { %1135 = vrot.lane.b32.xlu1 %v3583_v62, %s3324_s24 }
 0x305   : > { %823 = vmax.xlane.f32.xlu0 %v822_v61 }
 0x309   : > { %v803_v63 = vpop.xlane.xlu0 %802 }
 0x30a   : > { %v825_v4 = vsub.f32 %v3628_v16, %v803_v63 }
 0x30c   : > { %v833_v22 = vmul.f32 1.442695, %v825_v4 }
 0x311   : > { %v806_v0 = vpop.xlane.xlu1 %805 }
 0x312   : > { %v826_v2 = vsub.f32 %v793_v23, %v806_v0 }
 0x314   : > { %v835_v29 = vmul.f32 1.442695, %v826_v2 }
 0x316   : > { %3177 = vpow2.f32 %v835_v29 }
 0x317   : > { %3179 = vpow2.f32 %v833_v22 }
 0x319   : > { %1178 = vrot.lane.b32.xlu0 %v3580_v60, %s3323_s21 }
 0x31a   : > { %v809_v12 = vpop.xlane.xlu2 %808 }
 0x31b   : > { %v827_v28 = vsub.f32 %v3639_v40, %v809_v12 }
 0x31c   : > { %v3707_v8 = vpop.eup %3177 }
 0x31d   : > { %v852_v9 = vsel %vm800_vm12, %v3707_v8, 0.0  ;;  %v3711_v10 = vpop.eup %3179  ;;  %v837_v13 = vmul.f32 1.442695, %v827_v28 }
 0x31e   : > { %853 = vadd.xlane.f32.xlu2 %v852_v9  ;;  %v849_v11 = vsel %vm800_vm12, %v3711_v10, 0.0 }
 0x31f   : > { %3181 = vpow2.f32 %v837_v13 }
 0x322   : > { %v812_v33 = vpop.xlane.xlu0 %811 }
 0x325   : > { %850 = vadd.xlane.f32.xlu1 %v849_v11  ;;  %v3718_v21 = vpop.eup %3181 }
 0x326   : > { %v855_v25 = vsel %vm800_vm12, %v3718_v21, 0.0 }
 0x32b   : > { %v821_v14 = vpop.xlane.xlu2 %820 }
 0x32c   : > { %v831_v24 = vsub.f32 %v3653_v37, %v821_v14 }
 0x32e   : > { %v845_v26 = vmul.f32 1.442695, %v831_v24 }
 0x335   : > { %v815_v15 = vpop.xlane.xlu1 %814  ;;  %v1140_v38 = vpop.permute.xlu0 %1139 }
 0x336   : > { %v829_v16 = vsub.f32 %v796_v44, %v815_v15  ;;  %v828_v44 = vsub.f32 %v3646_v32, %v812_v33  ;;  %v3105_v15 = vpack.i.bf16 %v3577_v59, %v3598_v7 }
 0x338   : > { %v841_v17 = vmul.f32 1.442695, %v829_v16  ;;  %v839_v47 = vmul.f32 1.442695, %v828_v44 }
 0x33a   : > { %3183 = vpow2.f32 %v841_v17 }
 0x33d   : > { %v818_v18 = vpop.xlane.xlu2 %817 }
 0x33e   : > { %v830_v20 = vsub.f32 %v797_v50, %v818_v18  ;;  %1211 = vrot.lane.b32.xlu1 %v3598_v7, %s3324_s24  ;;  %v3738_v50 = vpop.permute.xlu0 %1133 }
 0x340   : > { %v843_v23 = vmul.f32 1.442695, %v830_v20  ;;  %v3723_v30 = vpop.eup %3183 }
 0x341   : > { %v861_v34 = vsel %vm800_vm12, %v3723_v30, 0.0 }
 0x342   : > { %3185 = vpow2.f32 %v843_v23 }
 0x343   : > { %856 = vadd.xlane.f32.xlu0 %v855_v25  ;;  %3187 = vpow2.f32 %v845_v26 }
 0x344   : > { %3189 = vpow2.f32 %v839_v47 }
 0x345   : > { %v3077_v27 = vpop.permute.xlu2 %3076 }
 0x346   : > { %v3078_v40 = vunpack.i.l.bf16 %v3077_v27  ;;  %v3079_v19 = vunpack.i.h.bf16 %v3077_v27  ;;  %v1218_v61 = vpop.permute.xlu0 %1217 }
 0x348   : > { %v3725_v31 = vpop.eup %3185  ;;  %1019 = vmatpush.msra.mxu2 %v3078_v40 }
 0x349   : > { %v864_v43 = vsel %vm800_vm12, %v3725_v31, 0.0  ;;  %v3731_v37 = vpop.eup %3187 }
 0x34a   : > { %865 = vadd.xlane.f32.xlu2 %v864_v43  ;;  %1020 = vmatpush.msra.mxu2 %v3079_v19  ;;  %v867_v39 = vsel %vm800_vm12, %v3731_v37, 0.0  ;;  %v3742_v49 = vpop.eup %3189 }
 0x34b   : > { %862 = vadd.xlane.f32.xlu0 %v861_v34  ;;  %v858_v32 = vsel %vm800_vm12, %v3742_v49, 0.0 }
 0x34d   : > { %v3082_v35 = vpop.permute.xlu1 %3081 }
 0x34e   : > { %v3083_v36 = vunpack.i.l.bf16 %v3082_v35  ;;  %v3084_v41 = vunpack.i.h.bf16 %v3082_v35  ;;  %v1216_v63 = vpop.permute.xlu0 %1215 }
 0x350   : > { %1054 = vmatpush.msra.mxu3 %v3083_v36 }
 0x352   : > { %1055 = vmatpush.msra.mxu3 %v3084_v41 }
 0x353   : > { %868 = vadd.xlane.f32.xlu0 %v867_v39 }
 0x354   : > { %2956 = vmatpush.xpose.msk.msrb.mxu3 %vm641_vm11, %v1140_v38 }
 0x355   : > { %v3087_v42 = vpop.permute.xlu1 %3086 }
 0x356   : > { %v3088_v45 = vunpack.i.l.bf16 %v3087_v42  ;;  %v3089_v46 = vunpack.i.h.bf16 %v3087_v42 }
 0x358   : > { %1124 = vmatpush.msrb.mxu2 %v3088_v45 }
 0x35a   : > { %1125 = vmatpush.msrb.mxu2 %v3089_v46 }
 0x35d   : > { %v1138_v48 = vpop.permute.xlu1 %1137 }
 0x35e   : > { %2957 = vmatpush.xpose.msk.msrb.mxu3 %vm641_vm11, %v1138_v48 }
 0x362   : > { %1176 = vrot.lane.b32.xlu2 %v3577_v59, %s3323_s21 }
 0x365   : > { %v3092_v55 = vpop.permute.xlu1 %3091 }
 0x366   : > { %v3093_v58 = vunpack.i.l.bf16 %v3092_v55  ;;  %v3094_v57 = vunpack.i.h.bf16 %v3092_v55 }
 0x367   : > { %1213 = vrot.lane.b32.xlu0 %v3589_v3, %s3324_s24 }
 0x368   : > { %1089 = vmatpush.msrb.mxu1 %v3093_v58  ;;  %859 = vadd.xlane.f32.xlu1 %v858_v32 }
 0x36a   : > { %1090 = vmatpush.msrb.mxu1 %v3094_v57  ;;  %1252 = vrot.lane.b32.xlu2 %v3591_v5, %s3324_s24 }
 0x36d   : > { %v3760_v9 = vpop.permute.xlu1 %1135 }
 0x372   : > { %1643 = vrot.lane.b32.xlu2 %v3583_v62, %s3326_s9 }
 0x378   : > { %v824_v0 = vpop.xlane.xlu0 %823 }
 0x379   : > { %v832_v2 = vsub.f32 %v3700_v51, %v824_v0 }
 0x37b   : > { %v847_v4 = vmul.f32 1.442695, %v832_v2 }
 0x37d   : > { %3191 = vpow2.f32 %v847_v4 }
 0x381   : > { %1172 = vrot.lane.b32.xlu1 %v3577_v59, %s3324_s24 }
 0x383   : > { %v3758_v22 = vpop.eup %3191 }
 0x384   : > { %v870_v12 = vsel %vm800_vm12, %v3758_v22, 0.0 }
 0x389   : > { %1256 = vrot.lane.b32.xlu1 %v3591_v5, %s3323_s21 }
 0x38b   : > { %v1179_v29 = vpop.permute.xlu0 %1178 }
 0x38c   : > { %2960 = vmatpush.xpose.msk.msra.mxu1 %vm641_vm11, %v1179_v29 }
 0x391   : > { %v854_v11 = vpop.xlane.xlu2 %853  ;;  %1174 = vrot.lane.b32.xlu1 %v3580_v60, %s3324_s24  ;;  %871 = vadd.xlane.f32.xlu0 %v870_v12 }
 0x392   : > { %3193 = vrcp.f32 %v854_v11  ;;  %v898_v43 = vand.u32 2147483648, %v854_v11  ;;  %vm892_vm3 = vweird.f32 %v854_v11  ;;  %v896_v35 = vand.u32 2147483647, %v854_v11 }
 0x394   : > { %v899_v41 = vor.u32 1.1754944e-38, %v898_v43  ;;  %vm897_vm5 = vcmp.eq.f32.partialorder %v896_v35, 8.507059e+37 }
 0x398   : > { %v851_v51 = vpop.xlane.xlu1 %850  ;;  %v3194_v28 = vpop.eup %3193 }
 0x399   : > { %3195 = vrcp.f32 %v851_v51  ;;  %3096 = vrot.lane.b32.xlu1 %v3680_v53, %s3327_s10  ;;  %v888_v13 = vmul.f32 %v3194_v28, %v854_v11  ;;  %v884_v20 = vand.u32 2147483648, %v851_v51  ;;  %v882_v25 = vand.u32 2147483647, %v851_v51 }
 0x39a   : > { %vm878_vm14 = vweird.f32 %v851_v51  ;;  %vm893_vm2 = vweird.f32 %v3194_v28 }
 0x39b   : > { %v889_v16 = vsub.f32 1.0, %v888_v13  ;;  %v885_v27 = vor.u32 1.1754944e-38, %v884_v20  ;;  %vm883_vm1 = vcmp.eq.f32.partialorder %v882_v25, 8.507059e+37  ;;  %vm894_vm4 = vmor %vm892_vm3, %vm893_vm2 }
 0x39d   : > { %v890_v23 = vmul.f32 %v3194_v28, %v889_v16 }
 0x39f   : > { %v3196_v14 = vpop.eup %3195  ;;  %v891_v19 = vadd.f32 %v3194_v28, %v890_v23 }
 0x3a0   : > { %v874_v17 = vmul.f32 %v3196_v14, %v851_v51  ;;  %vm879_vm13 = vweird.f32 %v3196_v14 }
 0x3a1   : > { %3106 = vrot.lane.b32.xlu1 %v3105_v15, %s3327_s10  ;;  %vm880_vm15 = vmor %vm878_vm14, %vm879_vm13  ;;  %v895_v36 = vsel %vm894_vm4, %v3194_v28, %v891_v19 }
 0x3a2   : > { %v875_v18 = vsub.f32 1.0, %v874_v17  ;;  %v900_v38 = vsel %vm897_vm5, %v899_v41, %v895_v36 }
 0x3a3   : > { %v986_v39 = vmul.f32 %v3707_v8, %v900_v38 }
 0x3a4   : > { %v876_v24 = vmul.f32 %v3196_v14, %v875_v18 }
 0x3a5   : > { %1254 = vrot.lane.b32.xlu0 %v3593_v6, %s3323_s21 }
 0x3a6   : > { %v877_v26 = vadd.f32 %v3196_v14, %v876_v24 }
 0x3a8   : > { %v881_v40 = vsel %vm880_vm15, %v3196_v14, %v877_v26 }
 0x3a9   : > { %v886_v33 = vsel %vm883_vm1, %v885_v27, %v881_v40 }
 0x3aa   : > { %v985_v34 = vmul.f32 %v3711_v10, %v886_v33  ;;  %v3100_v10 = vpack.i.bf16 %v3580_v60, %v3589_v3 }
 0x3ac   : > { %2948 = vmatmul.msk.f32.vlgmr.msra.gmra.mxu2 %vm800_vm12, %v985_v34 }
 0x3ad   : > { %2964 = vmatpush.xpose.msk.msra.mxu2 %vm641_vm11, %v1218_v61  ;;  %1250 = vrot.lane.b32.xlu0 %v3593_v6, %s3324_s24 }
 0x3b0   : > { %v3789_v41 = vpop.permute.xlu1 %1211 }
 0x3b1   : > { %2965 = vmatpush.xpose.msk.msra.mxu2 %vm641_vm11, %v1216_v63 }
 0x3b4   : > { %2949 = vmatmul.msk.f32.gmra.mxu2 %vm800_vm12, %v986_v39 }
 0x3b5   : > { %3101 = vrot.lane.b32.xlu0 %v3100_v10, %s3327_s10 }
 0x3b6   : > { %v857_v42 = vpop.xlane.xlu0 %856 }
 0x3b7   : > { %3197 = vrcp.f32 %v857_v42  ;;  %v912_v58 = vand.u32 2147483648, %v857_v42  ;;  %v910_v8 = vand.u32 2147483647, %v857_v42  ;;  %vm906_vm7 = vweird.f32 %v857_v42 }
 0x3b9   : > { %v913_v4 = vor.u32 1.1754944e-38, %v912_v58  ;;  %vm911_vm9 = vcmp.eq.f32.partialorder %v910_v8, 8.507059e+37 }
 0x3bd   : > { %v3198_v44 = vpop.eup %3197  ;;  %v866_v45 = vpop.xlane.xlu2 %865 }
 0x3be   : > { %v902_v46 = vmul.f32 %v3198_v44, %v857_v42  ;;  %3199 = vrcp.f32 %v866_v45  ;;  %v863_v47 = vpop.xlane.xlu0 %862  ;;  %vm907_vm6 = vweird.f32 %v3198_v44  ;;  %v954_v27 = vand.u32 2147483648, %v866_v45 }
 0x3bf   : > { %3201 = vrcp.f32 %v863_v47  ;;  %vm908_vm8 = vmor %vm906_vm7, %vm907_vm6  ;;  %v938_v13 = vand.u32 2147483647, %v863_v47  ;;  %v940_v14 = vand.u32 2147483648, %v863_v47  ;;  %vm934_vm13 = vweird.f32 %v863_v47 }
 0x3c0   : > { %v903_v48 = vsub.f32 1.0, %v902_v46  ;;  %vm948_vm2 = vweird.f32 %v866_v45  ;;  %v952_v43 = vand.u32 2147483647, %v866_v45  ;;  %v955_v38 = vor.u32 1.1754944e-38, %v954_v27 }
 0x3c1   : > { %vm939_vm15 = vcmp.eq.f32.partialorder %v938_v13, 8.507059e+37  ;;  %v941_v23 = vor.u32 1.1754944e-38, %v940_v14 }
 0x3c2   : > { %v904_v55 = vmul.f32 %v3198_v44, %v903_v48  ;;  %vm953_vm6 = vcmp.eq.f32.partialorder %v952_v43, 8.507059e+37 }
 0x3c4   : > { %v3200_v32 = vpop.eup %3199  ;;  %v905_v57 = vadd.f32 %v3198_v44, %v904_v55 }
 0x3c5   : > { %v3202_v61 = vpop.eup %3201  ;;  %v944_v63 = vmul.f32 %v3200_v32, %v866_v45  ;;  %v1177_v0 = vpop.permute.xlu2 %1176  ;;  %vm949_vm1 = vweird.f32 %v3200_v32 }
 0x3c6   : > { %v909_v2 = vsel %vm908_vm8, %v3198_v44, %v905_v57  ;;  %v930_v29 = vmul.f32 %v3202_v61, %v863_v47  ;;  %2961 = vmatpush.xpose.msk.msra.mxu1 %vm641_vm11, %v1177_v0  ;;  %v869_v11 = vpop.xlane.xlu0 %868  ;;  %vm935_vm10 = vweird.f32 %v3202_v61  ;;  %vm950_vm3 = vmor %vm948_vm2, %vm949_vm1 }
 0x3c7   : > { %v945_v12 = vsub.f32 1.0, %v944_v63  ;;  %3203 = vrcp.f32 %v869_v11  ;;  %v914_v28 = vsel %vm911_vm9, %v913_v4, %v909_v2  ;;  %vm936_vm14 = vmor %vm934_vm13, %vm935_vm10  ;;  %v968_v33 = vand.u32 2147483648, %v869_v11 }
 0x3c8   : > { %v931_v51 = vsub.f32 1.0, %v930_v29  ;;  %v987_v15 = vmul.f32 %v3718_v21, %v914_v28  ;;  %v966_v35 = vand.u32 2147483647, %v869_v11  ;;  %vm962_vm5 = vweird.f32 %v869_v11 }
 0x3c9   : > { %v946_v16 = vmul.f32 %v3200_v32, %v945_v12  ;;  %v969_v10 = vor.u32 1.1754944e-38, %v968_v33 }
 0x3ca   : > { %v932_v17 = vmul.f32 %v3202_v61, %v931_v51  ;;  %2950 = vmatmul.msk.f32.vlgmr.msra.gmra.mxu3 %vm800_vm12, %v987_v15  ;;  %vm967_vm8 = vcmp.eq.f32.partialorder %v966_v35, 8.507059e+37 }
 0x3cb   : > { %v947_v26 = vadd.f32 %v3200_v32, %v946_v16 }
 0x3cc   : > { %v933_v18 = vadd.f32 %v3202_v61, %v932_v17 }
 0x3cd   : > { %v3204_v20 = vpop.eup %3203  ;;  %v951_v36 = vsel %vm950_vm3, %v3200_v32, %v947_v26 }
 0x3ce   : > { %v937_v24 = vsel %vm936_vm14, %v3202_v61, %v933_v18  ;;  %v958_v25 = vmul.f32 %v3204_v20, %v869_v11  ;;  %vm963_vm4 = vweird.f32 %v3204_v20  ;;  %v956_v42 = vsel %vm953_vm6, %v955_v38, %v951_v36 }
 0x3cf   : > { %v942_v40 = vsel %vm939_vm15, %v941_v23, %v937_v24  ;;  %vm964_vm7 = vmor %vm962_vm5, %vm963_vm4  ;;  %v990_v45 = vmul.f32 %v3725_v31, %v956_v42 }
 0x3d0   : > { %v959_v19 = vsub.f32 1.0, %v958_v25  ;;  %v989_v21 = vmul.f32 %v3723_v30, %v942_v40 }
 0x3d2   : > { %v960_v34 = vmul.f32 %v3204_v20, %v959_v19  ;;  %2952 = vmatmul.msk.f32.vlgmr.msrb.gmra.mxu1 %vm800_vm12, %v989_v21 }
 0x3d4   : > { %v961_v39 = vadd.f32 %v3204_v20, %v960_v34 }
 0x3d6   : > { %v965_v44 = vsel %vm964_vm7, %v3204_v20, %v961_v39 }
 0x3d7   : > { %v970_v30 = vsel %vm967_vm8, %v969_v10, %v965_v44  ;;  %v605_v10 = vld [vmem:[%s4377_s1 + $0x10] sm:$0xff] }
 0x3d8   : > { %v991_v46 = vmul.f32 %v3731_v37, %v970_v30 }
 0x3d9   : > { %v1214_v29 = vpop.permute.xlu0 %1213 }
 0x3da   : > { %2953 = vmatmul.msk.f32.gmra.mxu1 %vm800_vm12, %v990_v45  ;;  %2954 = vmatmul.msk.f32.vlgmr.msrb.gmra.mxu2 %vm800_vm12, %v991_v46 }
 0x3db   : > { %v860_v47 = vpop.xlane.xlu1 %859 }
 0x3dc   : > { %3205 = vrcp.f32 %v860_v47  ;;  %v926_v8 = vand.u32 2147483648, %v860_v47  ;;  %v924_v57 = vand.u32 2147483647, %v860_v47  ;;  %vm920_vm10 = vweird.f32 %v860_v47 }
 0x3de   : > { %v927_v63 = vor.u32 1.1754944e-38, %v926_v8  ;;  %vm925_vm14 = vcmp.eq.f32.partialorder %v924_v57, 8.507059e+37 }
 0x3e2   : > { %v3206_v48 = vpop.eup %3205 }
 0x3e3   : > { %v916_v55 = vmul.f32 %v3206_v48, %v860_v47  ;;  %vm921_vm9 = vweird.f32 %v3206_v48  ;;  %v613_v47 = vld [vmem:[%s4377_s1 + $0x50] sm:$0xff] }
 0x3e4   : > { %vm922_vm13 = vmor %vm920_vm10, %vm921_vm9 }
 0x3e5   : > { %v917_v58 = vsub.f32 1.0, %v916_v55 }
 0x3e7   : > { %v918_v32 = vmul.f32 %v3206_v48, %v917_v58  ;;  %v606_v58 = vld [vmem:[%s4377_s1 + $0x18] sm:$0xff] }
 0x3e9   : > { %v919_v61 = vadd.f32 %v3206_v48, %v918_v32 }
 0x3eb   : > { %v923_v31 = vsel %vm922_vm13, %v3206_v48, %v919_v61 }
 0x3ec   : > { %v928_v37 = vsel %vm925_vm14, %v927_v63, %v923_v31 }
 0x3ed   : > { %v988_v0 = vmul.f32 %v3742_v49, %v928_v37  ;;  %v1253_v49 = vpop.permute.xlu2 %1252 }
 0x3ef   : > { %2951 = vmatmul.msk.f32.gmra.mxu3 %vm800_vm12, %v988_v0  ;;  %v614_v0 = vld [vmem:[%s4377_s1 + $0x58] sm:$0xff] }
 0x3f3   : > { %v1173_v2 = vpop.permute.xlu1 %1172 }
 0x3f4   : > { %2962 = vmatmul.msk.f32.vlgmr.msra.gmra.mxu1 %vm641_vm11, %v1173_v2 }
 0x3f5   : > { %v1644_v17 = vpop.permute.xlu2 %1643 }
 0x3f7   : > { %2958 = vmatmul.msk.f32.vlgmr.msrb.gmra.mxu3 %vm641_vm11, %v3738_v50 }
 0x3fb   : > { %v1257_v4 = vpop.permute.xlu1 %1256 }
 0x3fc   : > { %2968 = vmatpush.xpose.msk.msra.mxu3 %vm641_vm11, %v1257_v4 }
 0x3ff   : > { %2959 = vmatmul.msk.f32.gmra.mxu3 %vm641_vm11, %v3760_v9 }
 0x403   : > { %v1175_v11 = vpop.permute.xlu1 %1174 }
 0x404   : > { %2963 = vmatmul.msk.f32.gmra.mxu1 %vm641_vm11, %v1175_v11  ;;  %v872_v12 = vpop.xlane.xlu0 %871 }
 0x405   : > { %3207 = vrcp.f32 %v872_v12  ;;  %v982_v16 = vand.u32 2147483648, %v872_v12  ;;  %v980_v20 = vand.u32 2147483647, %v872_v12  ;;  %vm976_vm1 = vweird.f32 %v872_v12 }
 0x407   : > { %v983_v23 = vor.u32 1.1754944e-38, %v982_v16  ;;  %vm981_vm3 = vcmp.eq.f32.partialorder %v980_v20, 8.507059e+37 }
 0x40b   : > { %v3208_v51 = vpop.eup %3207  ;;  %v3097_v28 = vpop.permute.xlu1 %3096 }
 0x40c   : > { %v972_v13 = vmul.f32 %v3208_v51, %v872_v12  ;;  %v3098_v14 = vunpack.i.l.bf16 %v3097_v28  ;;  %v3099_v50 = vunpack.i.h.bf16 %v3097_v28  ;;  %vm977_vm15 = vweird.f32 %v3208_v51  ;;  %v621_v28 = vld [vmem:[%s4377_s1 + $0x90] sm:$0xff] }
 0x40d   : > { %vm978_vm2 = vmor %vm976_vm1, %vm977_vm15 }
 0x40e   : > { %v973_v15 = vsub.f32 1.0, %v972_v13  ;;  %1523 = vmatpush.msrb.mxu0 %v3098_v14  ;;  %v629_v13 = vld [vmem:[%s4377_s1 + $0xd0] sm:$0xff] }
 0x410   : > { %v974_v18 = vmul.f32 %v3208_v51, %v973_v15  ;;  %1524 = vmatpush.msrb.mxu0 %v3099_v50 }
 0x412   : > { %2980 = vmatpush.xpose.msk.msra.mxu0 %vm641_vm11, %v1644_v17  ;;  %v975_v9 = vadd.f32 %v3208_v51, %v974_v18 }
 0x413   : > { %v3107_v19 = vpop.permute.xlu1 %3106 }
 0x414   : > { %v979_v24 = vsel %vm978_vm2, %v3208_v51, %v975_v9  ;;  %v3108_v34 = vunpack.i.l.bf16 %v3107_v19  ;;  %v622_v9 = vld [vmem:[%s4377_s1 + $0x98] sm:$0xff] }
 0x415   : > { %v984_v25 = vsel %vm981_vm3, %v983_v23, %v979_v24 }
 0x416   : > { %v992_v26 = vmul.f32 %v3758_v22, %v984_v25  ;;  %v3109_v22 = vunpack.i.h.bf16 %v3107_v19 }
 0x417   : > { %v1255_v27 = vpop.permute.xlu0 %1254 }
 0x418   : > { %2955 = vmatmul.msk.f32.gmra.mxu2 %vm800_vm12, %v992_v26  ;;  %2969 = vmatpush.xpose.msk.msra.mxu3 %vm641_vm11, %v1255_v27 }
 0x41f   : > { %v1251_v40 = vpop.permute.xlu0 %1250 }
 0x420   : > { %2966 = vmatmul.msk.f32.vlgmr.msra.gmra.mxu2 %vm641_vm11, %v3789_v41  ;;  %2970 = vmatmul.msk.f32.vlgmr.msra.gmra.mxu3 %vm641_vm11, %v1251_v40  ;;  %v630_v40 = vld [vmem:[%s4377_s1 + $0xd8] sm:$0xff] }
 0x427   : > { %v3102_v21 = vpop.permute.xlu0 %3101 }
 0x428   : > { %v3104_v43 = vunpack.i.h.bf16 %v3102_v21  ;;  %v3103_v33 = vunpack.i.l.bf16 %v3102_v21  ;;  %2967 = vmatmul.msk.f32.gmra.mxu2 %vm641_vm11, %v1214_v29  ;;  %2971 = vmatmul.msk.f32.gmra.mxu3 %vm641_vm11, %v1253_v49 }
 0x42a   : > { %1558 = vmatpush.msrb.mxu1 %v3104_v43  ;;  %1593 = vmatpush.msrb.mxu2 %v3103_v33 }
 0x42c   : > { %1559 = vmatpush.msrb.mxu1 %v3109_v22  ;;  %1594 = vmatpush.msrb.mxu2 %v3108_v34 }
 0x42f   : > { %v3828_v48 = vpop.f32.mrf.mxu2 }
 0x437   : > { %v3838_v2 = vpop.f32.mrf.mxu2 }
 0x44d   : > { %v3813_v35 = vpop.f32.mrf.mxu3 }
 0x44f   : > { %v3815_v36 = vpop.f32.mrf.mxu1 }
 0x457   : > { %v3819_v38 = vpop.f32.mrf.mxu1 }
 0x45d   : > { %v3844_v11 = vpop.f32.mrf.mxu2 }
 0x471   : > { %v1205_v44 = vpop.f32.mrf.mxu1 }
 0x472   : > { %v3817_v41 = vpop.f32.mrf.mxu3  ;;  %v1291_v45 = vmul.f32 0.0625, %v1205_v44 }
 0x474   : > { %v1299_v32 = vadd.f32 %v1291_v45, %v613_v47 }
 0x476   : > { %v1311_v37 = vsel %vm800_vm12, %v1299_v32, -inf }
 0x47a   : > { %v1166_v39 = vpop.f32.mrf.mxu3 }
 0x47b   : > { %v1289_v42 = vmul.f32 0.0625, %v1166_v39 }
 0x47d   : > { %v1297_v30 = vadd.f32 %v1289_v42, %v605_v10 }
 0x47f   : > { %v1305_v46 = vsel %vm800_vm12, %v1297_v30, -inf }
 0x480   : > { %1306 = vmax.xlane.f32.xlu1 %v1305_v46 }
 0x481   : > { %v1208_v57 = vpop.f32.mrf.mxu1 }
 0x482   : > { %v1169_v55 = vpop.f32.mrf.mxu3  ;;  %v1292_v63 = vmul.f32 0.0625, %v1208_v57 }
 0x483   : > { %v1290_v8 = vmul.f32 0.0625, %v1169_v55 }
 0x484   : > { %v3840_v4 = vadd.f32 %v1292_v63, %v614_v0 }
 0x485   : > { %v1298_v61 = vadd.f32 %v1290_v8, %v606_v58 }
 0x486   : > { %v1314_v29 = vsel %vm800_vm12, %v3840_v4, -inf }
 0x487   : > { %v1308_v31 = vsel %vm800_vm12, %v1298_v61, -inf }
 0x488   : > { %1309 = vmax.xlane.f32.xlu0 %v1308_v31  ;;  %1312 = vmax.xlane.f32.xlu1 %v1311_v37 }
 0x490   : > { %1315 = vmax.xlane.f32.xlu0 %v1314_v29 }
 0x49b   : > { %v3846_v12 = vpop.f32.mrf.mxu2 }
 0x4a3   : > { %v1244_v49 = vpop.f32.mrf.mxu2  ;;  %v1283_v51 = vpop.f32.mrf.mxu3 }
 0x4a4   : > { %v1293_v14 = vmul.f32 0.0625, %v1244_v49  ;;  %v1295_v15 = vmul.f32 0.0625, %v1283_v51 }
 0x4a6   : > { %v1301_v50 = vadd.f32 %v1293_v14, %v621_v28  ;;  %v3854_v16 = vadd.f32 %v1295_v15, %v629_v13 }
 0x4a8   : > { %v1317_v17 = vsel %vm800_vm12, %v1301_v50, -inf  ;;  %v1323_v18 = vsel %vm800_vm12, %v3854_v16, -inf }
 0x4a9   : > { %1318 = vmax.xlane.f32.xlu2 %v1317_v17  ;;  %1324 = vmax.xlane.f32.xlu1 %v1323_v18 }
 0x4ab   : > { %v1247_v20 = vpop.f32.mrf.mxu2  ;;  %v1286_v24 = vpop.f32.mrf.mxu3 }
 0x4ac   : > { %v1294_v23 = vmul.f32 0.0625, %v1247_v20  ;;  %v1296_v26 = vmul.f32 0.0625, %v1286_v24 }
 0x4ae   : > { %v1302_v25 = vadd.f32 %v1294_v23, %v622_v9  ;;  %v1304_v19 = vadd.f32 %v1296_v26, %v630_v40 }
 0x4b0   : > { %v1320_v27 = vsel %vm800_vm12, %v1302_v25, -inf  ;;  %v1326_v21 = vsel %vm800_vm12, %v1304_v19, -inf }
 0x4b1   : > { %1321 = vmax.xlane.f32.xlu2 %v1320_v27 }
 0x4b9   : > { %1327 = vmax.xlane.f32.xlu2 %v1326_v21 }
 0x4d1   : > { %1637 = vrot.lane.b32.xlu2 %v3586_v1, %s3328_s12 }
 0x4d9   : > { %1639 = vrot.lane.b32.xlu2 %v3583_v62, %s3328_s12 }
 0x4e1   : > { %3111 = vrot.lane.b32.xlu2 %v3684_v54, %s3327_s10  ;;  %s3329_s10 = smov 48  }
 0x4e9   : > { %1680 = vrot.lane.b32.xlu2 %v3577_v59, %s3326_s9 }
 0x4f1   : > { %1676 = vrot.lane.b32.xlu2 %v3577_v59, %s3328_s12 }
 0x4f3   : > { %v1307_v43 = vpop.xlane.xlu1 %1306 }
 0x4f4   : > { %v1329_v33 = vsub.f32 %v1297_v30, %v1307_v43 }
 0x4f6   : > { %v1337_v22 = vmul.f32 1.442695, %v1329_v33 }
 0x4f8   : > { %3209 = vpow2.f32 %v1337_v22 }
 0x4fb   : > { %v1313_v34 = vpop.xlane.xlu1 %1312  ;;  %v1310_v39 = vpop.xlane.xlu0 %1309 }
 0x4fc   : > { %v1331_v10 = vsub.f32 %v1299_v32, %v1313_v34  ;;  %v1330_v42 = vsub.f32 %v1298_v61, %v1310_v39 }
 0x4fe   : > { %v3877_v44 = vpop.eup %3209  ;;  %v1341_v45 = vmul.f32 1.442695, %v1331_v10  ;;  %v1339_v46 = vmul.f32 1.442695, %v1330_v42 }
 0x4ff   : > { %v1353_v47 = vsel %vm800_vm12, %v3877_v44, 0.0 }
 0x500   : > { %3211 = vpow2.f32 %v1341_v45  ;;  %1354 = vadd.xlane.f32.xlu0 %v1353_v47 }
 0x501   : > { %3213 = vpow2.f32 %v1339_v46 }
 0x503   : > { %v1316_v24 = vpop.xlane.xlu0 %1315 }
 0x506   : > { %v3881_v55 = vpop.eup %3211 }
 0x507   : > { %v3883_v58 = vpop.eup %3213  ;;  %v1359_v30 = vsel %vm800_vm12, %v3881_v55, 0.0 }
 0x508   : > { %1360 = vadd.xlane.f32.xlu0 %v1359_v30  ;;  %v1356_v8 = vsel %vm800_vm12, %v3883_v58, 0.0 }
 0x509   : > { %1357 = vadd.xlane.f32.xlu1 %v1356_v8 }
 0x51c   : > { %1721 = vrot.lane.b32.xlu0 %v3589_v3, %s3326_s9  ;;  %v1319_v32 = vpop.xlane.xlu2 %1318  ;;  %v1325_v27 = vpop.xlane.xlu1 %1324 }
 0x51d   : > { %v1333_v57 = vsub.f32 %v1301_v50, %v1319_v32  ;;  %v1335_v40 = vsub.f32 %v3854_v16, %v1325_v27 }
 0x51f   : > { %v1345_v61 = vmul.f32 1.442695, %v1333_v57 }
 0x521   : > { %3215 = vpow2.f32 %v1345_v61 }
 0x522   : > { %1641 = vrot.lane.b32.xlu1 %v3586_v1, %s3326_s9 }
 0x524   : > { %1682 = vrot.lane.b32.xlu0 %v3580_v60, %s3326_s9  ;;  %v1322_v63 = vpop.xlane.xlu2 %1321 }
 0x525   : > { %v1334_v31 = vsub.f32 %v1302_v25, %v1322_v63  ;;  %v1332_v25 = vsub.f32 %v3840_v4, %v1316_v24 }
 0x527   : > { %v3895_v37 = vpop.eup %3215  ;;  %v1347_v0 = vmul.f32 1.442695, %v1334_v31  ;;  %v1343_v26 = vmul.f32 1.442695, %v1332_v25 }
 0x528   : > { %v1365_v29 = vsel %vm800_vm12, %v3895_v37, 0.0 }
 0x529   : > { %3217 = vpow2.f32 %v1347_v0  ;;  %1366 = vadd.xlane.f32.xlu2 %v1365_v29 }
 0x52c   : > { %1719 = vrot.lane.b32.xlu0 %v3598_v7, %s3326_s9  ;;  %v1328_v49 = vpop.xlane.xlu2 %1327 }
 0x52d   : > { %v1336_v14 = vsub.f32 %v1304_v19, %v1328_v49  ;;  %v1349_v19 = vmul.f32 1.442695, %v1335_v40 }
 0x52f   : > { %v3901_v51 = vpop.eup %3217  ;;  %v1351_v50 = vmul.f32 1.442695, %v1336_v14 }
 0x530   : > { %v1368_v28 = vsel %vm800_vm12, %v3901_v51, 0.0 }
 0x531   : > { %1369 = vadd.xlane.f32.xlu2 %v1368_v28  ;;  %3219 = vpow2.f32 %v1351_v50 }
 0x532   : > { %3221 = vpow2.f32 %v1343_v26 }
 0x533   : > { %3223 = vpow2.f32 %v1349_v19 }
 0x534   : > { %1715 = vrot.lane.b32.xlu0 %v3598_v7, %s3328_s12  ;;  %v3907_v13 = vpop.permute.xlu2 %1637 }
 0x537   : > { %v3913_v9 = vpop.eup %3219 }
 0x538   : > { %v1374_v23 = vsel %vm800_vm12, %v3913_v9, 0.0  ;;  %v3927_v21 = vpop.eup %3221 }
 0x539   : > { %v1362_v4 = vsel %vm800_vm12, %v3927_v21, 0.0  ;;  %v3933_v43 = vpop.eup %3223 }
 0x53a   : > { %v1371_v16 = vsel %vm800_vm12, %v3933_v43, 0.0 }
 0x53c   : > { %1717 = vrot.lane.b32.xlu0 %v3589_v3, %s3328_s12  ;;  %v3911_v15 = vpop.permute.xlu2 %1639 }
 0x544   : > { %v3112_v17 = vpop.permute.xlu2 %3111 }
 0x545   : > { %v3113_v18 = vunpack.i.l.bf16 %v3112_v17  ;;  %v3114_v20 = vunpack.i.h.bf16 %v3112_v17 }
 0x547   : > { %1628 = vmatpush.msrb.mxu3 %v3113_v18 }
 0x549   : > { %1760 = vrot.lane.b32.xlu2 %v3591_v5, %s3326_s9  ;;  %1629 = vmatpush.msrb.mxu3 %v3114_v20 }
 0x54c   : > { %1375 = vadd.xlane.f32.xlu1 %v1374_v23  ;;  %v1681_v25 = vpop.permute.xlu2 %1680 }
 0x551   : > { %1754 = vrot.lane.b32.xlu2 %v3593_v6, %s3328_s12 }
 0x559   : > { %3116 = vrot.lane.b32.xlu2 %v3680_v53, %s3329_s10 }
 0x561   : > { %2145 = vrot.lane.b32.xlu2 %v3586_v1, %s3330_s13 }
 0x565   : > { %1758 = vrot.lane.b32.xlu1 %v3593_v6, %s3326_s9  ;;  %s3331_s9 = smov 104  }
 0x566   : > { %1363 = vadd.xlane.f32.xlu0 %v1362_v4 }
 0x56d   : > { %2147 = vrot.lane.b32.xlu1 %v3583_v62, %s3330_s13 }
 0x56e   : > { %1372 = vadd.xlane.f32.xlu0 %v1371_v16 }
 0x573   : > { %v1355_v33 = vpop.xlane.xlu0 %1354 }
 0x574   : > { %3225 = vrcp.f32 %v1355_v33  ;;  %v1388_v45 = vand.u32 2147483648, %v1355_v33  ;;  %v1386_v47 = vand.u32 2147483647, %v1355_v33  ;;  %vm1382_vm5 = vweird.f32 %v1355_v33 }
 0x576   : > { %v1389_v32 = vor.u32 1.1754944e-38, %v1388_v45  ;;  %vm1387_vm7 = vcmp.eq.f32.partialorder %v1386_v47, 8.507059e+37 }
 0x57a   : > { %v3226_v22 = vpop.eup %3225 }
 0x57b   : > { %v1378_v34 = vmul.f32 %v3226_v22, %v1355_v33  ;;  %v1361_v39 = vpop.xlane.xlu0 %1360  ;;  %vm1383_vm4 = vweird.f32 %v3226_v22 }
 0x57c   : > { %v1358_v10 = vpop.xlane.xlu1 %1357  ;;  %3227 = vrcp.f32 %v1361_v39  ;;  %vm1384_vm6 = vmor %vm1382_vm5, %vm1383_vm4  ;;  %v1416_v14 = vand.u32 2147483648, %v1361_v39  ;;  %v1414_v18 = vand.u32 2147483647, %v1361_v39  ;;  %vm1410_vm10 = vweird.f32 %v1361_v39 }
 0x57d   : > { %v1379_v42 = vsub.f32 1.0, %v1378_v34  ;;  %3229 = vrcp.f32 %v1358_v10  ;;  %v1402_v50 = vand.u32 2147483648, %v1358_v10  ;;  %v1400_v23 = vand.u32 2147483647, %v1358_v10 }
 0x57e   : > { %vm1396_vm13 = vweird.f32 %v1358_v10  ;;  %v1417_v26 = vor.u32 1.1754944e-38, %v1416_v14  ;;  %vm1415_vm15 = vcmp.eq.f32.partialorder %v1414_v18, 8.507059e+37 }
 0x57f   : > { %v1380_v46 = vmul.f32 %v3226_v22, %v1379_v42  ;;  %v1403_v27 = vor.u32 1.1754944e-38, %v1402_v50  ;;  %vm1401_vm2 = vcmp.eq.f32.partialorder %v1400_v23, 8.507059e+37 }
 0x581   : > { %v1381_v30 = vadd.f32 %v3226_v22, %v1380_v46 }
 0x582   : > { %v3228_v8 = vpop.eup %3227  ;;  %1678 = vrot.lane.b32.xlu0 %v3580_v60, %s3328_s12 }
 0x583   : > { %v3230_v57 = vpop.eup %3229  ;;  %v1406_v61 = vmul.f32 %v3228_v8, %v1361_v39  ;;  %v1385_v63 = vsel %vm1384_vm6, %v3226_v22, %v1381_v30  ;;  %vm1411_vm8 = vweird.f32 %v3228_v8  ;;  %v3952_v39 = vpop.permute.xlu2 %1676 }
 0x584   : > { %v1392_v31 = vmul.f32 %v3230_v57, %v1358_v10  ;;  %v1390_v0 = vsel %vm1387_vm7, %v1389_v32, %v1385_v63  ;;  %vm1397_vm9 = vweird.f32 %v3230_v57  ;;  %vm1412_vm14 = vmor %vm1410_vm10, %vm1411_vm8 }
 0x585   : > { %v1407_v29 = vsub.f32 1.0, %v1406_v61  ;;  %v1489_v49 = vmul.f32 %v3877_v44, %v1390_v0  ;;  %vm1398_vm1 = vmor %vm1396_vm13, %vm1397_vm9 }
 0x586   : > { %v1393_v28 = vsub.f32 1.0, %v1392_v31 }
 0x587   : > { %v1408_v17 = vmul.f32 %v3228_v8, %v1407_v29  ;;  %2972 = vmatmul.msk.f32.vlgmr.msrb.gmra.mxu0 %vm800_vm12, %v1489_v49 }
 0x588   : > { %v1394_v20 = vmul.f32 %v3230_v57, %v1393_v28 }
 0x589   : > { %v1409_v24 = vadd.f32 %v3228_v8, %v1408_v17 }
 0x58a   : > { %1756 = vrot.lane.b32.xlu0 %v3591_v5, %s3328_s12  ;;  %v1395_v44 = vadd.f32 %v3230_v57, %v1394_v20  ;;  %s3332_s12 = smov 40  }
 0x58b   : > { %v1413_v40 = vsel %vm1412_vm14, %v3228_v8, %v1409_v24 }
 0x58c   : > { %v1418_v19 = vsel %vm1415_vm15, %v1417_v26, %v1413_v40  ;;  %v1399_v4 = vsel %vm1398_vm1, %v3230_v57, %v1395_v44 }
 0x58d   : > { %v1404_v16 = vsel %vm1401_vm2, %v1403_v27, %v1399_v4  ;;  %v1491_v33 = vmul.f32 %v3881_v55, %v1418_v19 }
 0x58e   : > { %v1722_v22 = vpop.permute.xlu0 %1721  ;;  %v1490_v34 = vmul.f32 %v3883_v58, %v1404_v16 }
 0x58f   : > { %2974 = vmatmul.msk.f32.vlgmr.msrb.gmra.mxu1 %vm800_vm12, %v1491_v33  ;;  %2988 = vmatpush.xpose.msk.msra.mxu2 %vm641_vm11, %v1722_v22 }
 0x590   : > { %2973 = vmatmul.msk.f32.gmra.mxu0 %vm800_vm12, %v1490_v34 }
 0x592   : > { %3121 = vrot.lane.b32.xlu0 %v3673_v52, %s3329_s10 }
 0x594   : > { %v1642_v10 = vpop.permute.xlu1 %1641 }
 0x595   : > { %2981 = vmatpush.xpose.msk.msra.mxu0 %vm641_vm11, %v1642_v10 }
 0x596   : > { %v1683_v42 = vpop.permute.xlu0 %1682 }
 0x597   : > { %2984 = vmatpush.xpose.msk.msra.mxu1 %vm641_vm11, %v1683_v42 }
 0x598   : > { %2982 = vmatmul.msk.f32.vlgmr.msra.gmra.mxu0 %vm641_vm11, %v3907_v13 }
 0x59a   : > { %3126 = vrot.lane.b32.xlu0 %v3692_v56, %s3329_s10 }
 0x59b   : > { %2985 = vmatpush.xpose.msk.msra.mxu1 %vm641_vm11, %v1681_v25 }
 0x59c   : > { %v1367_v55 = vpop.xlane.xlu2 %1366 }
 0x59d   : > { %3231 = vrcp.f32 %v1367_v55  ;;  %v1444_v30 = vand.u32 2147483648, %v1367_v55  ;;  %v1442_v32 = vand.u32 2147483647, %v1367_v55  ;;  %vm1438_vm4 = vweird.f32 %v1367_v55 }
 0x59e   : > { %v1720_v58 = vpop.permute.xlu0 %1719 }
 0x59f   : > { %2989 = vmatpush.xpose.msk.msra.mxu2 %vm641_vm11, %v1720_v58  ;;  %vm1443_vm6 = vcmp.eq.f32.partialorder %v1442_v32, 8.507059e+37 }
 0x5a0   : > { %2983 = vmatmul.msk.f32.gmra.mxu0 %vm641_vm11, %v3911_v15  ;;  %v1445_v15 = vor.u32 1.1754944e-38, %v1444_v30 }
 0x5a2   : > { %2143 = vrot.lane.b32.xlu0 %v3583_v62, %s3331_s9 }
 0x5a3   : > { %v3232_v45 = vpop.eup %3231 }
 0x5a4   : > { %v1434_v46 = vmul.f32 %v3232_v45, %v1367_v55  ;;  %v1370_v13 = vpop.xlane.xlu2 %1369  ;;  %vm1439_vm3 = vweird.f32 %v3232_v45 }
 0x5a5   : > { %3233 = vrcp.f32 %v1370_v13  ;;  %vm1440_vm5 = vmor %vm1438_vm4, %vm1439_vm3  ;;  %v1458_v28 = vand.u32 2147483648, %v1370_v13  ;;  %v1456_v50 = vand.u32 2147483647, %v1370_v13  ;;  %vm1452_vm8 = vweird.f32 %v1370_v13 }
 0x5a6   : > { %v1435_v47 = vsub.f32 1.0, %v1434_v46  ;;  %v1716_v26 = vpop.permute.xlu0 %1715 }
 0x5a7   : > { %v1459_v18 = vor.u32 1.1754944e-38, %v1458_v28  ;;  %vm1457_vm10 = vcmp.eq.f32.partialorder %v1456_v50, 8.507059e+37 }
 0x5a8   : > { %v1436_v8 = vmul.f32 %v3232_v45, %v1435_v47 }
 0x5aa   : > { %v1437_v57 = vadd.f32 %v3232_v45, %v1436_v8  ;;  %2186 = vrot.lane.b32.xlu0 %v3580_v60, %s3330_s13 }
 0x5ab   : > { %v3234_v61 = vpop.eup %3233 }
 0x5ac   : > { %v1441_v63 = vsel %vm1440_vm5, %v3232_v45, %v1437_v57  ;;  %v1448_v62 = vmul.f32 %v3234_v61, %v1370_v13  ;;  %v1761_v31 = vpop.permute.xlu2 %1760  ;;  %vm1453_vm7 = vweird.f32 %v3234_v61 }
 0x5ad   : > { %v1446_v0 = vsel %vm1443_vm6, %v1445_v15, %v1441_v63  ;;  %2992 = vmatpush.xpose.msk.msra.mxu3 %vm641_vm11, %v1761_v31  ;;  %vm1454_vm9 = vmor %vm1452_vm8, %vm1453_vm7 }
 0x5ae   : > { %v1449_v29 = vsub.f32 1.0, %v1448_v62  ;;  %v1493_v49 = vmul.f32 %v3895_v37, %v1446_v0  ;;  %v1718_v40 = vpop.permute.xlu0 %1717 }
 0x5b0   : > { %v1450_v14 = vmul.f32 %v3234_v61, %v1449_v29  ;;  %2976 = vmatmul.msk.f32.vlgmr.msrb.gmra.mxu2 %vm800_vm12, %v1493_v49 }
 0x5b2   : > { %2184 = vrot.lane.b32.xlu0 %v3577_v59, %s3330_s13  ;;  %v1451_v17 = vadd.f32 %v3234_v61, %v1450_v14 }
 0x5b4   : > { %v3973_v20 = vpop.permute.xlu2 %1754  ;;  %v1455_v23 = vsel %vm1454_vm9, %v3234_v61, %v1451_v17 }
 0x5b5   : > { %v1460_v24 = vsel %vm1457_vm10, %v1459_v18, %v1455_v23 }
 0x5b6   : > { %v1494_v37 = vmul.f32 %v3901_v51, %v1460_v24 }
 0x5b8   : > { %2977 = vmatmul.msk.f32.gmra.mxu2 %vm800_vm12, %v1494_v37 }
 0x5bc   : > { %v3117_v25 = vpop.permute.xlu2 %3116 }
 0x5bd   : > { %v3118_v44 = vunpack.i.l.bf16 %v3117_v25  ;;  %v3119_v27 = vunpack.i.h.bf16 %v3117_v25 }
 0x5bf   : > { %2027 = vmatpush.msrb.mxu0 %v3118_v44  ;;  %v1376_v19 = vpop.xlane.xlu1 %1375 }
 0x5c0   : > { %2990 = vmatmul.msk.f32.vlgmr.msra.gmra.mxu2 %vm641_vm11, %v1716_v26  ;;  %v1486_v18 = vand.u32 2147483648, %v1376_v19  ;;  %vm1480_vm7 = vweird.f32 %v1376_v19  ;;  %v1484_v24 = vand.u32 2147483647, %v1376_v19 }
 0x5c1   : > { %2028 = vmatpush.msrb.mxu0 %v3119_v27 }
 0x5c2   : > { %v1487_v26 = vor.u32 1.1754944e-38, %v1486_v18  ;;  %vm1485_vm9 = vcmp.eq.f32.partialorder %v1484_v24, 8.507059e+37 }
 0x5c4   : > { %v2146_v42 = vpop.permute.xlu2 %2145 }
 0x5c8   : > { %2991 = vmatmul.msk.f32.gmra.mxu2 %vm641_vm11, %v1718_v40 }
 0x5d7   : > { %v1759_v4 = vpop.permute.xlu1 %1758 }
 0x5d8   : > { %2993 = vmatpush.xpose.msk.msra.mxu3 %vm641_vm11, %v1759_v4 }
 0x5d9   : > { %v1364_v16 = vpop.xlane.xlu0 %1363 }
 0x5da   : > { %3235 = vrcp.f32 %v1364_v16  ;;  %v1430_v58 = vand.u32 2147483648, %v1364_v16  ;;  %v1428_v13 = vand.u32 2147483647, %v1364_v16  ;;  %vm1424_vm14 = vweird.f32 %v1364_v16 }
 0x5db   : > { %3237 = vrcp.f32 %v1376_v19 }
 0x5dc   : > { %v1431_v8 = vor.u32 1.1754944e-38, %v1430_v58  ;;  %vm1429_vm1 = vcmp.eq.f32.partialorder %v1428_v13, 8.507059e+37 }
 0x5df   : > { %v2148_v51 = vpop.permute.xlu1 %2147 }
 0x5e0   : > { %v3236_v33 = vpop.eup %3235  ;;  %3004 = vmatpush.xpose.msk.msra.mxu0 %vm641_vm11, %v2148_v51 }
 0x5e1   : > { %v1420_v22 = vmul.f32 %v3236_v33, %v1364_v16  ;;  %v1373_v34 = vpop.xlane.xlu0 %1372  ;;  %v3238_v10 = vpop.eup %3237  ;;  %vm1425_vm13 = vweird.f32 %v3236_v33 }
 0x5e2   : > { %3239 = vrcp.f32 %v1373_v34  ;;  %v1476_v45 = vmul.f32 %v3238_v10, %v1376_v19  ;;  %vm1426_vm15 = vmor %vm1424_vm14, %vm1425_vm13  ;;  %v1472_v31 = vand.u32 2147483648, %v1373_v34  ;;  %v1470_v49 = vand.u32 2147483647, %v1373_v34 }
 0x5e3   : > { %v1421_v55 = vsub.f32 1.0, %v1420_v22  ;;  %vm1466_vm3 = vweird.f32 %v1373_v34  ;;  %vm1481_vm6 = vweird.f32 %v3238_v10 }
 0x5e4   : > { %3005 = vmatpush.xpose.msk.msra.mxu0 %vm641_vm11, %v2146_v42  ;;  %v1477_v32 = vsub.f32 1.0, %v1476_v45  ;;  %v1473_v14 = vor.u32 1.1754944e-38, %v1472_v31  ;;  %vm1471_vm5 = vcmp.eq.f32.partialorder %v1470_v49, 8.507059e+37  ;;  %vm1482_vm8 = vmor %vm1480_vm7, %vm1481_vm6 }
 0x5e5   : > { %v1422_v46 = vmul.f32 %v3236_v33, %v1421_v55 }
 0x5e6   : > { %v1478_v0 = vmul.f32 %v3238_v10, %v1477_v32 }
 0x5e7   : > { %v1423_v47 = vadd.f32 %v3236_v33, %v1422_v46  ;;  %v608_v46 = vld [vmem:[%s4377_s1 + $0x28] sm:$0xff] }
 0x5e8   : > { %v3240_v30 = vpop.eup %3239  ;;  %v1479_v17 = vadd.f32 %v3238_v10, %v1478_v0 }
 0x5e9   : > { %v1462_v57 = vmul.f32 %v3240_v30, %v1373_v34  ;;  %v1427_v61 = vsel %vm1426_vm15, %v3236_v33, %v1423_v47  ;;  %vm1467_vm2 = vweird.f32 %v3240_v30 }
 0x5ea   : > { %v1432_v15 = vsel %vm1429_vm1, %v1431_v8, %v1427_v61  ;;  %vm1468_vm4 = vmor %vm1466_vm3, %vm1467_vm2  ;;  %v1483_v25 = vsel %vm1482_vm8, %v3238_v10, %v1479_v17  ;;  %v607_v10 = vld [vmem:[%s4377_s1 + $0x20] sm:$0xff] }
 0x5eb   : > { %v1463_v63 = vsub.f32 1.0, %v1462_v57  ;;  %v1492_v62 = vmul.f32 %v3927_v21, %v1432_v15  ;;  %v1488_v44 = vsel %vm1485_vm9, %v1487_v26, %v1483_v25  ;;  %v623_v15 = vld [vmem:[%s4377_s1 + $0xa0] sm:$0xff] }
 0x5ec   : > { %v1496_v27 = vmul.f32 %v3913_v9, %v1488_v44  ;;  %v616_v44 = vld [vmem:[%s4377_s1 + $0x68] sm:$0xff] }
 0x5ed   : > { %v1464_v29 = vmul.f32 %v3240_v30, %v1463_v63  ;;  %2975 = vmatmul.msk.f32.gmra.mxu1 %vm800_vm12, %v1492_v62 }
 0x5ef   : > { %v1465_v28 = vadd.f32 %v3240_v30, %v1464_v29  ;;  %v624_v29 = vld [vmem:[%s4377_s1 + $0xa8] sm:$0xff] }
 0x5f1   : > { %v1469_v50 = vsel %vm1468_vm4, %v3240_v30, %v1465_v28 }
 0x5f2   : > { %v1474_v23 = vsel %vm1471_vm5, %v1473_v14, %v1469_v50 }
 0x5f3   : > { %v1495_v21 = vmul.f32 %v3933_v43, %v1474_v23  ;;  %v615_v23 = vld [vmem:[%s4377_s1 + $0x60] sm:$0xff] }
 0x5f4   : > { %v1679_v37 = vpop.permute.xlu0 %1678 }
 0x5f5   : > { %2978 = vmatmul.msk.f32.vlgmr.msrb.gmra.mxu3 %vm800_vm12, %v1495_v21  ;;  %2986 = vmatmul.msk.f32.vlgmr.msra.gmra.mxu1 %vm641_vm11, %v3952_v39 }
 0x5fc   : > { %v1757_v40 = vpop.permute.xlu0 %1756 }
 0x5fd   : > { %2979 = vmatmul.msk.f32.gmra.mxu3 %vm800_vm12, %v1496_v27  ;;  %2987 = vmatmul.msk.f32.gmra.mxu1 %vm641_vm11, %v1679_v37 }
 0x604   : > { %v3991_v43 = vpop.f32.mrf.mxu0  ;;  %v3122_v19 = vpop.permute.xlu0 %3121 }
 0x605   : > { %v3123_v4 = vunpack.i.l.bf16 %v3122_v19  ;;  %2994 = vmatmul.msk.f32.vlgmr.msra.gmra.mxu3 %vm641_vm11, %v3973_v20  ;;  %v3124_v16 = vunpack.i.h.bf16 %v3122_v19 }
 0x607   : > { %2062 = vmatpush.msrb.mxu1 %v3123_v4 }
 0x609   : > { %2063 = vmatpush.msrb.mxu1 %v3124_v16 }
 0x60c   : > { %v3127_v39 = vpop.permute.xlu0 %3126  ;;  %v4022_v50 = vpop.f32.mrf.mxu1 }
 0x60d   : > { %v3995_v51 = vpop.f32.mrf.mxu0  ;;  %v3128_v33 = vunpack.i.l.bf16 %v3127_v39  ;;  %2995 = vmatmul.msk.f32.gmra.mxu3 %vm641_vm11, %v1757_v40  ;;  %v3129_v9 = vunpack.i.h.bf16 %v3127_v39  ;;  %v631_v39 = vld [vmem:[%s4377_s1 + $0xe0] sm:$0xff] }
 0x60f   : > { %2097 = vmatpush.msrb.mxu2 %v3128_v33 }
 0x611   : > { %2098 = vmatpush.msrb.mxu2 %v3129_v9 }
 0x614   : > { %v3998_v22 = vpop.permute.xlu0 %2143 }
 0x615   : > { %v1670_v34 = vpop.f32.mrf.mxu0 }
 0x616   : > { %v1793_v20 = vmul.f32 0.0625, %v1670_v34 }
 0x618   : > { %v1801_v42 = vadd.f32 %v1793_v20, %v607_v10 }
 0x61a   : > { %v1809_v55 = vsel %vm800_vm12, %v1801_v42, -inf }
 0x61b   : > { %1810 = vmax.xlane.f32.xlu2 %v1809_v55 }
 0x61c   : > { %v2187_v58 = vpop.permute.xlu0 %2186 }
 0x61d   : > { %v1673_v45 = vpop.f32.mrf.mxu0  ;;  %3008 = vmatpush.xpose.msk.msra.mxu1 %vm641_vm11, %v2187_v58 }
 0x61e   : > { %v1794_v13 = vmul.f32 0.0625, %v1673_v45 }
 0x620   : > { %v1802_v47 = vadd.f32 %v1794_v13, %v608_v46 }
 0x622   : > { %v1812_v30 = vsel %vm800_vm12, %v1802_v47, -inf }
 0x623   : > { %1813 = vmax.xlane.f32.xlu0 %v1812_v30 }
 0x624   : > { %v2185_v8 = vpop.permute.xlu0 %2184 }
 0x625   : > { %3009 = vmatpush.xpose.msk.msra.mxu1 %vm641_vm11, %v2185_v8 }
 0x633   : > { %v4010_v32 = vpop.f32.mrf.mxu2 }
 0x63b   : > { %v4012_v57 = vpop.f32.mrf.mxu2 }
 0x643   : > { %v1748_v61 = vpop.f32.mrf.mxu2 }
 0x644   : > { %v1797_v63 = vmul.f32 0.0625, %v1748_v61 }
 0x646   : > { %v1805_v62 = vadd.f32 %v1797_v63, %v623_v15 }
 0x648   : > { %v1821_v31 = vsel %vm800_vm12, %v1805_v62, -inf }
 0x649   : > { %1822 = vmax.xlane.f32.xlu2 %v1821_v31 }
 0x64b   : > { %v1751_v0 = vpop.f32.mrf.mxu2 }
 0x64c   : > { %v1798_v49 = vmul.f32 0.0625, %v1751_v0 }
 0x64e   : > { %v1806_v28 = vadd.f32 %v1798_v49, %v624_v29 }
 0x650   : > { %v1824_v14 = vsel %vm800_vm12, %v1806_v28, -inf }
 0x651   : > { %1825 = vmax.xlane.f32.xlu2 %v1824_v14 }
 0x66a   : > { %v4024_v17 = vpop.f32.mrf.mxu1 }
 0x672   : > { %v1709_v18 = vpop.f32.mrf.mxu1 }
 0x673   : > { %v1795_v21 = vmul.f32 0.0625, %v1709_v18 }
 0x675   : > { %v1803_v24 = vadd.f32 %v1795_v21, %v615_v23 }
 0x677   : > { %v1815_v37 = vsel %vm800_vm12, %v1803_v24, -inf }
 0x678   : > { %v4030_v25 = vpop.f32.mrf.mxu3  ;;  %1816 = vmax.xlane.f32.xlu1 %v1815_v37 }
 0x67a   : > { %v1712_v26 = vpop.f32.mrf.mxu1 }
 0x67b   : > { %v1796_v27 = vmul.f32 0.0625, %v1712_v26 }
 0x67d   : > { %v1804_v40 = vadd.f32 %v1796_v27, %v616_v44 }
 0x67f   : > { %v1818_v19 = vsel %vm800_vm12, %v1804_v40, -inf }
 0x680   : > { %v4036_v4 = vpop.f32.mrf.mxu3  ;;  %1819 = vmax.xlane.f32.xlu0 %v1818_v19 }
 0x688   : > { %v1787_v16 = vpop.f32.mrf.mxu3 }
 0x689   : > { %v1799_v33 = vmul.f32 0.0625, %v1787_v16 }
 0x68b   : > { %v1807_v9 = vadd.f32 %v1799_v33, %v631_v39 }
 0x68d   : > { %v1827_v34 = vsel %vm800_vm12, %v1807_v9, -inf }
 0x68e   : > { %v1811_v10 = vpop.xlane.xlu2 %1810  ;;  %1828 = vmax.xlane.f32.xlu0 %v1827_v34 }
 0x68f   : > { %v1833_v20 = vsub.f32 %v1801_v42, %v1811_v10 }
 0x690   : > { %v1790_v46 = vpop.f32.mrf.mxu3 }
 0x691   : > { %v1841_v55 = vmul.f32 1.442695, %v1833_v20  ;;  %2141 = vrot.lane.b32.xlu1 %v3586_v1, %s3331_s9  ;;  %v1800_v13 = vmul.f32 0.0625, %v1790_v46  ;;  %v632_v1 = vld [vmem:[%s4377_s1 + $0xe8] sm:$0xff] }
 0x693   : > { %3241 = vpow2.f32 %v1841_v55  ;;  %v4059_v42 = vadd.f32 %v1800_v13, %v632_v1 }
 0x696   : > { %v1814_v30 = vpop.xlane.xlu0 %1813 }
 0x697   : > { %v1834_v8 = vsub.f32 %v1802_v47, %v1814_v30 }
 0x699   : > { %v4044_v58 = vpop.eup %3241  ;;  %v1843_v15 = vmul.f32 1.442695, %v1834_v8 }
 0x69a   : > { %v1857_v45 = vsel %vm800_vm12, %v4044_v58, 0.0 }
 0x69b   : > { %1858 = vadd.xlane.f32.xlu2 %v1857_v45  ;;  %3243 = vpow2.f32 %v1843_v15 }
 0x6a1   : > { %v4063_v29 = vpop.eup %3243 }
 0x6a2   : > { %2180 = vrot.lane.b32.xlu0 %v3577_v59, %s3331_s9  ;;  %v1830_v59 = vsel %vm800_vm12, %v4059_v42, -inf  ;;  %v1860_v14 = vsel %vm800_vm12, %v4063_v29, 0.0 }
 0x6aa   : > { %3131 = vrot.lane.b32.xlu0 %v3684_v54, %s3329_s10  ;;  %s3334_s10 = smov 8  }
 0x6b2   : > { %2223 = vrot.lane.b32.xlu0 %v3598_v7, %s3330_s13 }
 0x6b3   : > { %2225 = vrot.lane.b32.xlu2 %v3589_v3, %s3330_s13 }
 0x6bb   : > { %1831 = vmax.xlane.f32.xlu1 %v1830_v59 }
 0x6bc   : > { %v1823_v61 = vpop.xlane.xlu2 %1822 }
 0x6bd   : > { %v1837_v63 = vsub.f32 %v1805_v62, %v1823_v61 }
 0x6bf   : > { %v1849_v31 = vmul.f32 1.442695, %v1837_v63 }
 0x6c1   : > { %3245 = vpow2.f32 %v1849_v31 }
 0x6c4   : > { %v1826_v0 = vpop.xlane.xlu2 %1825 }
 0x6c5   : > { %v1838_v49 = vsub.f32 %v1806_v28, %v1826_v0 }
 0x6c7   : > { %v1851_v18 = vmul.f32 1.442695, %v1838_v49  ;;  %v4067_v23 = vpop.eup %3245 }
 0x6c8   : > { %v1869_v47 = vsel %vm800_vm12, %v4067_v23, 0.0 }
 0x6c9   : > { %3247 = vpow2.f32 %v1851_v18 }
 0x6cf   : > { %v4071_v21 = vpop.eup %3247 }
 0x6d0   : > { %v1872_v37 = vsel %vm800_vm12, %v4071_v21, 0.0 }
 0x6dc   : > { %1861 = vadd.xlane.f32.xlu0 %v1860_v14 }
 0x6e4   : > { %1870 = vadd.xlane.f32.xlu0 %v1869_v47 }
 0x6eb   : > { %v1817_v62 = vpop.xlane.xlu1 %1816 }
 0x6ec   : > { %v1835_v26 = vsub.f32 %v1803_v24, %v1817_v62  ;;  %1873 = vadd.xlane.f32.xlu0 %v1872_v37 }
 0x6ee   : > { %v1845_v28 = vmul.f32 1.442695, %v1835_v26 }
 0x6f0   : > { %3249 = vpow2.f32 %v1845_v28 }
 0x6f3   : > { %v1820_v44 = vpop.xlane.xlu0 %1819 }
 0x6f4   : > { %v1836_v27 = vsub.f32 %v1804_v40, %v1820_v44 }
 0x6f6   : > { %v4075_v19 = vpop.eup %3249  ;;  %v1847_v16 = vmul.f32 1.442695, %v1836_v27 }
 0x6f7   : > { %v1863_v39 = vsel %vm800_vm12, %v4075_v19, 0.0 }
 0x6f8   : > { %3251 = vpow2.f32 %v1847_v16  ;;  %1864 = vadd.xlane.f32.xlu1 %v1863_v39 }
 0x6fe   : > { %v4079_v33 = vpop.eup %3251 }
 0x6ff   : > { %v1866_v34 = vsel %vm800_vm12, %v4079_v33, 0.0 }
 0x700   : > { %1867 = vadd.xlane.f32.xlu1 %v1866_v34  ;;  %2221 = vrot.lane.b32.xlu0 %v3589_v3, %s3331_s9 }
 0x701   : > { %v1829_v24 = vpop.xlane.xlu0 %1828 }
 0x702   : > { %v1839_v10 = vsub.f32 %v1807_v9, %v1829_v24 }
 0x703   : > { %v2142_v62 = vpop.permute.xlu1 %2141 }
 0x704   : > { %v1853_v40 = vmul.f32 1.442695, %v1839_v10 }
 0x706   : > { %3253 = vpow2.f32 %v1853_v40 }
 0x708   : > { %2262 = vrot.lane.b32.xlu0 %v3593_v6, %s3330_s13 }
 0x70c   : > { %v4087_v20 = vpop.eup %3253 }
 0x70d   : > { %v1875_v55 = vsel %vm800_vm12, %v4087_v20, 0.0 }
 0x70e   : > { %v1859_v45 = vpop.xlane.xlu2 %1858  ;;  %1876 = vadd.xlane.f32.xlu2 %v1875_v55 }
 0x70f   : > { %3255 = vrcp.f32 %v1859_v45  ;;  %v1892_v59 = vand.u32 2147483648, %v1859_v45  ;;  %v1890_v8 = vand.u32 2147483647, %v1859_v45  ;;  %vm1886_vm13 = vweird.f32 %v1859_v45 }
 0x710   : > { %2260 = vrot.lane.b32.xlu0 %v3591_v5, %s3331_s9 }
 0x711   : > { %v1893_v63 = vor.u32 1.1754944e-38, %v1892_v59  ;;  %vm1891_vm15 = vcmp.eq.f32.partialorder %v1890_v8, 8.507059e+37 }
 0x714   : > { %v4093_v46 = vpop.permute.xlu0 %2180 }
 0x715   : > { %v3256_v3 = vpop.eup %3255 }
 0x716   : > { %v1882_v9 = vmul.f32 %v3256_v3, %v1859_v45  ;;  %v2226_v13 = vpop.permute.xlu2 %2225  ;;  %vm1887_vm10 = vweird.f32 %v3256_v3 }
 0x717   : > { %3012 = vmatpush.xpose.msk.msra.mxu2 %vm641_vm11, %v2226_v13  ;;  %vm1888_vm14 = vmor %vm1886_vm13, %vm1887_vm10 }
 0x718   : > { %v1883_v1 = vsub.f32 1.0, %v1882_v9 }
 0x71a   : > { %v1884_v30 = vmul.f32 %v3256_v3, %v1883_v1 }
 0x71c   : > { %v1885_v61 = vadd.f32 %v3256_v3, %v1884_v30  ;;  %v3132_v15 = vpop.permute.xlu0 %3131 }
 0x71d   : > { %v3133_v31 = vunpack.i.l.bf16 %v3132_v15  ;;  %v3134_v14 = vunpack.i.h.bf16 %v3132_v15 }
 0x71e   : > { %v1889_v0 = vsel %vm1888_vm14, %v3256_v3, %v1885_v61 }
 0x71f   : > { %v1894_v49 = vsel %vm1891_vm15, %v1893_v63, %v1889_v0  ;;  %2132 = vmatpush.msrb.mxu3 %v3133_v31 }
 0x720   : > { %v1993_v18 = vmul.f32 %v4044_v58, %v1894_v49 }
 0x721   : > { %2133 = vmatpush.msrb.mxu3 %v3134_v14 }
 0x722   : > { %2996 = vmatmul.msk.f32.vlgmr.msrb.gmra.mxu0 %vm800_vm12, %v1993_v18 }
 0x724   : > { %v2224_v47 = vpop.permute.xlu0 %2223 }
 0x725   : > { %3013 = vmatpush.xpose.msk.msra.mxu2 %vm641_vm11, %v2224_v47 }
 0x726   : > { %2182 = vrot.lane.b32.xlu2 %v3580_v60, %s3331_s9 }
 0x72e   : > { %v1832_v37 = vpop.xlane.xlu1 %1831  ;;  %2264 = vrot.lane.b32.xlu2 %v3591_v5, %s3330_s13  ;;  %s3335_s13 = smov 24  }
 0x72f   : > { %v1840_v26 = vsub.f32 %v4059_v42, %v1832_v37 }
 0x731   : > { %v1855_v28 = vmul.f32 1.442695, %v1840_v26 }
 0x733   : > { %3257 = vpow2.f32 %v1855_v28 }
 0x736   : > { %2258 = vrot.lane.b32.xlu2 %v3593_v6, %s3331_s9 }
 0x739   : > { %v4106_v58 = vpop.eup %3257 }
 0x73a   : > { %v1878_v44 = vsel %vm800_vm12, %v4106_v58, 0.0 }
 0x73b   : > { %1879 = vadd.xlane.f32.xlu1 %v1878_v44 }
 0x74f   : > { %v1862_v27 = vpop.xlane.xlu0 %1861 }
 0x750   : > { %3259 = vrcp.f32 %v1862_v27  ;;  %v1906_v39 = vand.u32 2147483648, %v1862_v27  ;;  %v1904_v6 = vand.u32 2147483647, %v1862_v27  ;;  %vm1900_vm2 = vweird.f32 %v1862_v27 }
 0x752   : > { %v1907_v40 = vor.u32 1.1754944e-38, %v1906_v39  ;;  %vm1905_vm4 = vcmp.eq.f32.partialorder %v1904_v6, 8.507059e+37 }
 0x754   : > { %2219 = vrot.lane.b32.xlu1 %v3598_v7, %s3331_s9 }
 0x756   : > { %v3260_v60 = vpop.eup %3259 }
 0x757   : > { %v1896_v5 = vmul.f32 %v3260_v60, %v1862_v27  ;;  %v1871_v16 = vpop.xlane.xlu0 %1870  ;;  %vm1901_vm1 = vweird.f32 %v3260_v60 }
 0x758   : > { %3261 = vrcp.f32 %v1871_v16  ;;  %vm1902_vm3 = vmor %vm1900_vm2, %vm1901_vm1  ;;  %v1948_v1 = vand.u32 2147483648, %v1871_v16  ;;  %v1946_v30 = vand.u32 2147483647, %v1871_v16  ;;  %vm1942_vm6 = vweird.f32 %v1871_v16 }
 0x759   : > { %v1897_v42 = vsub.f32 1.0, %v1896_v5 }
 0x75a   : > { %v1949_v15 = vor.u32 1.1754944e-38, %v1948_v1  ;;  %vm1947_vm8 = vcmp.eq.f32.partialorder %v1946_v30, 8.507059e+37 }
 0x75b   : > { %v1898_v34 = vmul.f32 %v3260_v60, %v1897_v42 }
 0x75d   : > { %v1899_v24 = vadd.f32 %v3260_v60, %v1898_v34 }
 0x75e   : > { %v3262_v10 = vpop.eup %3261 }
 0x75f   : > { %v1938_v55 = vmul.f32 %v3262_v10, %v1871_v16  ;;  %v1874_v45 = vpop.xlane.xlu0 %1873  ;;  %v1903_v3 = vsel %vm1902_vm3, %v3260_v60, %v1899_v24  ;;  %vm1943_vm5 = vweird.f32 %v3262_v10 }
 0x760   : > { %3263 = vrcp.f32 %v1874_v45  ;;  %v1908_v7 = vsel %vm1905_vm4, %v1907_v40, %v1903_v3  ;;  %vm1944_vm7 = vmor %vm1942_vm6, %vm1943_vm5  ;;  %v1962_v18 = vand.u32 2147483648, %v1874_v45  ;;  %v1960_v37 = vand.u32 2147483647, %v1874_v45 }
 0x761   : > { %v1939_v9 = vsub.f32 1.0, %v1938_v55  ;;  %v1994_v13 = vmul.f32 %v4063_v29, %v1908_v7  ;;  %vm1956_vm10 = vweird.f32 %v1874_v45 }
 0x762   : > { %v1963_v28 = vor.u32 1.1754944e-38, %v1962_v18  ;;  %vm1961_vm14 = vcmp.eq.f32.partialorder %v1960_v37, 8.507059e+37 }
 0x763   : > { %v1940_v59 = vmul.f32 %v3262_v10, %v1939_v9  ;;  %2997 = vmatmul.msk.f32.gmra.mxu0 %vm800_vm12, %v1994_v13 }
 0x765   : > { %v1941_v8 = vadd.f32 %v3262_v10, %v1940_v59 }
 0x766   : > { %v3264_v61 = vpop.eup %3263 }
 0x767   : > { %v1945_v63 = vsel %vm1944_vm7, %v3262_v10, %v1941_v8  ;;  %v1952_v31 = vmul.f32 %v3264_v61, %v1874_v45  ;;  %vm1957_vm9 = vweird.f32 %v3264_v61 }
 0x768   : > { %v1950_v0 = vsel %vm1947_vm8, %v1949_v15, %v1945_v63  ;;  %vm1958_vm13 = vmor %vm1956_vm10, %vm1957_vm9 }
 0x769   : > { %v1953_v49 = vsub.f32 1.0, %v1952_v31  ;;  %v1997_v14 = vmul.f32 %v4067_v23, %v1950_v0 }
 0x76b   : > { %v1954_v29 = vmul.f32 %v3264_v61, %v1953_v49  ;;  %v1865_v47 = vpop.xlane.xlu1 %1864  ;;  %3000 = vmatmul.msk.f32.vlgmr.msrb.gmra.mxu2 %vm800_vm12, %v1997_v14  ;;  %3006 = vmatmul.msk.f32.vlgmr.msra.gmra.mxu0 %vm641_vm11, %v2142_v62 }
 0x76c   : > { %3265 = vrcp.f32 %v1865_v47  ;;  %v1920_v42 = vand.u32 2147483648, %v1865_v47  ;;  %v1918_v34 = vand.u32 2147483647, %v1865_v47  ;;  %vm1914_vm1 = vweird.f32 %v1865_v47 }
 0x76d   : > { %v1955_v26 = vadd.f32 %v3264_v61, %v1954_v29 }
 0x76e   : > { %v1921_v10 = vor.u32 1.1754944e-38, %v1920_v42  ;;  %vm1919_vm3 = vcmp.eq.f32.partialorder %v1918_v34, 8.507059e+37 }
 0x76f   : > { %v1959_v44 = vsel %vm1958_vm13, %v3264_v61, %v1955_v26 }
 0x770   : > { %v1964_v27 = vsel %vm1961_vm14, %v1963_v28, %v1959_v44 }
 0x771   : > { %v1998_v60 = vmul.f32 %v4071_v21, %v1964_v27 }
 0x772   : > { %v3266_v23 = vpop.eup %3265  ;;  %v2222_v31 = vpop.permute.xlu0 %2221 }
 0x773   : > { %v1910_v5 = vmul.f32 %v3266_v23, %v1865_v47  ;;  %v1868_v16 = vpop.xlane.xlu1 %1867  ;;  %3001 = vmatmul.msk.f32.gmra.mxu2 %vm800_vm12, %v1998_v60  ;;  %3007 = vmatmul.msk.f32.gmra.mxu0 %vm641_vm11, %v3998_v22  ;;  %vm1915_vm15 = vweird.f32 %v3266_v23 }
 0x774   : > { %3267 = vrcp.f32 %v1868_v16  ;;  %vm1916_vm2 = vmor %vm1914_vm1, %vm1915_vm15  ;;  %v1934_v7 = vand.u32 2147483648, %v1868_v16  ;;  %v1932_v9 = vand.u32 2147483647, %v1868_v16  ;;  %vm1928_vm5 = vweird.f32 %v1868_v16 }
 0x775   : > { %v1911_v62 = vsub.f32 1.0, %v1910_v5 }
 0x776   : > { %v1935_v59 = vor.u32 1.1754944e-38, %v1934_v7  ;;  %vm1933_vm7 = vcmp.eq.f32.partialorder %v1932_v9, 8.507059e+37 }
 0x777   : > { %v1912_v39 = vmul.f32 %v3266_v23, %v1911_v62 }
 0x779   : > { %v1913_v6 = vadd.f32 %v3266_v23, %v1912_v39 }
 0x77a   : > { %v3268_v24 = vpop.eup %3267  ;;  %v2263_v44 = vpop.permute.xlu0 %2262 }
 0x77b   : > { %v1917_v21 = vsel %vm1916_vm2, %v3266_v23, %v1913_v6  ;;  %v1924_v40 = vmul.f32 %v3268_v24, %v1868_v16  ;;  %vm1929_vm4 = vweird.f32 %v3268_v24 }
 0x77c   : > { %v1922_v55 = vsel %vm1919_vm3, %v1921_v10, %v1917_v21  ;;  %vm1930_vm6 = vmor %vm1928_vm5, %vm1929_vm4 }
 0x77d   : > { %v1925_v45 = vsub.f32 1.0, %v1924_v40  ;;  %v1995_v3 = vmul.f32 %v4075_v19, %v1922_v55 }
 0x77f   : > { %v1926_v22 = vmul.f32 %v3268_v24, %v1925_v45  ;;  %2998 = vmatmul.msk.f32.vlgmr.msrb.gmra.mxu1 %vm800_vm12, %v1995_v3 }
 0x781   : > { %v1877_v13 = vpop.xlane.xlu2 %1876  ;;  %v1927_v1 = vadd.f32 %v3268_v24, %v1926_v22 }
 0x782   : > { %3269 = vrcp.f32 %v1877_v13  ;;  %v1976_v49 = vand.u32 2147483648, %v1877_v13  ;;  %v1974_v18 = vand.u32 2147483647, %v1877_v13  ;;  %vm1970_vm9 = vweird.f32 %v1877_v13  ;;  %v2261_v21 = vpop.permute.xlu0 %2260 }
 0x783   : > { %v1931_v30 = vsel %vm1930_vm6, %v3268_v24, %v1927_v1 }
 0x784   : > { %v1936_v8 = vsel %vm1933_vm7, %v1935_v59, %v1931_v30  ;;  %v1977_v47 = vor.u32 1.1754944e-38, %v1976_v49  ;;  %vm1975_vm13 = vcmp.eq.f32.partialorder %v1974_v18, 8.507059e+37 }
 0x785   : > { %v1996_v61 = vmul.f32 %v4079_v33, %v1936_v8 }
 0x787   : > { %2999 = vmatmul.msk.f32.gmra.mxu1 %vm800_vm12, %v1996_v61 }
 0x788   : > { %v3270_v19 = vpop.eup %3269 }
 0x789   : > { %v1966_v15 = vmul.f32 %v3270_v19, %v1877_v13  ;;  %v2183_v63 = vpop.permute.xlu2 %2182  ;;  %vm1971_vm8 = vweird.f32 %v3270_v19  ;;  %v610_v13 = vld [vmem:[%s4377_s1 + $0x38] sm:$0xff] }
 0x78a   : > { %vm1972_vm10 = vmor %vm1970_vm9, %vm1971_vm8 }
 0x78b   : > { %v1967_v0 = vsub.f32 1.0, %v1966_v15 }
 0x78d   : > { %v1968_v14 = vmul.f32 %v3270_v19, %v1967_v0 }
 0x78f   : > { %v1969_v29 = vadd.f32 %v3270_v19, %v1968_v14  ;;  %3010 = vmatmul.msk.f32.vlgmr.msra.gmra.mxu1 %vm641_vm11, %v4093_v46  ;;  %v618_v14 = vld [vmem:[%s4377_s1 + $0x78] sm:$0xff] }
 0x791   : > { %v1973_v37 = vsel %vm1972_vm10, %v3270_v19, %v1969_v29  ;;  %v2265_v33 = vpop.permute.xlu2 %2264  ;;  %v617_v19 = vld [vmem:[%s4377_s1 + $0x70] sm:$0xff] }
 0x792   : > { %v1978_v26 = vsel %vm1975_vm13, %v1977_v47, %v1973_v37  ;;  %3016 = vmatpush.xpose.msk.msra.mxu3 %vm641_vm11, %v2265_v33 }
 0x793   : > { %v1999_v28 = vmul.f32 %v4087_v20, %v1978_v26 }
 0x795   : > { %3002 = vmatmul.msk.f32.vlgmr.msrb.gmra.mxu3 %vm800_vm12, %v1999_v28 }
 0x796   : > { %3017 = vmatpush.xpose.msk.msra.mxu3 %vm641_vm11, %v2263_v44 }
 0x797   : > { %3011 = vmatmul.msk.f32.gmra.mxu1 %vm641_vm11, %v2183_v63 }
 0x799   : > { %v2259_v10 = vpop.permute.xlu2 %2258 }
 0x79f   : > { %v4138_v40 = vpop.f32.mrf.mxu0 }
 0x7ae   : > { %v1880_v27 = vpop.xlane.xlu1 %1879 }
 0x7af   : > { %3271 = vrcp.f32 %v1880_v27  ;;  %v1990_v5 = vand.u32 2147483648, %v1880_v27  ;;  %v1988_v62 = vand.u32 2147483647, %v1880_v27  ;;  %vm1984_vm15 = vweird.f32 %v1880_v27 }
 0x7b1   : > { %v1991_v39 = vor.u32 1.1754944e-38, %v1990_v5  ;;  %vm1989_vm2 = vcmp.eq.f32.partialorder %v1988_v62, 8.507059e+37  ;;  %v633_v5 = vld [vmem:[%s4377_s1 + $0xf0] sm:$0xff] }
 0x7b5   : > { %v3272_v46 = vpop.eup %3271 }
 0x7b6   : > { %v1980_v60 = vmul.f32 %v3272_v46, %v1880_v27  ;;  %vm1985_vm14 = vweird.f32 %v3272_v46  ;;  %v625_v27 = vld [vmem:[%s4377_s1 + $0xb0] sm:$0xff] }
 0x7b7   : > { %vm1986_vm1 = vmor %vm1984_vm15, %vm1985_vm14 }
 0x7b8   : > { %v1981_v23 = vsub.f32 1.0, %v1980_v60 }
 0x7ba   : > { %v1982_v16 = vmul.f32 %v3272_v46, %v1981_v23 }
 0x7bc   : > { %v1983_v42 = vadd.f32 %v3272_v46, %v1982_v16 }
 0x7be   : > { %v1987_v20 = vsel %vm1986_vm1, %v3272_v46, %v1983_v42 }
 0x7bf   : > { %v1992_v34 = vsel %vm1989_vm2, %v1991_v39, %v1987_v20  ;;  %v626_v39 = vld [vmem:[%s4377_s1 + $0xb8] sm:$0xff] }
 0x7c0   : > { %v2000_v6 = vmul.f32 %v4106_v58, %v1992_v34  ;;  %v609_v58 = vld [vmem:[%s4377_s1 + $0x30] sm:$0xff] }
 0x7c2   : > { %3003 = vmatmul.msk.f32.gmra.mxu3 %vm800_vm12, %v2000_v6 }
 0x7c6   : > { %v2220_v24 = vpop.permute.xlu1 %2219 }
 0x7c7   : > { %3014 = vmatmul.msk.f32.vlgmr.msra.gmra.mxu2 %vm641_vm11, %v2220_v24 }
 0x7ca   : > { %3018 = vmatmul.msk.f32.vlgmr.msra.gmra.mxu3 %vm641_vm11, %v2259_v10 }
 0x7cf   : > { %3015 = vmatmul.msk.f32.gmra.mxu2 %vm641_vm11, %v2222_v31 }
 0x7d2   : > { %3019 = vmatmul.msk.f32.gmra.mxu3 %vm641_vm11, %v2261_v21  ;;  %v634_v21 = vld [vmem:[%s4377_s1 + $0xf8] sm:$0xff] }
 0x7e0   : > { %v4140_v55 = vpop.f32.mrf.mxu0 }
 0x7e8   : > { %v2174_v45 = vpop.f32.mrf.mxu0 }
 0x7e9   : > { %v2297_v3 = vmul.f32 0.0625, %v2174_v45 }
 0x7eb   : > { %v2305_v7 = vadd.f32 %v2297_v3, %v609_v58 }
 0x7ed   : > { %v2313_v22 = vsel %vm800_vm12, %v2305_v7, -inf }
 0x7ee   : > { %2314 = vmax.xlane.f32.xlu1 %v2313_v22  ;;  %v4162_v37 = vpop.f32.mrf.mxu2 }
 0x7f0   : > { %v2177_v9 = vpop.f32.mrf.mxu0 }
 0x7f1   : > { %v2298_v1 = vmul.f32 0.0625, %v2177_v9 }
 0x7f3   : > { %v2306_v59 = vadd.f32 %v2298_v1, %v610_v13 }
 0x7f5   : > { %v2316_v30 = vsel %vm800_vm12, %v2306_v59, -inf }
 0x7f6   : > { %2317 = vmax.xlane.f32.xlu2 %v2316_v30  ;;  %v4166_v26 = vpop.f32.mrf.mxu2 }
 0x7fc   : > { %v4150_v8 = vpop.f32.mrf.mxu1 }
 0x804   : > { %v4152_v61 = vpop.f32.mrf.mxu1 }
 0x80c   : > { %v2213_v15 = vpop.f32.mrf.mxu1 }
 0x80d   : > { %v2299_v63 = vmul.f32 0.0625, %v2213_v15 }
 0x80f   : > { %v2307_v31 = vadd.f32 %v2299_v63, %v617_v19 }
 0x811   : > { %v2319_v0 = vsel %vm800_vm12, %v2307_v31, -inf }
 0x812   : > { %2320 = vmax.xlane.f32.xlu0 %v2319_v0 }
 0x814   : > { %v2216_v49 = vpop.f32.mrf.mxu1 }
 0x815   : > { %v2300_v18 = vmul.f32 0.0625, %v2216_v49 }
 0x817   : > { %v2308_v29 = vadd.f32 %v2300_v18, %v618_v14 }
 0x818   : > { %v4164_v33 = vpop.f32.mrf.mxu3 }
 0x819   : > { %v2322_v47 = vsel %vm800_vm12, %v2308_v29, -inf }
 0x81a   : > { %2323 = vmax.xlane.f32.xlu1 %v2322_v47 }
 0x845   : > { %v4168_v28 = vpop.f32.mrf.mxu3 }
 0x84a   : > { %v2252_v44 = vpop.f32.mrf.mxu2 }
 0x84b   : > { %v2301_v46 = vmul.f32 0.0625, %v2252_v44 }
 0x84d   : > { %v2291_v60 = vpop.f32.mrf.mxu3  ;;  %v2309_v23 = vadd.f32 %v2301_v46, %v625_v27 }
 0x84e   : > { %v2303_v16 = vmul.f32 0.0625, %v2291_v60 }
 0x84f   : > { %v2325_v62 = vsel %vm800_vm12, %v2309_v23, -inf }
 0x850   : > { %2326 = vmax.xlane.f32.xlu2 %v2325_v62  ;;  %v2311_v42 = vadd.f32 %v2303_v16, %v633_v5 }
 0x852   : > { %v2255_v20 = vpop.f32.mrf.mxu2  ;;  %v2331_v34 = vsel %vm800_vm12, %v2311_v42, -inf }
 0x853   : > { %v2302_v6 = vmul.f32 0.0625, %v2255_v20  ;;  %2332 = vmax.xlane.f32.xlu1 %v2331_v34 }
 0x855   : > { %v4181_v24 = vadd.f32 %v2302_v6, %v626_v39  ;;  %v2294_v10 = vpop.f32.mrf.mxu3 }
 0x856   : > { %v2304_v45 = vmul.f32 0.0625, %v2294_v10 }
 0x857   : > { %v2328_v58 = vsel %vm800_vm12, %v4181_v24, -inf }
 0x858   : > { %2329 = vmax.xlane.f32.xlu0 %v2328_v58  ;;  %v2312_v3 = vadd.f32 %v2304_v45, %v634_v21 }
 0x85a   : > { %v2334_v22 = vsel %vm800_vm12, %v2312_v3, -inf }
 0x85b   : > { %2335 = vmax.xlane.f32.xlu2 %v2334_v22 }
 0x861   : > { %v2315_v9 = vpop.xlane.xlu1 %2314 }
 0x862   : > { %v2337_v13 = vsub.f32 %v2305_v7, %v2315_v9 }
 0x864   : > { %v2345_v1 = vmul.f32 1.442695, %v2337_v13 }
 0x866   : > { %3273 = vpow2.f32 %v2345_v1 }
 0x869   : > { %v2318_v30 = vpop.xlane.xlu2 %2317 }
 0x86a   : > { %v2338_v19 = vsub.f32 %v2306_v59, %v2318_v30 }
 0x86c   : > { %v4189_v15 = vpop.eup %3273  ;;  %v2347_v63 = vmul.f32 1.442695, %v2338_v19 }
 0x86d   : > { %v2361_v0 = vsel %vm800_vm12, %v4189_v15, 0.0 }
 0x86e   : > { %3275 = vpow2.f32 %v2347_v63  ;;  %2362 = vadd.xlane.f32.xlu0 %v2361_v0 }
 0x874   : > { %v4193_v49 = vpop.eup %3275 }
 0x875   : > { %v2364_v14 = vsel %vm800_vm12, %v4193_v49, 0.0 }
 0x876   : > { %2365 = vadd.xlane.f32.xlu1 %v2364_v14 }
 0x882   : > { %3136 = vrot.lane.b32.xlu0 %v3680_v53, %s3332_s12 }
 0x885   : > { %v2321_v7 = vpop.xlane.xlu0 %2320 }
 0x886   : > { %v2339_v59 = vsub.f32 %v2307_v31, %v2321_v7 }
 0x888   : > { %v2349_v18 = vmul.f32 1.442695, %v2339_v59 }
 0x88a   : > { %3277 = vpow2.f32 %v2349_v18 }
 0x88d   : > { %v2324_v47 = vpop.xlane.xlu1 %2323 }
 0x88e   : > { %v2340_v44 = vsub.f32 %v2308_v29, %v2324_v47 }
 0x890   : > { %v4199_v27 = vpop.eup %3277  ;;  %v2351_v46 = vmul.f32 1.442695, %v2340_v44 }
 0x891   : > { %v2367_v60 = vsel %vm800_vm12, %v4199_v27, 0.0 }
 0x892   : > { %3279 = vpow2.f32 %v2351_v46  ;;  %2368 = vadd.xlane.f32.xlu2 %v2367_v60 }
 0x898   : > { %v4203_v5 = vpop.eup %3279 }
 0x899   : > { %v2370_v16 = vsel %vm800_vm12, %v4203_v5, 0.0 }
 0x89a   : > { %2371 = vadd.xlane.f32.xlu1 %v2370_v16 }
 0x8b3   : > { %3141 = vrot.lane.b32.xlu1 %v3673_v52, %s3332_s12 }
 0x8c3   : > { %v2327_v53 = vpop.xlane.xlu2 %2326 }
 0x8c4   : > { %v2341_v31 = vsub.f32 %v2309_v23, %v2327_v53 }
 0x8c6   : > { %v2353_v29 = vmul.f32 1.442695, %v2341_v31  ;;  %v2333_v62 = vpop.xlane.xlu1 %2332 }
 0x8c7   : > { %v2343_v39 = vsub.f32 %v2311_v42, %v2333_v62 }
 0x8c8   : > { %3281 = vpow2.f32 %v2353_v29 }
 0x8c9   : > { %v2357_v20 = vmul.f32 1.442695, %v2343_v39 }
 0x8cb   : > { %3283 = vpow2.f32 %v2357_v20  ;;  %v2330_v42 = vpop.xlane.xlu0 %2329 }
 0x8ce   : > { %v4209_v34 = vpop.eup %3281  ;;  %v2336_v6 = vpop.xlane.xlu2 %2335 }
 0x8cf   : > { %v2344_v10 = vsub.f32 %v2312_v3, %v2336_v6  ;;  %v2373_v21 = vsel %vm800_vm12, %v4209_v34, 0.0  ;;  %v2342_v6 = vsub.f32 %v4181_v24, %v2330_v42 }
 0x8d0   : > { %2374 = vadd.xlane.f32.xlu2 %v2373_v21 }
 0x8d1   : > { %v4213_v45 = vpop.eup %3283  ;;  %v2359_v58 = vmul.f32 1.442695, %v2344_v10  ;;  %v2355_v10 = vmul.f32 1.442695, %v2342_v6 }
 0x8d2   : > { %v2379_v52 = vsel %vm800_vm12, %v4213_v45, 0.0 }
 0x8d3   : > { %3285 = vpow2.f32 %v2359_v58  ;;  %2380 = vadd.xlane.f32.xlu0 %v2379_v52 }
 0x8d9   : > { %v4217_v23 = vpop.eup %3285 }
 0x8da   : > { %v2382_v22 = vsel %vm800_vm12, %v4217_v23, 0.0 }
 0x8dd   : > { %2383 = vadd.xlane.f32.xlu1 %v2382_v22 }
 0x8e1   : > { %v2363_v3 = vpop.xlane.xlu0 %2362 }
 0x8e2   : > { %3287 = vrcp.f32 %v2363_v3  ;;  %v2396_v0 = vand.u32 2147483648, %v2363_v3  ;;  %vm2390_vm4 = vweird.f32 %v2363_v3  ;;  %v2394_v7 = vand.u32 2147483647, %v2363_v3 }
 0x8e4   : > { %v2397_v18 = vor.u32 1.1754944e-38, %v2396_v0  ;;  %vm2395_vm6 = vcmp.eq.f32.partialorder %v2394_v7, 8.507059e+37 }
 0x8e7   : > { %2685 = vrot.lane.b32.xlu0 %v4138_v40, %s3333_s14 }
 0x8e8   : > { %v3288_v9 = vpop.eup %3287  ;;  %3146 = vrot.lane.b32.xlu2 %v3692_v56, %s3332_s12 }
 0x8e9   : > { %v2386_v13 = vmul.f32 %v3288_v9, %v2363_v3  ;;  %v2366_v1 = vpop.xlane.xlu1 %2365  ;;  %vm2391_vm3 = vweird.f32 %v3288_v9 }
 0x8ea   : > { %3289 = vrcp.f32 %v2366_v1  ;;  %vm2392_vm5 = vmor %vm2390_vm4, %vm2391_vm3  ;;  %v2410_v16 = vand.u32 2147483648, %v2366_v1  ;;  %vm2404_vm8 = vweird.f32 %v2366_v1  ;;  %v2408_v29 = vand.u32 2147483647, %v2366_v1 }
 0x8eb   : > { %v2387_v30 = vsub.f32 1.0, %v2386_v13  ;;  %3291 = vpow2.f32 %v2355_v10 }
 0x8ec   : > { %v2411_v39 = vor.u32 1.1754944e-38, %v2410_v16  ;;  %vm2409_vm10 = vcmp.eq.f32.partialorder %v2408_v29, 8.507059e+37 }
 0x8ed   : > { %v2388_v19 = vmul.f32 %v3288_v9, %v2387_v30 }
 0x8ef   : > { %v2389_v63 = vadd.f32 %v3288_v9, %v2388_v19  ;;  %2657 = vrot.lane.b32.xlu0 %v4022_v50, %s3334_s10 }
 0x8f0   : > { %v3290_v14 = vpop.eup %3289 }
 0x8f1   : > { %v2400_v40 = vmul.f32 %v3290_v14, %v2366_v1  ;;  %v2393_v59 = vsel %vm2392_vm5, %v3288_v9, %v2389_v63  ;;  %vm2405_vm7 = vweird.f32 %v3290_v14 }
 0x8f2   : > { %v2398_v44 = vsel %vm2395_vm6, %v2397_v18, %v2393_v59  ;;  %vm2406_vm9 = vmor %vm2404_vm8, %vm2405_vm7 }
 0x8f3   : > { %v2401_v56 = vsub.f32 1.0, %v2400_v40  ;;  %v2497_v31 = vmul.f32 %v4189_v15, %v2398_v44  ;;  %v4234_v15 = vpop.eup %3291 }
 0x8f4   : > { %v3137_v47 = vpop.permute.xlu0 %3136  ;;  %v2376_v22 = vsel %vm800_vm12, %v4234_v15, 0.0 }
 0x8f5   : > { %v2402_v46 = vmul.f32 %v3290_v14, %v2401_v56  ;;  %v3138_v60 = vunpack.i.l.bf16 %v3137_v47  ;;  %v3139_v53 = vunpack.i.h.bf16 %v3137_v47 }
 0x8f6   : > { %2687 = vrot.lane.b32.xlu1 %v4140_v55, %s3333_s14 }
 0x8f7   : > { %2531 = vmatpush.msrb.mxu0 %v3138_v60  ;;  %v2403_v50 = vadd.f32 %v3290_v14, %v2402_v46 }
 0x8f9   : > { %2532 = vmatpush.msrb.mxu0 %v3139_v53  ;;  %v2407_v62 = vsel %vm2406_vm9, %v3290_v14, %v2403_v50 }
 0x8fa   : > { %3020 = vmatmul.msk.f32.vlgmr.msrb.gmra.mxu0 %vm800_vm12, %v2497_v31  ;;  %v2412_v20 = vsel %vm2409_vm10, %v2411_v39, %v2407_v62 }
 0x8fb   : > { %v2498_v55 = vmul.f32 %v4193_v49, %v2412_v20 }
 0x902   : > { %3021 = vmatmul.msk.f32.gmra.mxu0 %vm800_vm12, %v2498_v55 }
 0x905   : > { %v2369_v21 = vpop.xlane.xlu2 %2368 }
 0x906   : > { %3293 = vrcp.f32 %v2369_v21  ;;  %v2424_v30 = vand.u32 2147483648, %v2369_v21  ;;  %vm2418_vm14 = vweird.f32 %v2369_v21  ;;  %v2422_v19 = vand.u32 2147483647, %v2369_v21 }
 0x908   : > { %v2425_v14 = vor.u32 1.1754944e-38, %v2424_v30  ;;  %vm2423_vm1 = vcmp.eq.f32.partialorder %v2422_v19, 8.507059e+37 }
 0x90c   : > { %v3294_v52 = vpop.eup %3293 }
 0x90d   : > { %v2372_v58 = vpop.xlane.xlu1 %2371  ;;  %v2414_v3 = vmul.f32 %v3294_v52, %v2369_v21  ;;  %vm2419_vm13 = vweird.f32 %v3294_v52 }
 0x90e   : > { %3295 = vrcp.f32 %v2372_v58  ;;  %vm2420_vm15 = vmor %vm2418_vm14, %vm2419_vm13  ;;  %v2438_v56 = vand.u32 2147483648, %v2372_v58  ;;  %vm2432_vm3 = vweird.f32 %v2372_v58  ;;  %v2436_v46 = vand.u32 2147483647, %v2372_v58 }
 0x90f   : > { %v2415_v9 = vsub.f32 1.0, %v2414_v3 }
 0x910   : > { %v2439_v16 = vor.u32 1.1754944e-38, %v2438_v56  ;;  %vm2437_vm5 = vcmp.eq.f32.partialorder %v2436_v46, 8.507059e+37 }
 0x911   : > { %2377 = vadd.xlane.f32.xlu2 %v2376_v22  ;;  %v2416_v42 = vmul.f32 %v3294_v52, %v2415_v9 }
 0x913   : > { %v2417_v13 = vadd.f32 %v3294_v52, %v2416_v42 }
 0x914   : > { %v3296_v24 = vpop.eup %3295 }
 0x915   : > { %v2428_v49 = vmul.f32 %v3296_v24, %v2372_v58  ;;  %v2421_v63 = vsel %vm2420_vm15, %v3294_v52, %v2417_v13  ;;  %vm2433_vm2 = vweird.f32 %v3296_v24 }
 0x916   : > { %v2426_v40 = vsel %vm2423_vm1, %v2425_v14, %v2421_v63  ;;  %vm2434_vm4 = vmor %vm2432_vm3, %vm2433_vm2 }
 0x917   : > { %v2429_v1 = vsub.f32 1.0, %v2428_v49  ;;  %v2499_v44 = vmul.f32 %v4199_v27, %v2426_v40 }
 0x919   : > { %v2430_v0 = vmul.f32 %v3296_v24, %v2429_v1 }
 0x91b   : > { %v2431_v18 = vadd.f32 %v3296_v24, %v2430_v0 }
 0x91d   : > { %v2435_v60 = vsel %vm2434_vm4, %v3296_v24, %v2431_v18 }
 0x91e   : > { %v2440_v53 = vsel %vm2437_vm5, %v2439_v16, %v2435_v60 }
 0x91f   : > { %v2500_v50 = vmul.f32 %v4203_v5, %v2440_v53 }
 0x925   : > { %v3142_v7 = vpop.permute.xlu1 %3141 }
 0x926   : > { %v3143_v59 = vunpack.i.l.bf16 %v3142_v7  ;;  %v3144_v47 = vunpack.i.h.bf16 %v3142_v7 }
 0x928   : > { %2566 = vmatpush.msrb.mxu1 %v3143_v59 }
 0x929   : > { %3151 = vrot.lane.b32.xlu2 %v3684_v54, %s3332_s12 }
 0x92a   : > { %2567 = vmatpush.msrb.mxu1 %v3144_v47 }
 0x92b   : > { %3022 = vmatmul.msk.f32.vlgmr.msrb.gmra.mxu1 %vm800_vm12, %v2499_v44 }
 0x931   : > { %2653 = vrot.lane.b32.xlu2 %v3991_v43, %s3334_s10 }
 0x933   : > { %3023 = vmatmul.msk.f32.gmra.mxu1 %vm800_vm12, %v2500_v50 }
 0x939   : > { %2655 = vrot.lane.b32.xlu2 %v3995_v51, %s3334_s10 }
 0x943   : > { %v2375_v54 = vpop.xlane.xlu2 %2374 }
 0x944   : > { %3297 = vrcp.f32 %v2375_v54  ;;  %v2452_v20 = vand.u32 2147483648, %v2375_v54  ;;  %v2450_v43 = vand.u32 2147483647, %v2375_v54  ;;  %vm2446_vm7 = vweird.f32 %v2375_v54 }
 0x946   : > { %v2453_v10 = vor.u32 1.1754944e-38, %v2452_v20  ;;  %vm2451_vm9 = vcmp.eq.f32.partialorder %v2450_v43, 8.507059e+37  ;;  %v2381_v52 = vpop.xlane.xlu0 %2380 }
 0x947   : > { %3299 = vrcp.f32 %v2381_v52  ;;  %v2480_v0 = vand.u32 2147483648, %v2381_v52  ;;  %vm2474_vm13 = vweird.f32 %v2381_v52  ;;  %v2478_v14 = vand.u32 2147483647, %v2381_v52 }
 0x949   : > { %v2481_v18 = vor.u32 1.1754944e-38, %v2480_v0  ;;  %vm2479_vm15 = vcmp.eq.f32.partialorder %v2478_v14, 8.507059e+37 }
 0x94a   : > { %v3298_v27 = vpop.eup %3297 }
 0x94b   : > { %v2442_v31 = vmul.f32 %v3298_v27, %v2375_v54  ;;  %v3147_v29 = vpop.permute.xlu2 %3146  ;;  %vm2447_vm6 = vweird.f32 %v3298_v27 }
 0x94c   : > { %v3148_v62 = vunpack.i.l.bf16 %v3147_v29  ;;  %v3149_v6 = vunpack.i.h.bf16 %v3147_v29  ;;  %vm2448_vm8 = vmor %vm2446_vm7, %vm2447_vm6 }
 0x94d   : > { %v2443_v39 = vsub.f32 1.0, %v2442_v31  ;;  %v3300_v3 = vpop.eup %3299 }
 0x94e   : > { %2601 = vmatpush.msrb.mxu2 %v3148_v62  ;;  %v2470_v24 = vmul.f32 %v3300_v3, %v2381_v52  ;;  %vm2475_vm10 = vweird.f32 %v3300_v3 }
 0x94f   : > { %v2444_v55 = vmul.f32 %v3298_v27, %v2443_v39  ;;  %vm2476_vm14 = vmor %vm2474_vm13, %vm2475_vm10 }
 0x950   : > { %2602 = vmatpush.msrb.mxu2 %v3149_v6  ;;  %v2384_v22 = vpop.xlane.xlu1 %2383  ;;  %v2471_v42 = vsub.f32 1.0, %v2470_v24 }
 0x951   : > { %v2445_v5 = vadd.f32 %v3298_v27, %v2444_v55  ;;  %3301 = vrcp.f32 %v2384_v22  ;;  %vm2488_vm1 = vweird.f32 %v2384_v22  ;;  %v2494_v53 = vand.u32 2147483648, %v2384_v22 }
 0x952   : > { %v2472_v1 = vmul.f32 %v3300_v3, %v2471_v42 }
 0x953   : > { %v2449_v21 = vsel %vm2448_vm8, %v3298_v27, %v2445_v5  ;;  %v2492_v27 = vand.u32 2147483647, %v2384_v22  ;;  %v2495_v20 = vor.u32 1.1754944e-38, %v2494_v53 }
 0x954   : > { %v2454_v51 = vsel %vm2451_vm9, %v2453_v10, %v2449_v21  ;;  %v2473_v19 = vadd.f32 %v3300_v3, %v2472_v1  ;;  %vm2757_vm9 = vcmask 195584  }
 0x955   : > { %v2501_v58 = vmul.f32 %v4209_v34, %v2454_v51  ;;  %vm2493_vm8 = vcmp.eq.f32.partialorder %v2492_v27, 8.507059e+37 }
 0x956   : > { %v2477_v7 = vsel %vm2476_vm14, %v3300_v3, %v2473_v19 }
 0x957   : > { %3024 = vmatmul.msk.f32.vlgmr.msrb.gmra.mxu2 %vm800_vm12, %v2501_v58  ;;  %v3302_v49 = vpop.eup %3301  ;;  %v2482_v44 = vsel %vm2479_vm15, %v2481_v18, %v2477_v7 }
 0x958   : > { %v2484_v30 = vmul.f32 %v3302_v49, %v2384_v22  ;;  %vm2489_vm2 = vweird.f32 %v3302_v49  ;;  %v2503_v31 = vmul.f32 %v4213_v45, %v2482_v44  ;;  %v3158_v44 = vld [vmem:[%s4383_s7] ss:$0 sm:$0xff] }
 0x959   : > { %vm2490_vm4 = vmor %vm2488_vm1, %vm2489_vm2  ;;  %v2686_v51 = vpop.permute.xlu0 %2685 }
 0x95a   : > { %v2485_v63 = vsub.f32 1.0, %v2484_v30 }
 0x95c   : > { %v2486_v40 = vmul.f32 %v3302_v49, %v2485_v63 }
 0x95e   : > { %v2487_v16 = vadd.f32 %v3302_v49, %v2486_v40 }
 0x960   : > { %v2491_v39 = vsel %vm2490_vm4, %v3302_v49, %v2487_v16 }
 0x977   : > { %v2534_v9 = vpop.f32.mrf.mxu0 }
 0x978   : > { %2717 = vrot.lane.b32.xlu2 %v2534_v9, %s3335_s13 }
 0x97f   : > { %v2537_v13 = vpop.f32.mrf.mxu0 }
 0x980   : > { %2719 = vrot.lane.b32.xlu2 %v2537_v13, %s3335_s13 }
 0x984   : > { %v2378_v34 = vpop.xlane.xlu2 %2377 }
 0x985   : > { %3303 = vrcp.f32 %v2378_v34  ;;  %v2466_v50 = vand.u32 2147483648, %v2378_v34  ;;  %v2464_v29 = vand.u32 2147483647, %v2378_v34  ;;  %vm2460_vm5 = vweird.f32 %v2378_v34 }
 0x987   : > { %v2467_v6 = vor.u32 1.1754944e-38, %v2466_v50  ;;  %vm2465_vm7 = vcmp.eq.f32.partialorder %v2464_v29, 8.507059e+37 }
 0x988   : > { %2689 = vrot.lane.b32.xlu2 %v4150_v8, %s3333_s14 }
 0x98b   : > { %v3304_v59 = vpop.eup %3303 }
 0x98c   : > { %v2456_v56 = vmul.f32 %v3304_v59, %v2378_v34  ;;  %v3152_v47 = vpop.permute.xlu2 %3151  ;;  %vm2461_vm3 = vweird.f32 %v3304_v59 }
 0x98d   : > { %v3153_v46 = vunpack.i.l.bf16 %v3152_v47  ;;  %v3154_v54 = vunpack.i.h.bf16 %v3152_v47  ;;  %vm2462_vm6 = vmor %vm2460_vm5, %vm2461_vm3 }
 0x98e   : > { %v2457_v60 = vsub.f32 1.0, %v2456_v56 }
 0x98f   : > { %2636 = vmatpush.msrb.mxu3 %v3153_v46 }
 0x990   : > { %v2458_v8 = vmul.f32 %v3304_v59, %v2457_v60  ;;  %2659 = vrot.lane.b32.xlu2 %v4024_v17, %s3334_s10  ;;  %v2496_v17 = vsel %vm2493_vm8, %v2495_v20, %v2491_v39 }
 0x991   : > { %2637 = vmatpush.msrb.mxu3 %v3154_v54  ;;  %v2504_v5 = vmul.f32 %v4217_v23, %v2496_v17  ;;  %v2767_v23 = vld [vmem:[%s4382_s6 + $0x8] sm:$0xff] }
 0x992   : > { %3026 = vmatmul.msk.f32.vlgmr.msrb.gmra.mxu3 %vm800_vm12, %v2503_v31  ;;  %v2459_v62 = vadd.f32 %v3304_v59, %v2458_v8  ;;  %v3306_v54 = vld [vmem:[%s3397_s11 + $0x8] sm:$0xff] }
 0x994   : > { %v2463_v55 = vsel %vm2462_vm6, %v3304_v59, %v2459_v62  ;;  %v2654_v21 = vpop.permute.xlu2 %2653 }
 0x995   : > { %v2468_v43 = vsel %vm2465_vm7, %v2467_v6, %v2463_v55 }
 0x996   : > { %v2502_v45 = vmul.f32 %v4234_v15, %v2468_v43  ;;  %v2769_v15 = vld [vmem:[%s4382_s6 + $0x18] sm:$0xff] }
 0x997   : > { %2810 = vmatpush.msra.mxu0 %v2769_v15 }
 0x998   : > { %2661 = vrot.lane.b32.xlu2 %v4010_v32, %s3334_s10  ;;  %3025 = vmatmul.msk.f32.gmra.mxu2 %vm800_vm12, %v2502_v45  ;;  %v2768_v32 = vld [vmem:[%s4382_s6 + $0x10] sm:$0xff] }
 0x999   : > { %2811 = vmatpush.msra.mxu0 %v2768_v32 }
 0x99a   : > { %3027 = vmatmul.msk.f32.gmra.mxu3 %vm800_vm12, %v2504_v5 }
 0x99b   : > { %2812 = vmatpush.msra.mxu0 %v2767_v23 }
 0x9a0   : > { %2663 = vrot.lane.b32.xlu2 %v4012_v57, %s3334_s10 }
 0x9a8   : > { %2665 = vrot.lane.b32.xlu2 %v4030_v25, %s3334_s10  ;;  %v2569_v10 = vpop.f32.mrf.mxu1  ;;  %v2766_v25 = vld [vmem:[%s4382_s6] sm:$0xff] }
 0x9a9   : > { %2721 = vrot.lane.b32.xlu0 %v2569_v10, %s3335_s13  ;;  %2813 = vmatpush.msra.mxu0 %v2766_v25 }
 0x9b0   : > { %2667 = vrot.lane.b32.xlu2 %v4036_v4, %s3334_s10  ;;  %v2572_v57 = vpop.f32.mrf.mxu1  ;;  %v2656_v4 = vpop.permute.xlu2 %2655 }
 0x9b1   : > { %2691 = vrot.lane.b32.xlu0 %v4152_v61, %s3333_s14  ;;  %2723 = vrot.lane.b32.xlu1 %v2572_v57, %s3335_s13  ;;  %v2741_v61 = vsel %vm641_vm11, %v3828_v48, %v2654_v21  ;;  %v3307_v57 = vld [vmem:[%s3397_s11 + $0x10] sm:$0xff] }
 0x9b2   : > { %v2749_v58 = vsel %vm800_vm12, %v2741_v61, %v2686_v51 }
 0x9b9   : > { %2693 = vrot.lane.b32.xlu0 %v4162_v37, %s3333_s14 }
 0x9c1   : > { %2695 = vrot.lane.b32.xlu0 %v4166_v26, %s3333_s14  ;;  %v2742_v26 = vsel %vm641_vm11, %v3838_v2, %v2656_v4 }
 0x9c9   : > { %2697 = vrot.lane.b32.xlu0 %v4164_v33, %s3333_s14  ;;  %v2688_v33 = vpop.permute.xlu1 %2687 }
 0x9ca   : > { %v2750_v48 = vsel %vm800_vm12, %v2742_v26, %v2688_v33  ;;  %v3309_v26 = vld [vmem:[%s3397_s11 + $0x20] sm:$0xff] }
 0x9d1   : > { %2699 = vrot.lane.b32.xlu0 %v4168_v28, %s3333_s14  ;;  %v2658_v28 = vpop.permute.xlu0 %2657 }
 0x9d2   : > { %v2718_v52 = vpop.permute.xlu2 %2717  ;;  %v2743_v42 = vsel %vm641_vm11, %v3813_v35, %v2658_v28 }
 0x9d3   : > { %v2758_v37 = vsel %vm2757_vm9, %v2749_v58, %v2718_v52  ;;  %v3308_v58 = vld [vmem:[%s3397_s11 + $0x18] sm:$0xff] }
 0x9d4   : > { %3028 = vmatmul.msk.f32.vlgmr.msra.gmra.mxu0 %vm322_vm0, %v2758_v37 }
 0x9da   : > { %v2720_v22 = vpop.permute.xlu2 %2719  ;;  %v2604_v3 = vpop.f32.mrf.mxu2 }
 0x9db   : > { %2725 = vrot.lane.b32.xlu1 %v2604_v3, %s3335_s13  ;;  %v2759_v9 = vsel %vm2757_vm9, %v2750_v48, %v2720_v22  ;;  %v3310_v48 = vld [vmem:[%s3397_s11 + $0x28] sm:$0xff] }
 0x9dc   : > { %3029 = vmatmul.msk.f32.gmra.mxu0 %vm322_vm0, %v2759_v9 }
 0x9e2   : > { %v2690_v24 = vpop.permute.xlu2 %2689 }
 0x9e3   : > { %v2751_v49 = vsel %vm800_vm12, %v2743_v42, %v2690_v24  ;;  %v3311_v42 = vld [vmem:[%s3397_s11 + $0x30] sm:$0xff] }
 0x9ea   : > { %v2660_v30 = vpop.permute.xlu2 %2659 }
 0x9eb   : > { %v2744_v19 = vsel %vm641_vm11, %v3817_v41, %v2660_v30 }
 0x9f2   : > { %v2662_v40 = vpop.permute.xlu2 %2661 }
 0x9f3   : > { %v2745_v41 = vsel %vm641_vm11, %v3815_v36, %v2662_v40  ;;  %v3305_v36 = vld [vmem:[%s3397_s11] sm:$0xff] }
 0x9fa   : > { %v2664_v8 = vpop.permute.xlu2 %2663 }
 0x9fb   : > { %v2746_v29 = vsel %vm641_vm11, %v3819_v38, %v2664_v8 }
 0xa02   : > { %v2666_v6 = vpop.permute.xlu2 %2665 }
 0xa03   : > { %v2747_v43 = vsel %vm641_vm11, %v3844_v11, %v2666_v6 }
 0xa0a   : > { %v2668_v38 = vpop.permute.xlu2 %2667 }
 0xa0b   : > { %v2748_v23 = vsel %vm641_vm11, %v3846_v12, %v2668_v38 }
 0xa15   : > { %v2639_v34 = vpop.f32.mrf.mxu3 }
 0xa1b   : > { %v2722_v13 = vpop.permute.xlu0 %2721  ;;  %v2607_v2 = vpop.f32.mrf.mxu2 }
 0xa1c   : > { %2727 = vrot.lane.b32.xlu1 %v2607_v2, %s3335_s13  ;;  %v2760_v1 = vsel %vm2757_vm9, %v2751_v49, %v2722_v13 }
 0xa1d   : > { %3030 = vmatmul.msk.f32.gmra.mxu0 %vm322_vm0, %v2760_v1  ;;  %v2642_v7 = vpop.f32.mrf.mxu3  ;;  %v3312_v1 = vld [vmem:[%s3397_s11 + $0x38] sm:$0xff] }
 0xa23   : > { %v2692_v63 = vpop.permute.xlu0 %2691  ;;  %v2724_v0 = vpop.permute.xlu1 %2723 }
 0xa24   : > { %v2752_v14 = vsel %vm800_vm12, %v2744_v19, %v2692_v63  ;;  %2729 = vrot.lane.b32.xlu1 %v2639_v34, %s3335_s13 }
 0xa25   : > { %v2761_v35 = vsel %vm2757_vm9, %v2752_v14, %v2724_v0 }
 0xa26   : > { %3031 = vmatmul.msk.f32.gmra.mxu0 %vm322_vm0, %v2761_v35 }
 0xa2b   : > { %v2694_v59 = vpop.permute.xlu0 %2693 }
 0xa2c   : > { %2731 = vrot.lane.b32.xlu1 %v2642_v7, %s3335_s13  ;;  %v2753_v18 = vsel %vm800_vm12, %v2745_v41, %v2694_v59 }
 0xa33   : > { %v2696_v31 = vpop.permute.xlu0 %2695 }
 0xa34   : > { %v2754_v62 = vsel %vm800_vm12, %v2746_v29, %v2696_v31 }
 0xa3b   : > { %v2698_v55 = vpop.permute.xlu0 %2697 }
 0xa3c   : > { %v2755_v17 = vsel %vm800_vm12, %v2747_v43, %v2698_v55 }
 0xa43   : > { %v2700_v15 = vpop.permute.xlu0 %2699 }
 0xa44   : > { %v2756_v25 = vsel %vm800_vm12, %v2748_v23, %v2700_v15 }
 0xa4d   : > { %v2726_v56 = vpop.permute.xlu1 %2725 }
 0xa4e   : > { %v2762_v47 = vsel %vm2757_vm9, %v2753_v18, %v2726_v56 }
 0xa4f   : > { %3032 = vmatmul.msk.f32.gmra.mxu0 %vm322_vm0, %v2762_v47 }
 0xa51   : > { %v2815_v46 = vpop.f32.mrf.mxu0 }
 0xa52   : > { %v2816_v60 = vadd.f32 %v3158_v44, %v2815_v46 }
 0xa54   : > { %v2839_v16 = vadd.f32 %v3305_v36, %v2816_v60 }
 0xa56   : > { %2847 = vst.msk [vmem:[%s4332_s26] sm:$0xff] %vm322_vm0, %v2839_v16 }
 0xa59   : > { %v2818_v53 = vpop.f32.mrf.mxu0 }
 0xa5a   : > { %v2819_v50 = vadd.f32 %v3158_v44, %v2818_v53 }
 0xa5c   : > { %v2840_v27 = vadd.f32 %v3306_v54, %v2819_v50 }
 0xa5e   : > { %2848 = vst.msk [vmem:[%s4332_s26 + $0x8] sm:$0xff] %vm322_vm0, %v2840_v27 }
 0xa8e   : > { %v2728_v39 = vpop.permute.xlu1 %2727 }
 0xa8f   : > { %v2763_v20 = vsel %vm2757_vm9, %v2754_v62, %v2728_v39 }
 0xa90   : > { %3033 = vmatmul.msk.f32.gmra.mxu0 %vm322_vm0, %v2763_v20 }
 0xa96   : > { %v2730_v45 = vpop.permute.xlu1 %2729 }
 0xa97   : > { %v2764_v5 = vsel %vm2757_vm9, %v2755_v17, %v2730_v45 }
 0xa98   : > { %3034 = vmatmul.msk.f32.gmra.mxu0 %vm322_vm0, %v2764_v5 }
 0xa9a   : > { %v2821_v10 = vpop.f32.mrf.mxu0 }
 0xa9b   : > { %v2822_v32 = vadd.f32 %v3158_v44, %v2821_v10 }
 0xa9d   : > { %v2841_v11 = vadd.f32 %v3307_v57, %v2822_v32 }
 0xa9e   : > { %v2732_v21 = vpop.permute.xlu1 %2731 }
 0xa9f   : > { %2849 = vst.msk [vmem:[%s4332_s26 + $0x10] sm:$0xff] %vm322_vm0, %v2841_v11  ;;  %v2765_v4 = vsel %vm2757_vm9, %v2756_v25, %v2732_v21 }
 0xaa0   : > { %3035 = vmatmul.msk.f32.gmra.mxu0 %vm322_vm0, %v2765_v4 }
 0xaa3   : > { %v2824_v61 = vpop.f32.mrf.mxu0 }
 0xaa4   : > { %v2825_v51 = vadd.f32 %v3158_v44, %v2824_v61 }
 0xaa6   : > { %v2842_v52 = vadd.f32 %v3308_v58, %v2825_v51 }
 0xaa8   : > { %2850 = vst.msk [vmem:[%s4332_s26 + $0x18] sm:$0xff] %vm322_vm0, %v2842_v52 }
 0xacc   : > { %v2827_v12 = vpop.f32.mrf.mxu0 }
 0xacd   : > { %v2828_v37 = vadd.f32 %v3158_v44, %v2827_v12 }
 0xacf   : > { %v2843_v33 = vadd.f32 %v3309_v26, %v2828_v37 }
 0xad1   : > { %2851 = vst.msk [vmem:[%s4332_s26 + $0x20] sm:$0xff] %vm322_vm0, %v2843_v33 }
 0xb0d   : > { %v2830_v22 = vpop.f32.mrf.mxu0 }
 0xb0e   : > { %v2831_v3 = vadd.f32 %v3158_v44, %v2830_v22 }
 0xb10   : > { %v2844_v9 = vadd.f32 %v3310_v48, %v2831_v3 }
 0xb12   : > { %2852 = vst.msk [vmem:[%s4332_s26 + $0x28] sm:$0xff] %vm322_vm0, %v2844_v9 }
 0xb15   : > { %v2833_v28 = vpop.f32.mrf.mxu0 }
 0xb16   : > { %v2834_v24 = vadd.f32 %v3158_v44, %v2833_v28 }
 0xb18   : > { %v2845_v49 = vadd.f32 %v3311_v42, %v2834_v24 }
 0xb1a   : > { %2853 = vst.msk [vmem:[%s4332_s26 + $0x30] sm:$0xff] %vm322_vm0, %v2845_v49 }
 0xb1d   : > { %v2836_v13 = vpop.f32.mrf.mxu0 }
 0xb1e   : > { %v2837_v2 = vadd.f32 %v3158_v44, %v2836_v13 }
 0xb20   : > { %v2846_v30 = vadd.f32 %v3312_v1, %v2837_v2 }
 0xb22   : > { %2854 = vst.msk [vmem:[%s4332_s26 + $0x38] sm:$0xff] %vm322_vm0, %v2846_v30 }
 0xb23 PF: > { %s18_s27 = sadd.s32 1, %s3319_s27  }
 0xb24   : > { %p15_p4 = scmp.ge.s32.totalorder %s18_s27, 4  }
 0xb26   :  { %17 = sbr.rel (!%p15_p4) target bundleno = 1 (0x1), region = 82 }

</bundles_post_ra>
